<compile_context>
chip_gen: v6e
topology: v6e:2x2x1
jax: 0.10.0
libtpu: 0.0.40
codegen_flags: <defaults>
</compile_context>

<pallas_src>
import functools
import math

import jax
import jax.numpy as jnp
import numpy as np
from jax.experimental import pallas as pl
from jax.experimental.pallas import tpu as pltpu

_BN_EPS = 1e-5
_INV_SQRT2 = 1.0 / math.sqrt(2.0)


def _erf(x):
    # TODO(synk): lax.erf has no guaranteed Mosaic lowering; use the A&S 7.1.26
    # polynomial (max abs err 1.5e-7) built only from exp/abs/where/reciprocal.
    a1, a2, a3, a4, a5 = 0.254829592, -0.284496736, 1.421413741, -1.453152027, 1.061405429
    p = 0.3275911
    ax = jnp.abs(x)
    t = pl.reciprocal(1.0 + p * ax, approx=True)        # EUP slot, not VALU divide
    poly = ((((a5 * t + a4) * t + a3) * t + a2) * t + a1) * t
    y = 1.0 - poly * jnp.exp(-ax * ax)
    return jnp.where(x >= 0, y, -y)


def _gelu(x):
    # exact (erf-based) GELU, matching torch.nn.GELU() default
    return 0.5 * x * (1.0 + _erf(x * _INV_SQRT2))


# ----------------------------- pass 1 ---------------------------------------
def _dwconv_gelu_kernel(xp_ref, w_ref, b_ref, y_ref, st_ref, *, D, H, W, C):
    """Depthwise 3x3x3 conv + bias + GELU for one whole sample (all D planes).

    xp_ref: (1, D, H+2, (W+2)*C)  H/W-padded input slab (lane-dense), resident
    w_ref:  (27, (W+2)*C)         per-channel taps tiled across the padded width
    b_ref:  (1, W*C)
    y_ref:  (1, D, H, W*C)        bf16 GELU output (BN1 input)
    st_ref: (1, 2, W*C)           row0 = sum(y), row1 = sum(y*y) over this sample
    """
    WC = W * C
    WpC = (W + 2) * C
    b = b_ref[...]                                       # (1, WC)
    s_acc = jnp.zeros((1, WC), jnp.float32)
    q_acc = jnp.zeros((1, WC), jnp.float32)

    for d in range(D):                                   # static unroll over output planes
        # three kw-partial accumulators on the padded width (no per-tap lane shift)
        accs = [jnp.zeros((H, WpC), jnp.float32) for _ in range(3)]
        for kd in range(3):
            din = d + kd - 1
            if din < 0 or din >= D:                      # static zero-halo skip (no depth pad)
                continue
            plane = xp_ref[0, din]                       # (Hp, WpC): one VMEM load per (d,kd)
            for kh in range(3):
                rows = plane[kh:kh + H, :]               # sublane-offset view, register-level
                for kw in range(3):
                    idx = kd * 9 + kh * 3 + kw
                    wt = w_ref[idx:idx + 1, :]           # (1, WpC) tap, read in-loop (no vreg slab)
                    accs[kw] = accs[kw] + rows * wt
        # combine kw partials with just two unaligned lane slices per plane
        conv = accs[0][:, 0:WC] + accs[1][:, C:C + WC] + accs[2][:, 2 * C:2 * C + WC]
        y = _gelu(conv + b)
        y_ref[0, d] = y.astype(y_ref.dtype)
        s_acc = s_acc + jnp.sum(y, axis=0, keepdims=True)
        q_acc = q_acc + jnp.sum(y * y, axis=0, keepdims=True)

    st_ref[0, 0:1, :] = s_acc                            # two row stores, no concat
    st_ref[0, 1:2, :] = q_acc


# ----------------------------- pass 2 ---------------------------------------
def _mixer_kernel(y_ref, x_ref, s1_ref, t1_ref, w_ref, b_ref, z_ref, st_ref,
                  *, tm, m_valid, needs_mask):
    """BN1 apply + residual + pointwise conv (block-diag 128x128 matmul) + GELU."""
    y = y_ref[...].astype(jnp.float32) * s1_ref[...] + t1_ref[...] + x_ref[...]
    z = jnp.dot(y, w_ref[...], preferred_element_type=jnp.float32) + b_ref[...]
    z = _gelu(z)
    z_ref[...] = z
    if needs_mask:
        row = jax.lax.broadcasted_iota(jnp.int32, (tm, 1), 0) + pl.program_id(0) * tm
        zm = jnp.where(row < m_valid, z, 0.0)            # keep padded rows out of BN2 stats
    else:
        zm = z
    st_ref[0, 0:1, :] = jnp.sum(zm, axis=0, keepdims=True)
    st_ref[0, 1:2, :] = jnp.sum(zm * zm, axis=0, keepdims=True)


def _choose_tile(m4):
    """(TM, G, M4_pad) for the lane-dense (M4, 128) pass-2 tiling.

    Large tiles (<=2048 rows) amortize the ~0.35us/step overhead, >=2 grid
    steps keep both v7x TensorCores busy, multiples of 16 rows keep the bf16
    input block tile-aligned.  Prefers an exact divisor (no padding copy).
    """
    if m4 <= 16:
        return m4, 1, m4
    cap = min(2048, m4 // 2)
    cap -= cap % 16
    cap = max(cap, 16)
    for tm in range(cap, 15, -16):
        if m4 % tm == 0 and tm >= min(256, cap):
            return tm, m4 // tm, m4
    tm = min(2048, ((-(-m4 // 2)) + 15) // 16 * 16)
    g = -(-m4 // tm)
    return tm, g, tm * g


def convmixer_forward(x_ncdhw, params):
    """x_ncdhw: (N, 32, D, H, W) float32 -> (N, 32, D, H, W) float32."""
    w_dw, b_dw, g1, bt1, w_pw, b_pw, g2, bt2 = params
    N, C, D, H, W = x_ncdhw.shape
    assert 128 % C == 0, "channels must divide 128 for the lane-dense layout"
    R = 128 // C                                  # spatial positions per 128-lane row
    M = N * D * H * W
    assert M % R == 0
    M4 = M // R                                   # rows of the lane-dense (M4, 128) slab
    Hp, Wp = H + 2, W + 2
    WC = W * C
    f32 = jnp.float32

    x = jnp.transpose(x_ncdhw, (0, 2, 3, 4, 1)).astype(f32)               # NDHWC
    # TODO(synk): the H/W halo pad is still an XLA pad (one extra pass over the
    # input); folding it into pass 1 would need a zero-initialized VMEM scratch
    # slab + interior-only DMA.  Depth halo is already handled in-kernel.
    x_hw = jnp.pad(x, ((0, 0), (0, 0), (1, 1), (1, 1), (0, 0)))
    x_slab = x_hw.reshape(N, D, Hp, Wp * C)                               # lane-dense slabs
    x_ld = x.reshape(M4, 128)                                             # residual, lane-dense

    # Small per-channel params, lane-dense, built once in the wrapper (hoisted).
    w_dw_lp = jnp.tile(w_dw.reshape(27, C), (1, Wp))                      # (27, (W+2)*C)
    b_dw_l = jnp.tile(b_dw.reshape(1, C), (1, W))                         # (1, W*C)
    w_pw_bd = jnp.kron(jnp.eye(R, dtype=f32), w_pw.astype(f32))           # (128,128) block-diag
    b_pw_l = jnp.tile(b_pw.reshape(1, C), (1, R))                         # (1,128)

    # ---- pass 1: depthwise conv + GELU per sample slab, emit y (bf16) + BN1 stats ----
    # TODO(synk): for very large D*H*W tile the depth axis (TD planes + 2 halo per
    # step) so the resident slab stays within v7x's 64 MiB VMEM.
    pass1 = pl.pallas_call(
        functools.partial(_dwconv_gelu_kernel, D=D, H=H, W=W, C=C),
        out_shape=(jax.ShapeDtypeStruct((N, D, H, WC), jnp.bfloat16),
                   jax.ShapeDtypeStruct((N, 2, WC), f32)),
        grid=(N,),
        in_specs=[pl.BlockSpec((1, D, Hp, Wp * C), lambda n: (n, 0, 0, 0)),
                  pl.BlockSpec((27, Wp * C), lambda n: (0, 0)),
                  pl.BlockSpec((1, WC), lambda n: (0, 0))],
        out_specs=(pl.BlockSpec((1, D, H, WC), lambda n: (n, 0, 0, 0)),
                   pl.BlockSpec((1, 2, WC), lambda n: (n, 0, 0))),
        compiler_params=pltpu.CompilerParams(dimension_semantics=("parallel",)),
        cost_estimate=pl.CostEstimate(
            flops=2 * 27 * M * C + 30 * M * C,
            transcendentals=2 * M * C,
            bytes_accessed=4 * N * D * Hp * Wp * C + 2 * M * C),
    )
    y, st1 = pass1(x_slab, w_dw_lp, b_dw_l)

    def _bn_scale_shift(sum_c, sumsq_c, gamma, beta):
        mean = sum_c / M
        var = jnp.maximum(sumsq_c / M - mean * mean, 0.0)
        scale = gamma.reshape(-1) * jax.lax.rsqrt(var + _BN_EPS)
        shift = beta.reshape(-1) - mean * scale
        return scale, shift

    s1c = jnp.sum(st1[:, 0, :], axis=0).reshape(W, C).sum(axis=0)
    q1c = jnp.sum(st1[:, 1, :], axis=0).reshape(W, C).sum(axis=0)
    scale1, shift1 = _bn_scale_shift(s1c, q1c, g1, bt1)
    scale1_l = jnp.tile(scale1, R).reshape(1, 128)
    shift1_l = jnp.tile(shift1, R).reshape(1, 128)

    # ---- pass 2: BN1 + residual + pointwise matmul + GELU, emit z and BN2 stats ----
    y_ld = y.reshape(M4, 128)
    TM, G2, M4_pad = _choose_tile(M4)
    needs_mask = M4_pad != M4
    if needs_mask:
        y_ld = jnp.pad(y_ld, ((0, M4_pad - M4), (0, 0)))
        x_res = jnp.pad(x_ld, ((0, M4_pad - M4), (0, 0)))
    else:
        x_res = x_ld

    pass2 = pl.pallas_call(
        functools.partial(_mixer_kernel, tm=TM, m_valid=M4, needs_mask=needs_mask),
        out_shape=(jax.ShapeDtypeStruct((M4_pad, 128), f32),
                   jax.ShapeDtypeStruct((G2, 2, 128), f32)),
        grid=(G2,),
        in_specs=[pl.BlockSpec((TM, 128), lambda j: (j, 0)),      # y  (bf16)
                  pl.BlockSpec((TM, 128), lambda j: (j, 0)),      # residual x (f32)
                  pl.BlockSpec((1, 128), lambda j: (0, 0)),
                  pl.BlockSpec((1, 128), lambda j: (0, 0)),
                  pl.BlockSpec((128, 128), lambda j: (0, 0)),
                  pl.BlockSpec((1, 128), lambda j: (0, 0))],
        out_specs=(pl.BlockSpec((TM, 128), lambda j: (j, 0)),
                   pl.BlockSpec((1, 2, 128), lambda j: (j, 0, 0))),
        compiler_params=pltpu.CompilerParams(dimension_semantics=("parallel",)),
        cost_estimate=pl.CostEstimate(
            flops=2 * M4_pad * 128 * 128 + 40 * M * C,
            transcendentals=2 * M * C,
            bytes_accessed=2 * M * C + 4 * M * C + 4 * M * C),
    )
    # NOTE: matmul kept in f32 for accuracy margin; bf16 MXU operands are a
    # further (non-binding-slot) option on v6e/v7x.
    z, st2 = pass2(y_ld, x_res, scale1_l, shift1_l, w_pw_bd, b_pw_l)

    s2c = jnp.sum(st2[:, 0, :], axis=0).reshape(R, C).sum(axis=0)
    q2c = jnp.sum(st2[:, 1, :], axis=0).reshape(R, C).sum(axis=0)
    scale2, shift2 = _bn_scale_shift(s2c, q2c, g2, bt2)
    scale2_l = jnp.tile(scale2, R).reshape(1, 128)
    shift2_l = jnp.tile(shift2, R).reshape(1, 128)

    # ---- BN2 apply fused (by XLA) into the final reshape/transpose back to NCDHW ----
    out_ld = z[:M4] * scale2_l + shift2_l
    out = out_ld.reshape(N, D, H, W, C)
    return jnp.transpose(out, (0, 4, 1, 2, 3))


def init_params(keys, C=32):
    w_dw = 0.25 * jax.random.normal(keys[0], (3, 3, 3, C), jnp.float32)   # depthwise taps
    b_dw = 0.10 * jax.random.normal(keys[1], (1, C), jnp.float32)
    g1 = 1.0 + 0.20 * jax.random.normal(keys[2], (1, C), jnp.float32)
    bt1 = 0.30 * jax.random.normal(keys[3], (1, C), jnp.float32)
    w_pw = jax.random.normal(keys[4], (C, C), jnp.float32) / np.sqrt(C)   # [in, out]
    b_pw = 0.10 * jax.random.normal(keys[5], (1, C), jnp.float32)
    g2 = 1.0 + 0.20 * jax.random.normal(keys[6], (1, C), jnp.float32)
    bt2 = 0.30 * jax.random.normal(keys[7], (1, C), jnp.float32)
    return (w_dw, b_dw, g1, bt1, w_pw, b_pw, g2, bt2)


def reference_forward(x, params):
    """Pure-JAX/XLA reference in NCDHW (mirrors the PyTorch module)."""
    w_dw, b_dw, g1, bt1, w_pw, b_pw, g2, bt2 = params
    C = x.shape[1]

    def bn(v, gamma, beta):
        mean = jnp.mean(v, axis=(0, 2, 3, 4), keepdims=True)
        var = jnp.mean((v - mean) ** 2, axis=(0, 2, 3, 4), keepdims=True)
        return ((v - mean) / jnp.sqrt(var + _BN_EPS) * gamma.reshape(1, C, 1, 1, 1)
                + beta.reshape(1, C, 1, 1, 1))

    wd = jnp.transpose(w_dw, (3, 0, 1, 2))[:, None]        # (C, 1, 3, 3, 3)
    y = jax.lax.conv_general_dilated(
        x, wd, (1, 1, 1), ((1, 1), (1, 1), (1, 1)),
        dimension_numbers=("NCDHW", "OIDHW", "NCDHW"),
        feature_group_count=C, precision=jax.lax.Precision.HIGHEST)
    y = y + b_dw.reshape(1, C, 1, 1, 1)
    y = jax.nn.gelu(y, approximate=False)
    y = bn(y, g1, bt1)
    y = y + x

    wp = jnp.transpose(w_pw)[:, :, None, None, None]       # (Cout, Cin, 1, 1, 1)
    z = jax.lax.conv_general_dilated(
        y, wp, (1, 1, 1), ((0, 0), (0, 0), (0, 0)),
        dimension_numbers=("NCDHW", "OIDHW", "NCDHW"),
        precision=jax.lax.Precision.HIGHEST)
    z = z + b_pw.reshape(1, C, 1, 1, 1)
    z = jax.nn.gelu(z, approximate=False)
    z = bn(z, g2, bt2)
    return z


if __name__ == "__main__":
    key = jax.random.PRNGKey(0)
    ks = jax.random.split(key, 9)
    C = 32                                   # fixed by the module (in/out channels = 32)
    params = init_params(ks[:8], C)
    x = jax.random.normal(ks[8], (2, C, 4, 8, 8), jnp.float32)   # NCDHW

    out = jax.block_until_ready(convmixer_forward(x, params))
    ref = jax.block_until_ready(reference_forward(x, params))

    assert out.shape == x.shape and out.dtype == jnp.float32
    np.testing.assert_allclose(np.asarray(out), np.asarray(ref), atol=2e-2, rtol=2e-2)
    print("KERNEL_OK")
</pallas_src>

<mosaic_0001>
module attributes {stable_mosaic.version = 11 : i64} {
  func.func @_dwconv_gelu_kernel(%arg0: i32, %arg1: memref<1x4x10x320xf32, #tpu.memory_space<vmem>>, %arg2: memref<27x320xf32, #tpu.memory_space<vmem>>, %arg3: memref<1x256xf32, #tpu.memory_space<vmem>>, %arg4: memref<1x4x8x256xbf16, #tpu.memory_space<vmem>>, %arg5: memref<1x2x256xf32, #tpu.memory_space<vmem>>) attributes {dimension_semantics = [#tpu.dimension_semantics<parallel>], iteration_bounds = array<i64: 2>, scalar_prefetch = 0 : i64, scratch_operands = 0 : i64, tpu.core_type = #tpu.core_type<tc>, window_params = [{transform_indices = @transform_0, window_bounds = array<i64: 1, 4, 10, 320>}, {pipeline_mode = #tpu.pipeline_mode<synchronous>, transform_indices = @transform_1, window_bounds = array<i64: 27, 320>}, {pipeline_mode = #tpu.pipeline_mode<synchronous>, transform_indices = @transform_2, window_bounds = array<i64: 1, 256>}, {transform_indices = @transform_3, window_bounds = array<i64: 1, 4, 8, 256>}, {transform_indices = @transform_4, window_bounds = array<i64: 1, 2, 256>}]} {
    %c0 = arith.constant 0 : index
    %c0_0 = arith.constant 0 : index
    %0 = vector.load %arg3[%c0, %c0_0] : memref<1x256xf32, #tpu.memory_space<vmem>>, vector<1x256xf32>
    %cst = arith.constant 0.000000e+00 : f32
    %1 = vector.broadcast %cst : f32 to vector<1x256xf32>
    %cst_1 = arith.constant 0.000000e+00 : f32
    %2 = vector.broadcast %cst_1 : f32 to vector<1x256xf32>
    %cst_2 = arith.constant 0.000000e+00 : f32
    %3 = vector.broadcast %cst_2 : f32 to vector<8x320xf32>
    %cst_3 = arith.constant 0.000000e+00 : f32
    %4 = vector.broadcast %cst_3 : f32 to vector<8x320xf32>
    %cst_4 = arith.constant 0.000000e+00 : f32
    %5 = vector.broadcast %cst_4 : f32 to vector<8x320xf32>
    %c0_5 = arith.constant 0 : index
    %c0_6 = arith.constant 0 : index
    %c0_7 = arith.constant 0 : index
    %c0_8 = arith.constant 0 : index
    %6 = vector.load %arg1[%c0_5, %c0_6, %c0_7, %c0_8] : memref<1x4x10x320xf32, #tpu.memory_space<vmem>>, vector<1x1x10x320xf32>
    %7 = vector.shape_cast %6 : vector<1x1x10x320xf32> to vector<10x320xf32>
    %8 = vector.extract_strided_slice %7 {offsets = [0, 0], sizes = [8, 320], strides = [1, 1]} : vector<10x320xf32> to vector<8x320xf32>
    %c9 = arith.constant 9 : index
    %c0_9 = arith.constant 0 : index
    %9 = vector.load %arg2[%c9, %c0_9] : memref<27x320xf32, #tpu.memory_space<vmem>>, vector<1x320xf32>
    %10 = vector.broadcast %9 : vector<1x320xf32> to vector<8x320xf32>
    %11 = arith.mulf %8, %10 : vector<8x320xf32>
    %12 = arith.addf %3, %11 : vector<8x320xf32>
    %c10 = arith.constant 10 : index
    %c0_10 = arith.constant 0 : index
    %13 = vector.load %arg2[%c10, %c0_10] : memref<27x320xf32, #tpu.memory_space<vmem>>, vector<1x320xf32>
    %14 = vector.broadcast %13 : vector<1x320xf32> to vector<8x320xf32>
    %15 = arith.mulf %8, %14 : vector<8x320xf32>
    %16 = arith.addf %4, %15 : vector<8x320xf32>
    %c11 = arith.constant 11 : index
    %c0_11 = arith.constant 0 : index
    %17 = vector.load %arg2[%c11, %c0_11] : memref<27x320xf32, #tpu.memory_space<vmem>>, vector<1x320xf32>
    %18 = vector.broadcast %17 : vector<1x320xf32> to vector<8x320xf32>
    %19 = arith.mulf %8, %18 : vector<8x320xf32>
    %20 = arith.addf %5, %19 : vector<8x320xf32>
    %21 = vector.extract_strided_slice %7 {offsets = [1, 0], sizes = [8, 320], strides = [1, 1]} : vector<10x320xf32> to vector<8x320xf32>
    %c12 = arith.constant 12 : index
    %c0_12 = arith.constant 0 : index
    %22 = vector.load %arg2[%c12, %c0_12] : memref<27x320xf32, #tpu.memory_space<vmem>>, vector<1x320xf32>
    %23 = vector.broadcast %22 : vector<1x320xf32> to vector<8x320xf32>
    %24 = arith.mulf %21, %23 : vector<8x320xf32>
    %25 = arith.addf %12, %24 : vector<8x320xf32>
    %c13 = arith.constant 13 : index
    %c0_13 = arith.constant 0 : index
    %26 = vector.load %arg2[%c13, %c0_13] : memref<27x320xf32, #tpu.memory_space<vmem>>, vector<1x320xf32>
    %27 = vector.broadcast %26 : vector<1x320xf32> to vector<8x320xf32>
    %28 = arith.mulf %21, %27 : vector<8x320xf32>
    %29 = arith.addf %16, %28 : vector<8x320xf32>
    %c14 = arith.constant 14 : index
    %c0_14 = arith.constant 0 : index
    %30 = vector.load %arg2[%c14, %c0_14] : memref<27x320xf32, #tpu.memory_space<vmem>>, vector<1x320xf32>
    %31 = vector.broadcast %30 : vector<1x320xf32> to vector<8x320xf32>
    %32 = arith.mulf %21, %31 : vector<8x320xf32>
    %33 = arith.addf %20, %32 : vector<8x320xf32>
    %34 = vector.extract_strided_slice %7 {offsets = [2, 0], sizes = [8, 320], strides = [1, 1]} : vector<10x320xf32> to vector<8x320xf32>
    %c15 = arith.constant 15 : index
    %c0_15 = arith.constant 0 : index
    %35 = vector.load %arg2[%c15, %c0_15] : memref<27x320xf32, #tpu.memory_space<vmem>>, vector<1x320xf32>
    %36 = vector.broadcast %35 : vector<1x320xf32> to vector<8x320xf32>
    %37 = arith.mulf %34, %36 : vector<8x320xf32>
    %38 = arith.addf %25, %37 : vector<8x320xf32>
    %c16 = arith.constant 16 : index
    %c0_16 = arith.constant 0 : index
    %39 = vector.load %arg2[%c16, %c0_16] : memref<27x320xf32, #tpu.memory_space<vmem>>, vector<1x320xf32>
    %40 = vector.broadcast %39 : vector<1x320xf32> to vector<8x320xf32>
    %41 = arith.mulf %34, %40 : vector<8x320xf32>
    %42 = arith.addf %29, %41 : vector<8x320xf32>
    %c17 = arith.constant 17 : index
    %c0_17 = arith.constant 0 : index
    %43 = vector.load %arg2[%c17, %c0_17] : memref<27x320xf32, #tpu.memory_space<vmem>>, vector<1x320xf32>
    %44 = vector.broadcast %43 : vector<1x320xf32> to vector<8x320xf32>
    %45 = arith.mulf %34, %44 : vector<8x320xf32>
    %46 = arith.addf %33, %45 : vector<8x320xf32>
    %c0_18 = arith.constant 0 : index
    %c1 = arith.constant 1 : index
    %c0_19 = arith.constant 0 : index
    %c0_20 = arith.constant 0 : index
    %47 = vector.load %arg1[%c0_18, %c1, %c0_19, %c0_20] : memref<1x4x10x320xf32, #tpu.memory_space<vmem>>, vector<1x1x10x320xf32>
    %48 = vector.shape_cast %47 : vector<1x1x10x320xf32> to vector<10x320xf32>
    %49 = vector.extract_strided_slice %48 {offsets = [0, 0], sizes = [8, 320], strides = [1, 1]} : vector<10x320xf32> to vector<8x320xf32>
    %c18 = arith.constant 18 : index
    %c0_21 = arith.constant 0 : index
    %50 = vector.load %arg2[%c18, %c0_21] : memref<27x320xf32, #tpu.memory_space<vmem>>, vector<1x320xf32>
    %51 = vector.broadcast %50 : vector<1x320xf32> to vector<8x320xf32>
    %52 = arith.mulf %49, %51 : vector<8x320xf32>
    %53 = arith.addf %38, %52 : vector<8x320xf32>
    %c19 = arith.constant 19 : index
    %c0_22 = arith.constant 0 : index
    %54 = vector.load %arg2[%c19, %c0_22] : memref<27x320xf32, #tpu.memory_space<vmem>>, vector<1x320xf32>
    %55 = vector.broadcast %54 : vector<1x320xf32> to vector<8x320xf32>
    %56 = arith.mulf %49, %55 : vector<8x320xf32>
    %57 = arith.addf %42, %56 : vector<8x320xf32>
    %c20 = arith.constant 20 : index
    %c0_23 = arith.constant 0 : index
    %58 = vector.load %arg2[%c20, %c0_23] : memref<27x320xf32, #tpu.memory_space<vmem>>, vector<1x320xf32>
    %59 = vector.broadcast %58 : vector<1x320xf32> to vector<8x320xf32>
    %60 = arith.mulf %49, %59 : vector<8x320xf32>
    %61 = arith.addf %46, %60 : vector<8x320xf32>
    %62 = vector.extract_strided_slice %48 {offsets = [1, 0], sizes = [8, 320], strides = [1, 1]} : vector<10x320xf32> to vector<8x320xf32>
    %c21 = arith.constant 21 : index
    %c0_24 = arith.constant 0 : index
    %63 = vector.load %arg2[%c21, %c0_24] : memref<27x320xf32, #tpu.memory_space<vmem>>, vector<1x320xf32>
    %64 = vector.broadcast %63 : vector<1x320xf32> to vector<8x320xf32>
    %65 = arith.mulf %62, %64 : vector<8x320xf32>
    %66 = arith.addf %53, %65 : vector<8x320xf32>
    %c22 = arith.constant 22 : index
    %c0_25 = arith.constant 0 : index
    %67 = vector.load %arg2[%c22, %c0_25] : memref<27x320xf32, #tpu.memory_space<vmem>>, vector<1x320xf32>
    %68 = vector.broadcast %67 : vector<1x320xf32> to vector<8x320xf32>
    %69 = arith.mulf %62, %68 : vector<8x320xf32>
    %70 = arith.addf %57, %69 : vector<8x320xf32>
    %c23 = arith.constant 23 : index
    %c0_26 = arith.constant 0 : index
    %71 = vector.load %arg2[%c23, %c0_26] : memref<27x320xf32, #tpu.memory_space<vmem>>, vector<1x320xf32>
    %72 = vector.broadcast %71 : vector<1x320xf32> to vector<8x320xf32>
    %73 = arith.mulf %62, %72 : vector<8x320xf32>
    %74 = arith.addf %61, %73 : vector<8x320xf32>
    %75 = vector.extract_strided_slice %48 {offsets = [2, 0], sizes = [8, 320], strides = [1, 1]} : vector<10x320xf32> to vector<8x320xf32>
    %c24 = arith.constant 24 : index
    %c0_27 = arith.constant 0 : index
    %76 = vector.load %arg2[%c24, %c0_27] : memref<27x320xf32, #tpu.memory_space<vmem>>, vector<1x320xf32>
    %77 = vector.broadcast %76 : vector<1x320xf32> to vector<8x320xf32>
    %78 = arith.mulf %75, %77 : vector<8x320xf32>
    %79 = arith.addf %66, %78 : vector<8x320xf32>
    %c25 = arith.constant 25 : index
    %c0_28 = arith.constant 0 : index
    %80 = vector.load %arg2[%c25, %c0_28] : memref<27x320xf32, #tpu.memory_space<vmem>>, vector<1x320xf32>
    %81 = vector.broadcast %80 : vector<1x320xf32> to vector<8x320xf32>
    %82 = arith.mulf %75, %81 : vector<8x320xf32>
    %83 = arith.addf %70, %82 : vector<8x320xf32>
    %c26 = arith.constant 26 : index
    %c0_29 = arith.constant 0 : index
    %84 = vector.load %arg2[%c26, %c0_29] : memref<27x320xf32, #tpu.memory_space<vmem>>, vector<1x320xf32>
    %85 = vector.broadcast %84 : vector<1x320xf32> to vector<8x320xf32>
    %86 = arith.mulf %75, %85 : vector<8x320xf32>
    %87 = arith.addf %74, %86 : vector<8x320xf32>
    %88 = vector.extract_strided_slice %79 {offsets = [0, 0], sizes = [8, 256], strides = [1, 1]} : vector<8x320xf32> to vector<8x256xf32>
    %89 = vector.extract_strided_slice %83 {offsets = [0, 32], sizes = [8, 256], strides = [1, 1]} : vector<8x320xf32> to vector<8x256xf32>
    %90 = arith.addf %88, %89 : vector<8x256xf32>
    %91 = vector.extract_strided_slice %87 {offsets = [0, 64], sizes = [8, 256], strides = [1, 1]} : vector<8x320xf32> to vector<8x256xf32>
    %92 = arith.addf %90, %91 : vector<8x256xf32>
    %93 = vector.broadcast %0 : vector<1x256xf32> to vector<8x256xf32>
    %94 = arith.addf %92, %93 : vector<8x256xf32>
    %cst_30 = arith.constant 5.000000e-01 : f32
    %95 = vector.broadcast %cst_30 : f32 to vector<8x256xf32>
    %96 = arith.mulf %95, %94 : vector<8x256xf32>
    %cst_31 = arith.constant 0.707106769 : f32
    %97 = vector.broadcast %cst_31 : f32 to vector<8x256xf32>
    %98 = arith.mulf %94, %97 : vector<8x256xf32>
    %99 = math.absf %98 : vector<8x256xf32>
    %cst_32 = arith.constant 0.327591091 : f32
    %100 = vector.broadcast %cst_32 : f32 to vector<8x256xf32>
    %101 = arith.mulf %100, %99 : vector<8x256xf32>
    %cst_33 = arith.constant 1.000000e+00 : f32
    %102 = vector.broadcast %cst_33 : f32 to vector<8x256xf32>
    %103 = arith.addf %102, %101 : vector<8x256xf32>
    %104 = tpu.reciprocal %103 {approx = true} : vector<8x256xf32> -> vector<8x256xf32>
    %cst_34 = arith.constant 1.06140542 : f32
    %105 = vector.broadcast %cst_34 : f32 to vector<8x256xf32>
    %106 = arith.mulf %105, %104 : vector<8x256xf32>
    %cst_35 = arith.constant -1.45315206 : f32
    %107 = vector.broadcast %cst_35 : f32 to vector<8x256xf32>
    %108 = arith.addf %106, %107 : vector<8x256xf32>
    %109 = arith.mulf %108, %104 : vector<8x256xf32>
    %cst_36 = arith.constant 1.42141378 : f32
    %110 = vector.broadcast %cst_36 : f32 to vector<8x256xf32>
    %111 = arith.addf %109, %110 : vector<8x256xf32>
    %112 = arith.mulf %111, %104 : vector<8x256xf32>
    %cst_37 = arith.constant -0.284496725 : f32
    %113 = vector.broadcast %cst_37 : f32 to vector<8x256xf32>
    %114 = arith.addf %112, %113 : vector<8x256xf32>
    %115 = arith.mulf %114, %104 : vector<8x256xf32>
    %cst_38 = arith.constant 0.254829586 : f32
    %116 = vector.broadcast %cst_38 : f32 to vector<8x256xf32>
    %117 = arith.addf %115, %116 : vector<8x256xf32>
    %118 = arith.mulf %117, %104 : vector<8x256xf32>
    %cst_39 = arith.constant 0.000000e+00 : f32
    %119 = vector.broadcast %cst_39 : f32 to vector<8x256xf32>
    %120 = arith.subf %119, %99 : vector<8x256xf32>
    %121 = arith.mulf %120, %99 : vector<8x256xf32>
    %122 = math.exp %121 : vector<8x256xf32>
    %123 = arith.mulf %118, %122 : vector<8x256xf32>
    %cst_40 = arith.constant 1.000000e+00 : f32
    %124 = vector.broadcast %cst_40 : f32 to vector<8x256xf32>
    %125 = arith.subf %124, %123 : vector<8x256xf32>
    %cst_41 = arith.constant 0.000000e+00 : f32
    %126 = vector.broadcast %cst_41 : f32 to vector<8x256xf32>
    %127 = arith.cmpf oge, %98, %126 : vector<8x256xf32>
    %cst_42 = arith.constant 0.000000e+00 : f32
    %128 = vector.broadcast %cst_42 : f32 to vector<8x256xf32>
    %129 = arith.subf %128, %125 : vector<8x256xf32>
    %130 = arith.select %127, %125, %129 : vector<8x256xi1>, vector<8x256xf32>
    %cst_43 = arith.constant 1.000000e+00 : f32
    %131 = vector.broadcast %cst_43 : f32 to vector<8x256xf32>
    %132 = arith.addf %131, %130 : vector<8x256xf32>
    %133 = arith.mulf %96, %132 : vector<8x256xf32>
    %134 = arith.truncf %133 : vector<8x256xf32> to vector<8x256xbf16>
    %c0_44 = arith.constant 0 : index
    %c0_45 = arith.constant 0 : index
    %c0_46 = arith.constant 0 : index
    %c0_47 = arith.constant 0 : index
    %135 = vector.load %arg4[%c0_44, %c0_45, %c0_46, %c0_47] : memref<1x4x8x256xbf16, #tpu.memory_space<vmem>>, vector<1x1x8x256xbf16>
    %136 = vector.shape_cast %135 : vector<1x1x8x256xbf16> to vector<8x256xbf16>
    %137 = vector.shape_cast %134 : vector<8x256xbf16> to vector<1x1x8x256xbf16>
    tpu.vector_store %arg4[%c0_44, %c0_45, %c0_46, %c0_47], %137 {strides = array<i32>} : memref<1x4x8x256xbf16, #tpu.memory_space<vmem>>, vector<1x1x8x256xbf16>,
    %cst_48 = arith.constant dense<0.000000e+00> : vector<256xf32>
    %138 = vector.multi_reduction <add>, %133, %cst_48 [0] : vector<8x256xf32> to vector<256xf32>
    %139 = vector.shape_cast %138 : vector<256xf32> to vector<1x256xf32>
    %140 = arith.addf %1, %139 : vector<1x256xf32>
    %141 = arith.mulf %133, %133 : vector<8x256xf32>
    %cst_49 = arith.constant dense<0.000000e+00> : vector<256xf32>
    %142 = vector.multi_reduction <add>, %141, %cst_49 [0] : vector<8x256xf32> to vector<256xf32>
    %143 = vector.shape_cast %142 : vector<256xf32> to vector<1x256xf32>
    %144 = arith.addf %2, %143 : vector<1x256xf32>
    %cst_50 = arith.constant 0.000000e+00 : f32
    %145 = vector.broadcast %cst_50 : f32 to vector<8x320xf32>
    %cst_51 = arith.constant 0.000000e+00 : f32
    %146 = vector.broadcast %cst_51 : f32 to vector<8x320xf32>
    %cst_52 = arith.constant 0.000000e+00 : f32
    %147 = vector.broadcast %cst_52 : f32 to vector<8x320xf32>
    %c0_53 = arith.constant 0 : index
    %c0_54 = arith.constant 0 : index
    %c0_55 = arith.constant 0 : index
    %c0_56 = arith.constant 0 : index
    %148 = vector.load %arg1[%c0_53, %c0_54, %c0_55, %c0_56] : memref<1x4x10x320xf32, #tpu.memory_space<vmem>>, vector<1x1x10x320xf32>
    %149 = vector.shape_cast %148 : vector<1x1x10x320xf32> to vector<10x320xf32>
    %150 = vector.extract_strided_slice %149 {offsets = [0, 0], sizes = [8, 320], strides = [1, 1]} : vector<10x320xf32> to vector<8x320xf32>
    %c0_57 = arith.constant 0 : index
    %c0_58 = arith.constant 0 : index
    %151 = vector.load %arg2[%c0_57, %c0_58] : memref<27x320xf32, #tpu.memory_space<vmem>>, vector<1x320xf32>
    %152 = vector.broadcast %151 : vector<1x320xf32> to vector<8x320xf32>
    %153 = arith.mulf %150, %152 : vector<8x320xf32>
    %154 = arith.addf %145, %153 : vector<8x320xf32>
    %c1_59 = arith.constant 1 : index
    %c0_60 = arith.constant 0 : index
    %155 = vector.load %arg2[%c1_59, %c0_60] : memref<27x320xf32, #tpu.memory_space<vmem>>, vector<1x320xf32>
    %156 = vector.broadcast %155 : vector<1x320xf32> to vector<8x320xf32>
    %157 = arith.mulf %150, %156 : vector<8x320xf32>
    %158 = arith.addf %146, %157 : vector<8x320xf32>
    %c2 = arith.constant 2 : index
    %c0_61 = arith.constant 0 : index
    %159 = vector.load %arg2[%c2, %c0_61] : memref<27x320xf32, #tpu.memory_space<vmem>>, vector<1x320xf32>
    %160 = vector.broadcast %159 : vector<1x320xf32> to vector<8x320xf32>
    %161 = arith.mulf %150, %160 : vector<8x320xf32>
    %162 = arith.addf %147, %161 : vector<8x320xf32>
    %163 = vector.extract_strided_slice %149 {offsets = [1, 0], sizes = [8, 320], strides = [1, 1]} : vector<10x320xf32> to vector<8x320xf32>
    %c3 = arith.constant 3 : index
    %c0_62 = arith.constant 0 : index
    %164 = vector.load %arg2[%c3, %c0_62] : memref<27x320xf32, #tpu.memory_space<vmem>>, vector<1x320xf32>
    %165 = vector.broadcast %164 : vector<1x320xf32> to vector<8x320xf32>
    %166 = arith.mulf %163, %165 : vector<8x320xf32>
    %167 = arith.addf %154, %166 : vector<8x320xf32>
    %c4 = arith.constant 4 : index
    %c0_63 = arith.constant 0 : index
    %168 = vector.load %arg2[%c4, %c0_63] : memref<27x320xf32, #tpu.memory_space<vmem>>, vector<1x320xf32>
    %169 = vector.broadcast %168 : vector<1x320xf32> to vector<8x320xf32>
    %170 = arith.mulf %163, %169 : vector<8x320xf32>
    %171 = arith.addf %158, %170 : vector<8x320xf32>
    %c5 = arith.constant 5 : index
    %c0_64 = arith.constant 0 : index
    %172 = vector.load %arg2[%c5, %c0_64] : memref<27x320xf32, #tpu.memory_space<vmem>>, vector<1x320xf32>
    %173 = vector.broadcast %172 : vector<1x320xf32> to vector<8x320xf32>
    %174 = arith.mulf %163, %173 : vector<8x320xf32>
    %175 = arith.addf %162, %174 : vector<8x320xf32>
    %176 = vector.extract_strided_slice %149 {offsets = [2, 0], sizes = [8, 320], strides = [1, 1]} : vector<10x320xf32> to vector<8x320xf32>
    %c6 = arith.constant 6 : index
    %c0_65 = arith.constant 0 : index
    %177 = vector.load %arg2[%c6, %c0_65] : memref<27x320xf32, #tpu.memory_space<vmem>>, vector<1x320xf32>
    %178 = vector.broadcast %177 : vector<1x320xf32> to vector<8x320xf32>
    %179 = arith.mulf %176, %178 : vector<8x320xf32>
    %180 = arith.addf %167, %179 : vector<8x320xf32>
    %c7 = arith.constant 7 : index
    %c0_66 = arith.constant 0 : index
    %181 = vector.load %arg2[%c7, %c0_66] : memref<27x320xf32, #tpu.memory_space<vmem>>, vector<1x320xf32>
    %182 = vector.broadcast %181 : vector<1x320xf32> to vector<8x320xf32>
    %183 = arith.mulf %176, %182 : vector<8x320xf32>
    %184 = arith.addf %171, %183 : vector<8x320xf32>
    %c8 = arith.constant 8 : index
    %c0_67 = arith.constant 0 : index
    %185 = vector.load %arg2[%c8, %c0_67] : memref<27x320xf32, #tpu.memory_space<vmem>>, vector<1x320xf32>
    %186 = vector.broadcast %185 : vector<1x320xf32> to vector<8x320xf32>
    %187 = arith.mulf %176, %186 : vector<8x320xf32>
    %188 = arith.addf %175, %187 : vector<8x320xf32>
    %c0_68 = arith.constant 0 : index
    %c1_69 = arith.constant 1 : index
    %c0_70 = arith.constant 0 : index
    %c0_71 = arith.constant 0 : index
    %189 = vector.load %arg1[%c0_68, %c1_69, %c0_70, %c0_71] : memref<1x4x10x320xf32, #tpu.memory_space<vmem>>, vector<1x1x10x320xf32>
    %190 = vector.shape_cast %189 : vector<1x1x10x320xf32> to vector<10x320xf32>
    %191 = vector.extract_strided_slice %190 {offsets = [0, 0], sizes = [8, 320], strides = [1, 1]} : vector<10x320xf32> to vector<8x320xf32>
    %c9_72 = arith.constant 9 : index
    %c0_73 = arith.constant 0 : index
    %192 = vector.load %arg2[%c9_72, %c0_73] : memref<27x320xf32, #tpu.memory_space<vmem>>, vector<1x320xf32>
    %193 = vector.broadcast %192 : vector<1x320xf32> to vector<8x320xf32>
    %194 = arith.mulf %191, %193 : vector<8x320xf32>
    %195 = arith.addf %180, %194 : vector<8x320xf32>
    %c10_74 = arith.constant 10 : index
    %c0_75 = arith.constant 0 : index
    %196 = vector.load %arg2[%c10_74, %c0_75] : memref<27x320xf32, #tpu.memory_space<vmem>>, vector<1x320xf32>
    %197 = vector.broadcast %196 : vector<1x320xf32> to vector<8x320xf32>
    %198 = arith.mulf %191, %197 : vector<8x320xf32>
    %199 = arith.addf %184, %198 : vector<8x320xf32>
    %c11_76 = arith.constant 11 : index
    %c0_77 = arith.constant 0 : index
    %200 = vector.load %arg2[%c11_76, %c0_77] : memref<27x320xf32, #tpu.memory_space<vmem>>, vector<1x320xf32>
    %201 = vector.broadcast %200 : vector<1x320xf32> to vector<8x320xf32>
    %202 = arith.mulf %191, %201 : vector<8x320xf32>
    %203 = arith.addf %188, %202 : vector<8x320xf32>
    %204 = vector.extract_strided_slice %190 {offsets = [1, 0], sizes = [8, 320], strides = [1, 1]} : vector<10x320xf32> to vector<8x320xf32>
    %c12_78 = arith.constant 12 : index
    %c0_79 = arith.constant 0 : index
    %205 = vector.load %arg2[%c12_78, %c0_79] : memref<27x320xf32, #tpu.memory_space<vmem>>, vector<1x320xf32>
    %206 = vector.broadcast %205 : vector<1x320xf32> to vector<8x320xf32>
    %207 = arith.mulf %204, %206 : vector<8x320xf32>
    %208 = arith.addf %195, %207 : vector<8x320xf32>
    %c13_80 = arith.constant 13 : index
    %c0_81 = arith.constant 0 : index
    %209 = vector.load %arg2[%c13_80, %c0_81] : memref<27x320xf32, #tpu.memory_space<vmem>>, vector<1x320xf32>
    %210 = vector.broadcast %209 : vector<1x320xf32> to vector<8x320xf32>
    %211 = arith.mulf %204, %210 : vector<8x320xf32>
    %212 = arith.addf %199, %211 : vector<8x320xf32>
    %c14_82 = arith.constant 14 : index
    %c0_83 = arith.constant 0 : index
    %213 = vector.load %arg2[%c14_82, %c0_83] : memref<27x320xf32, #tpu.memory_space<vmem>>, vector<1x320xf32>
    %214 = vector.broadcast %213 : vector<1x320xf32> to vector<8x320xf32>
    %215 = arith.mulf %204, %214 : vector<8x320xf32>
    %216 = arith.addf %203, %215 : vector<8x320xf32>
    %217 = vector.extract_strided_slice %190 {offsets = [2, 0], sizes = [8, 320], strides = [1, 1]} : vector<10x320xf32> to vector<8x320xf32>
    %c15_84 = arith.constant 15 : index
    %c0_85 = arith.constant 0 : index
    %218 = vector.load %arg2[%c15_84, %c0_85] : memref<27x320xf32, #tpu.memory_space<vmem>>, vector<1x320xf32>
    %219 = vector.broadcast %218 : vector<1x320xf32> to vector<8x320xf32>
    %220 = arith.mulf %217, %219 : vector<8x320xf32>
    %221 = arith.addf %208, %220 : vector<8x320xf32>
    %c16_86 = arith.constant 16 : index
    %c0_87 = arith.constant 0 : index
    %222 = vector.load %arg2[%c16_86, %c0_87] : memref<27x320xf32, #tpu.memory_space<vmem>>, vector<1x320xf32>
    %223 = vector.broadcast %222 : vector<1x320xf32> to vector<8x320xf32>
    %224 = arith.mulf %217, %223 : vector<8x320xf32>
    %225 = arith.addf %212, %224 : vector<8x320xf32>
    %c17_88 = arith.constant 17 : index
    %c0_89 = arith.constant 0 : index
    %226 = vector.load %arg2[%c17_88, %c0_89] : memref<27x320xf32, #tpu.memory_space<vmem>>, vector<1x320xf32>
    %227 = vector.broadcast %226 : vector<1x320xf32> to vector<8x320xf32>
    %228 = arith.mulf %217, %227 : vector<8x320xf32>
    %229 = arith.addf %216, %228 : vector<8x320xf32>
    %c0_90 = arith.constant 0 : index
    %c2_91 = arith.constant 2 : index
    %c0_92 = arith.constant 0 : index
    %c0_93 = arith.constant 0 : index
    %230 = vector.load %arg1[%c0_90, %c2_91, %c0_92, %c0_93] : memref<1x4x10x320xf32, #tpu.memory_space<vmem>>, vector<1x1x10x320xf32>
    %231 = vector.shape_cast %230 : vector<1x1x10x320xf32> to vector<10x320xf32>
    %232 = vector.extract_strided_slice %231 {offsets = [0, 0], sizes = [8, 320], strides = [1, 1]} : vector<10x320xf32> to vector<8x320xf32>
    %c18_94 = arith.constant 18 : index
    %c0_95 = arith.constant 0 : index
    %233 = vector.load %arg2[%c18_94, %c0_95] : memref<27x320xf32, #tpu.memory_space<vmem>>, vector<1x320xf32>
    %234 = vector.broadcast %233 : vector<1x320xf32> to vector<8x320xf32>
    %235 = arith.mulf %232, %234 : vector<8x320xf32>
    %236 = arith.addf %221, %235 : vector<8x320xf32>
    %c19_96 = arith.constant 19 : index
    %c0_97 = arith.constant 0 : index
    %237 = vector.load %arg2[%c19_96, %c0_97] : memref<27x320xf32, #tpu.memory_space<vmem>>, vector<1x320xf32>
    %238 = vector.broadcast %237 : vector<1x320xf32> to vector<8x320xf32>
    %239 = arith.mulf %232, %238 : vector<8x320xf32>
    %240 = arith.addf %225, %239 : vector<8x320xf32>
    %c20_98 = arith.constant 20 : index
    %c0_99 = arith.constant 0 : index
    %241 = vector.load %arg2[%c20_98, %c0_99] : memref<27x320xf32, #tpu.memory_space<vmem>>, vector<1x320xf32>
    %242 = vector.broadcast %241 : vector<1x320xf32> to vector<8x320xf32>
    %243 = arith.mulf %232, %242 : vector<8x320xf32>
    %244 = arith.addf %229, %243 : vector<8x320xf32>
    %245 = vector.extract_strided_slice %231 {offsets = [1, 0], sizes = [8, 320], strides = [1, 1]} : vector<10x320xf32> to vector<8x320xf32>
    %c21_100 = arith.constant 21 : index
    %c0_101 = arith.constant 0 : index
    %246 = vector.load %arg2[%c21_100, %c0_101] : memref<27x320xf32, #tpu.memory_space<vmem>>, vector<1x320xf32>
    %247 = vector.broadcast %246 : vector<1x320xf32> to vector<8x320xf32>
    %248 = arith.mulf %245, %247 : vector<8x320xf32>
    %249 = arith.addf %236, %248 : vector<8x320xf32>
    %c22_102 = arith.constant 22 : index
    %c0_103 = arith.constant 0 : index
    %250 = vector.load %arg2[%c22_102, %c0_103] : memref<27x320xf32, #tpu.memory_space<vmem>>, vector<1x320xf32>
    %251 = vector.broadcast %250 : vector<1x320xf32> to vector<8x320xf32>
    %252 = arith.mulf %245, %251 : vector<8x320xf32>
    %253 = arith.addf %240, %252 : vector<8x320xf32>
    %c23_104 = arith.constant 23 : index
    %c0_105 = arith.constant 0 : index
    %254 = vector.load %arg2[%c23_104, %c0_105] : memref<27x320xf32, #tpu.memory_space<vmem>>, vector<1x320xf32>
    %255 = vector.broadcast %254 : vector<1x320xf32> to vector<8x320xf32>
    %256 = arith.mulf %245, %255 : vector<8x320xf32>
    %257 = arith.addf %244, %256 : vector<8x320xf32>
    %258 = vector.extract_strided_slice %231 {offsets = [2, 0], sizes = [8, 320], strides = [1, 1]} : vector<10x320xf32> to vector<8x320xf32>
    %c24_106 = arith.constant 24 : index
    %c0_107 = arith.constant 0 : index
    %259 = vector.load %arg2[%c24_106, %c0_107] : memref<27x320xf32, #tpu.memory_space<vmem>>, vector<1x320xf32>
    %260 = vector.broadcast %259 : vector<1x320xf32> to vector<8x320xf32>
    %261 = arith.mulf %258, %260 : vector<8x320xf32>
    %262 = arith.addf %249, %261 : vector<8x320xf32>
    %c25_108 = arith.constant 25 : index
    %c0_109 = arith.constant 0 : index
    %263 = vector.load %arg2[%c25_108, %c0_109] : memref<27x320xf32, #tpu.memory_space<vmem>>, vector<1x320xf32>
    %264 = vector.broadcast %263 : vector<1x320xf32> to vector<8x320xf32>
    %265 = arith.mulf %258, %264 : vector<8x320xf32>
    %266 = arith.addf %253, %265 : vector<8x320xf32>
    %c26_110 = arith.constant 26 : index
    %c0_111 = arith.constant 0 : index
    %267 = vector.load %arg2[%c26_110, %c0_111] : memref<27x320xf32, #tpu.memory_space<vmem>>, vector<1x320xf32>
    %268 = vector.broadcast %267 : vector<1x320xf32> to vector<8x320xf32>
    %269 = arith.mulf %258, %268 : vector<8x320xf32>
    %270 = arith.addf %257, %269 : vector<8x320xf32>
    %271 = vector.extract_strided_slice %262 {offsets = [0, 0], sizes = [8, 256], strides = [1, 1]} : vector<8x320xf32> to vector<8x256xf32>
    %272 = vector.extract_strided_slice %266 {offsets = [0, 32], sizes = [8, 256], strides = [1, 1]} : vector<8x320xf32> to vector<8x256xf32>
    %273 = arith.addf %271, %272 : vector<8x256xf32>
    %274 = vector.extract_strided_slice %270 {offsets = [0, 64], sizes = [8, 256], strides = [1, 1]} : vector<8x320xf32> to vector<8x256xf32>
    %275 = arith.addf %273, %274 : vector<8x256xf32>
    %276 = vector.broadcast %0 : vector<1x256xf32> to vector<8x256xf32>
    %277 = arith.addf %275, %276 : vector<8x256xf32>
    %cst_112 = arith.constant 5.000000e-01 : f32
    %278 = vector.broadcast %cst_112 : f32 to vector<8x256xf32>
    %279 = arith.mulf %278, %277 : vector<8x256xf32>
    %cst_113 = arith.constant 0.707106769 : f32
    %280 = vector.broadcast %cst_113 : f32 to vector<8x256xf32>
    %281 = arith.mulf %277, %280 : vector<8x256xf32>
    %282 = math.absf %281 : vector<8x256xf32>
    %cst_114 = arith.constant 0.327591091 : f32
    %283 = vector.broadcast %cst_114 : f32 to vector<8x256xf32>
    %284 = arith.mulf %283, %282 : vector<8x256xf32>
    %cst_115 = arith.constant 1.000000e+00 : f32
    %285 = vector.broadcast %cst_115 : f32 to vector<8x256xf32>
    %286 = arith.addf %285, %284 : vector<8x256xf32>
    %287 = tpu.reciprocal %286 {approx = true} : vector<8x256xf32> -> vector<8x256xf32>
    %cst_116 = arith.constant 1.06140542 : f32
    %288 = vector.broadcast %cst_116 : f32 to vector<8x256xf32>
    %289 = arith.mulf %288, %287 : vector<8x256xf32>
    %cst_117 = arith.constant -1.45315206 : f32
    %290 = vector.broadcast %cst_117 : f32 to vector<8x256xf32>
    %291 = arith.addf %289, %290 : vector<8x256xf32>
    %292 = arith.mulf %291, %287 : vector<8x256xf32>
    %cst_118 = arith.constant 1.42141378 : f32
    %293 = vector.broadcast %cst_118 : f32 to vector<8x256xf32>
    %294 = arith.addf %292, %293 : vector<8x256xf32>
    %295 = arith.mulf %294, %287 : vector<8x256xf32>
    %cst_119 = arith.constant -0.284496725 : f32
    %296 = vector.broadcast %cst_119 : f32 to vector<8x256xf32>
    %297 = arith.addf %295, %296 : vector<8x256xf32>
    %298 = arith.mulf %297, %287 : vector<8x256xf32>
    %cst_120 = arith.constant 0.254829586 : f32
    %299 = vector.broadcast %cst_120 : f32 to vector<8x256xf32>
    %300 = arith.addf %298, %299 : vector<8x256xf32>
    %301 = arith.mulf %300, %287 : vector<8x256xf32>
    %cst_121 = arith.constant 0.000000e+00 : f32
    %302 = vector.broadcast %cst_121 : f32 to vector<8x256xf32>
    %303 = arith.subf %302, %282 : vector<8x256xf32>
    %304 = arith.mulf %303, %282 : vector<8x256xf32>
    %305 = math.exp %304 : vector<8x256xf32>
    %306 = arith.mulf %301, %305 : vector<8x256xf32>
    %cst_122 = arith.constant 1.000000e+00 : f32
    %307 = vector.broadcast %cst_122 : f32 to vector<8x256xf32>
    %308 = arith.subf %307, %306 : vector<8x256xf32>
    %cst_123 = arith.constant 0.000000e+00 : f32
    %309 = vector.broadcast %cst_123 : f32 to vector<8x256xf32>
    %310 = arith.cmpf oge, %281, %309 : vector<8x256xf32>
    %cst_124 = arith.constant 0.000000e+00 : f32
    %311 = vector.broadcast %cst_124 : f32 to vector<8x256xf32>
    %312 = arith.subf %311, %308 : vector<8x256xf32>
    %313 = arith.select %310, %308, %312 : vector<8x256xi1>, vector<8x256xf32>
    %cst_125 = arith.constant 1.000000e+00 : f32
    %314 = vector.broadcast %cst_125 : f32 to vector<8x256xf32>
    %315 = arith.addf %314, %313 : vector<8x256xf32>
    %316 = arith.mulf %279, %315 : vector<8x256xf32>
    %317 = arith.truncf %316 : vector<8x256xf32> to vector<8x256xbf16>
    %c0_126 = arith.constant 0 : index
    %c1_127 = arith.constant 1 : index
    %c0_128 = arith.constant 0 : index
    %c0_129 = arith.constant 0 : index
    %318 = vector.load %arg4[%c0_126, %c1_127, %c0_128, %c0_129] : memref<1x4x8x256xbf16, #tpu.memory_space<vmem>>, vector<1x1x8x256xbf16>
    %319 = vector.shape_cast %318 : vector<1x1x8x256xbf16> to vector<8x256xbf16>
    %320 = vector.shape_cast %317 : vector<8x256xbf16> to vector<1x1x8x256xbf16>
    tpu.vector_store %arg4[%c0_126, %c1_127, %c0_128, %c0_129], %320 {strides = array<i32>} : memref<1x4x8x256xbf16, #tpu.memory_space<vmem>>, vector<1x1x8x256xbf16>,
    %cst_130 = arith.constant dense<0.000000e+00> : vector<256xf32>
    %321 = vector.multi_reduction <add>, %316, %cst_130 [0] : vector<8x256xf32> to vector<256xf32>
    %322 = vector.shape_cast %321 : vector<256xf32> to vector<1x256xf32>
    %323 = arith.addf %140, %322 : vector<1x256xf32>
    %324 = arith.mulf %316, %316 : vector<8x256xf32>
    %cst_131 = arith.constant dense<0.000000e+00> : vector<256xf32>
    %325 = vector.multi_reduction <add>, %324, %cst_131 [0] : vector<8x256xf32> to vector<256xf32>
    %326 = vector.shape_cast %325 : vector<256xf32> to vector<1x256xf32>
    %327 = arith.addf %144, %326 : vector<1x256xf32>
    %cst_132 = arith.constant 0.000000e+00 : f32
    %328 = vector.broadcast %cst_132 : f32 to vector<8x320xf32>
    %cst_133 = arith.constant 0.000000e+00 : f32
    %329 = vector.broadcast %cst_133 : f32 to vector<8x320xf32>
    %cst_134 = arith.constant 0.000000e+00 : f32
    %330 = vector.broadcast %cst_134 : f32 to vector<8x320xf32>
    %c0_135 = arith.constant 0 : index
    %c1_136 = arith.constant 1 : index
    %c0_137 = arith.constant 0 : index
    %c0_138 = arith.constant 0 : index
    %331 = vector.load %arg1[%c0_135, %c1_136, %c0_137, %c0_138] : memref<1x4x10x320xf32, #tpu.memory_space<vmem>>, vector<1x1x10x320xf32>
    %332 = vector.shape_cast %331 : vector<1x1x10x320xf32> to vector<10x320xf32>
    %333 = vector.extract_strided_slice %332 {offsets = [0, 0], sizes = [8, 320], strides = [1, 1]} : vector<10x320xf32> to vector<8x320xf32>
    %c0_139 = arith.constant 0 : index
    %c0_140 = arith.constant 0 : index
    %334 = vector.load %arg2[%c0_139, %c0_140] : memref<27x320xf32, #tpu.memory_space<vmem>>, vector<1x320xf32>
    %335 = vector.broadcast %334 : vector<1x320xf32> to vector<8x320xf32>
    %336 = arith.mulf %333, %335 : vector<8x320xf32>
    %337 = arith.addf %328, %336 : vector<8x320xf32>
    %c1_141 = arith.constant 1 : index
    %c0_142 = arith.constant 0 : index
    %338 = vector.load %arg2[%c1_141, %c0_142] : memref<27x320xf32, #tpu.memory_space<vmem>>, vector<1x320xf32>
    %339 = vector.broadcast %338 : vector<1x320xf32> to vector<8x320xf32>
    %340 = arith.mulf %333, %339 : vector<8x320xf32>
    %341 = arith.addf %329, %340 : vector<8x320xf32>
    %c2_143 = arith.constant 2 : index
    %c0_144 = arith.constant 0 : index
    %342 = vector.load %arg2[%c2_143, %c0_144] : memref<27x320xf32, #tpu.memory_space<vmem>>, vector<1x320xf32>
    %343 = vector.broadcast %342 : vector<1x320xf32> to vector<8x320xf32>
    %344 = arith.mulf %333, %343 : vector<8x320xf32>
    %345 = arith.addf %330, %344 : vector<8x320xf32>
    %346 = vector.extract_strided_slice %332 {offsets = [1, 0], sizes = [8, 320], strides = [1, 1]} : vector<10x320xf32> to vector<8x320xf32>
    %c3_145 = arith.constant 3 : index
    %c0_146 = arith.constant 0 : index
    %347 = vector.load %arg2[%c3_145, %c0_146] : memref<27x320xf32, #tpu.memory_space<vmem>>, vector<1x320xf32>
    %348 = vector.broadcast %347 : vector<1x320xf32> to vector<8x320xf32>
    %349 = arith.mulf %346, %348 : vector<8x320xf32>
    %350 = arith.addf %337, %349 : vector<8x320xf32>
    %c4_147 = arith.constant 4 : index
    %c0_148 = arith.constant 0 : index
    %351 = vector.load %arg2[%c4_147, %c0_148] : memref<27x320xf32, #tpu.memory_space<vmem>>, vector<1x320xf32>
    %352 = vector.broadcast %351 : vector<1x320xf32> to vector<8x320xf32>
    %353 = arith.mulf %346, %352 : vector<8x320xf32>
    %354 = arith.addf %341, %353 : vector<8x320xf32>
    %c5_149 = arith.constant 5 : index
    %c0_150 = arith.constant 0 : index
    %355 = vector.load %arg2[%c5_149, %c0_150] : memref<27x320xf32, #tpu.memory_space<vmem>>, vector<1x320xf32>
    %356 = vector.broadcast %355 : vector<1x320xf32> to vector<8x320xf32>
    %357 = arith.mulf %346, %356 : vector<8x320xf32>
    %358 = arith.addf %345, %357 : vector<8x320xf32>
    %359 = vector.extract_strided_slice %332 {offsets = [2, 0], sizes = [8, 320], strides = [1, 1]} : vector<10x320xf32> to vector<8x320xf32>
    %c6_151 = arith.constant 6 : index
    %c0_152 = arith.constant 0 : index
    %360 = vector.load %arg2[%c6_151, %c0_152] : memref<27x320xf32, #tpu.memory_space<vmem>>, vector<1x320xf32>
    %361 = vector.broadcast %360 : vector<1x320xf32> to vector<8x320xf32>
    %362 = arith.mulf %359, %361 : vector<8x320xf32>
    %363 = arith.addf %350, %362 : vector<8x320xf32>
    %c7_153 = arith.constant 7 : index
    %c0_154 = arith.constant 0 : index
    %364 = vector.load %arg2[%c7_153, %c0_154] : memref<27x320xf32, #tpu.memory_space<vmem>>, vector<1x320xf32>
    %365 = vector.broadcast %364 : vector<1x320xf32> to vector<8x320xf32>
    %366 = arith.mulf %359, %365 : vector<8x320xf32>
    %367 = arith.addf %354, %366 : vector<8x320xf32>
    %c8_155 = arith.constant 8 : index
    %c0_156 = arith.constant 0 : index
    %368 = vector.load %arg2[%c8_155, %c0_156] : memref<27x320xf32, #tpu.memory_space<vmem>>, vector<1x320xf32>
    %369 = vector.broadcast %368 : vector<1x320xf32> to vector<8x320xf32>
    %370 = arith.mulf %359, %369 : vector<8x320xf32>
    %371 = arith.addf %358, %370 : vector<8x320xf32>
    %c0_157 = arith.constant 0 : index
    %c2_158 = arith.constant 2 : index
    %c0_159 = arith.constant 0 : index
    %c0_160 = arith.constant 0 : index
    %372 = vector.load %arg1[%c0_157, %c2_158, %c0_159, %c0_160] : memref<1x4x10x320xf32, #tpu.memory_space<vmem>>, vector<1x1x10x320xf32>
    %373 = vector.shape_cast %372 : vector<1x1x10x320xf32> to vector<10x320xf32>
    %374 = vector.extract_strided_slice %373 {offsets = [0, 0], sizes = [8, 320], strides = [1, 1]} : vector<10x320xf32> to vector<8x320xf32>
    %c9_161 = arith.constant 9 : index
    %c0_162 = arith.constant 0 : index
    %375 = vector.load %arg2[%c9_161, %c0_162] : memref<27x320xf32, #tpu.memory_space<vmem>>, vector<1x320xf32>
    %376 = vector.broadcast %375 : vector<1x320xf32> to vector<8x320xf32>
    %377 = arith.mulf %374, %376 : vector<8x320xf32>
    %378 = arith.addf %363, %377 : vector<8x320xf32>
    %c10_163 = arith.constant 10 : index
    %c0_164 = arith.constant 0 : index
    %379 = vector.load %arg2[%c10_163, %c0_164] : memref<27x320xf32, #tpu.memory_space<vmem>>, vector<1x320xf32>
    %380 = vector.broadcast %379 : vector<1x320xf32> to vector<8x320xf32>
    %381 = arith.mulf %374, %380 : vector<8x320xf32>
    %382 = arith.addf %367, %381 : vector<8x320xf32>
    %c11_165 = arith.constant 11 : index
    %c0_166 = arith.constant 0 : index
    %383 = vector.load %arg2[%c11_165, %c0_166] : memref<27x320xf32, #tpu.memory_space<vmem>>, vector<1x320xf32>
    %384 = vector.broadcast %383 : vector<1x320xf32> to vector<8x320xf32>
    %385 = arith.mulf %374, %384 : vector<8x320xf32>
    %386 = arith.addf %371, %385 : vector<8x320xf32>
    %387 = vector.extract_strided_slice %373 {offsets = [1, 0], sizes = [8, 320], strides = [1, 1]} : vector<10x320xf32> to vector<8x320xf32>
    %c12_167 = arith.constant 12 : index
    %c0_168 = arith.constant 0 : index
    %388 = vector.load %arg2[%c12_167, %c0_168] : memref<27x320xf32, #tpu.memory_space<vmem>>, vector<1x320xf32>
    %389 = vector.broadcast %388 : vector<1x320xf32> to vector<8x320xf32>
    %390 = arith.mulf %387, %389 : vector<8x320xf32>
    %391 = arith.addf %378, %390 : vector<8x320xf32>
    %c13_169 = arith.constant 13 : index
    %c0_170 = arith.constant 0 : index
    %392 = vector.load %arg2[%c13_169, %c0_170] : memref<27x320xf32, #tpu.memory_space<vmem>>, vector<1x320xf32>
    %393 = vector.broadcast %392 : vector<1x320xf32> to vector<8x320xf32>
    %394 = arith.mulf %387, %393 : vector<8x320xf32>
    %395 = arith.addf %382, %394 : vector<8x320xf32>
    %c14_171 = arith.constant 14 : index
    %c0_172 = arith.constant 0 : index
    %396 = vector.load %arg2[%c14_171, %c0_172] : memref<27x320xf32, #tpu.memory_space<vmem>>, vector<1x320xf32>
    %397 = vector.broadcast %396 : vector<1x320xf32> to vector<8x320xf32>
    %398 = arith.mulf %387, %397 : vector<8x320xf32>
    %399 = arith.addf %386, %398 : vector<8x320xf32>
    %400 = vector.extract_strided_slice %373 {offsets = [2, 0], sizes = [8, 320], strides = [1, 1]} : vector<10x320xf32> to vector<8x320xf32>
    %c15_173 = arith.constant 15 : index
    %c0_174 = arith.constant 0 : index
    %401 = vector.load %arg2[%c15_173, %c0_174] : memref<27x320xf32, #tpu.memory_space<vmem>>, vector<1x320xf32>
    %402 = vector.broadcast %401 : vector<1x320xf32> to vector<8x320xf32>
    %403 = arith.mulf %400, %402 : vector<8x320xf32>
    %404 = arith.addf %391, %403 : vector<8x320xf32>
    %c16_175 = arith.constant 16 : index
    %c0_176 = arith.constant 0 : index
    %405 = vector.load %arg2[%c16_175, %c0_176] : memref<27x320xf32, #tpu.memory_space<vmem>>, vector<1x320xf32>
    %406 = vector.broadcast %405 : vector<1x320xf32> to vector<8x320xf32>
    %407 = arith.mulf %400, %406 : vector<8x320xf32>
    %408 = arith.addf %395, %407 : vector<8x320xf32>
    %c17_177 = arith.constant 17 : index
    %c0_178 = arith.constant 0 : index
    %409 = vector.load %arg2[%c17_177, %c0_178] : memref<27x320xf32, #tpu.memory_space<vmem>>, vector<1x320xf32>
    %410 = vector.broadcast %409 : vector<1x320xf32> to vector<8x320xf32>
    %411 = arith.mulf %400, %410 : vector<8x320xf32>
    %412 = arith.addf %399, %411 : vector<8x320xf32>
    %c0_179 = arith.constant 0 : index
    %c3_180 = arith.constant 3 : index
    %c0_181 = arith.constant 0 : index
    %c0_182 = arith.constant 0 : index
    %413 = vector.load %arg1[%c0_179, %c3_180, %c0_181, %c0_182] : memref<1x4x10x320xf32, #tpu.memory_space<vmem>>, vector<1x1x10x320xf32>
    %414 = vector.shape_cast %413 : vector<1x1x10x320xf32> to vector<10x320xf32>
    %415 = vector.extract_strided_slice %414 {offsets = [0, 0], sizes = [8, 320], strides = [1, 1]} : vector<10x320xf32> to vector<8x320xf32>
    %c18_183 = arith.constant 18 : index
    %c0_184 = arith.constant 0 : index
    %416 = vector.load %arg2[%c18_183, %c0_184] : memref<27x320xf32, #tpu.memory_space<vmem>>, vector<1x320xf32>
    %417 = vector.broadcast %416 : vector<1x320xf32> to vector<8x320xf32>
    %418 = arith.mulf %415, %417 : vector<8x320xf32>
    %419 = arith.addf %404, %418 : vector<8x320xf32>
    %c19_185 = arith.constant 19 : index
    %c0_186 = arith.constant 0 : index
    %420 = vector.load %arg2[%c19_185, %c0_186] : memref<27x320xf32, #tpu.memory_space<vmem>>, vector<1x320xf32>
    %421 = vector.broadcast %420 : vector<1x320xf32> to vector<8x320xf32>
    %422 = arith.mulf %415, %421 : vector<8x320xf32>
    %423 = arith.addf %408, %422 : vector<8x320xf32>
    %c20_187 = arith.constant 20 : index
    %c0_188 = arith.constant 0 : index
    %424 = vector.load %arg2[%c20_187, %c0_188] : memref<27x320xf32, #tpu.memory_space<vmem>>, vector<1x320xf32>
    %425 = vector.broadcast %424 : vector<1x320xf32> to vector<8x320xf32>
    %426 = arith.mulf %415, %425 : vector<8x320xf32>
    %427 = arith.addf %412, %426 : vector<8x320xf32>
    %428 = vector.extract_strided_slice %414 {offsets = [1, 0], sizes = [8, 320], strides = [1, 1]} : vector<10x320xf32> to vector<8x320xf32>
    %c21_189 = arith.constant 21 : index
    %c0_190 = arith.constant 0 : index
    %429 = vector.load %arg2[%c21_189, %c0_190] : memref<27x320xf32, #tpu.memory_space<vmem>>, vector<1x320xf32>
    %430 = vector.broadcast %429 : vector<1x320xf32> to vector<8x320xf32>
    %431 = arith.mulf %428, %430 : vector<8x320xf32>
    %432 = arith.addf %419, %431 : vector<8x320xf32>
    %c22_191 = arith.constant 22 : index
    %c0_192 = arith.constant 0 : index
    %433 = vector.load %arg2[%c22_191, %c0_192] : memref<27x320xf32, #tpu.memory_space<vmem>>, vector<1x320xf32>
    %434 = vector.broadcast %433 : vector<1x320xf32> to vector<8x320xf32>
    %435 = arith.mulf %428, %434 : vector<8x320xf32>
    %436 = arith.addf %423, %435 : vector<8x320xf32>
    %c23_193 = arith.constant 23 : index
    %c0_194 = arith.constant 0 : index
    %437 = vector.load %arg2[%c23_193, %c0_194] : memref<27x320xf32, #tpu.memory_space<vmem>>, vector<1x320xf32>
    %438 = vector.broadcast %437 : vector<1x320xf32> to vector<8x320xf32>
    %439 = arith.mulf %428, %438 : vector<8x320xf32>
    %440 = arith.addf %427, %439 : vector<8x320xf32>
    %441 = vector.extract_strided_slice %414 {offsets = [2, 0], sizes = [8, 320], strides = [1, 1]} : vector<10x320xf32> to vector<8x320xf32>
    %c24_195 = arith.constant 24 : index
    %c0_196 = arith.constant 0 : index
    %442 = vector.load %arg2[%c24_195, %c0_196] : memref<27x320xf32, #tpu.memory_space<vmem>>, vector<1x320xf32>
    %443 = vector.broadcast %442 : vector<1x320xf32> to vector<8x320xf32>
    %444 = arith.mulf %441, %443 : vector<8x320xf32>
    %445 = arith.addf %432, %444 : vector<8x320xf32>
    %c25_197 = arith.constant 25 : index
    %c0_198 = arith.constant 0 : index
    %446 = vector.load %arg2[%c25_197, %c0_198] : memref<27x320xf32, #tpu.memory_space<vmem>>, vector<1x320xf32>
    %447 = vector.broadcast %446 : vector<1x320xf32> to vector<8x320xf32>
    %448 = arith.mulf %441, %447 : vector<8x320xf32>
    %449 = arith.addf %436, %448 : vector<8x320xf32>
    %c26_199 = arith.constant 26 : index
    %c0_200 = arith.constant 0 : index
    %450 = vector.load %arg2[%c26_199, %c0_200] : memref<27x320xf32, #tpu.memory_space<vmem>>, vector<1x320xf32>
    %451 = vector.broadcast %450 : vector<1x320xf32> to vector<8x320xf32>
    %452 = arith.mulf %441, %451 : vector<8x320xf32>
    %453 = arith.addf %440, %452 : vector<8x320xf32>
    %454 = vector.extract_strided_slice %445 {offsets = [0, 0], sizes = [8, 256], strides = [1, 1]} : vector<8x320xf32> to vector<8x256xf32>
    %455 = vector.extract_strided_slice %449 {offsets = [0, 32], sizes = [8, 256], strides = [1, 1]} : vector<8x320xf32> to vector<8x256xf32>
    %456 = arith.addf %454, %455 : vector<8x256xf32>
    %457 = vector.extract_strided_slice %453 {offsets = [0, 64], sizes = [8, 256], strides = [1, 1]} : vector<8x320xf32> to vector<8x256xf32>
    %458 = arith.addf %456, %457 : vector<8x256xf32>
    %459 = vector.broadcast %0 : vector<1x256xf32> to vector<8x256xf32>
    %460 = arith.addf %458, %459 : vector<8x256xf32>
    %cst_201 = arith.constant 5.000000e-01 : f32
    %461 = vector.broadcast %cst_201 : f32 to vector<8x256xf32>
    %462 = arith.mulf %461, %460 : vector<8x256xf32>
    %cst_202 = arith.constant 0.707106769 : f32
    %463 = vector.broadcast %cst_202 : f32 to vector<8x256xf32>
    %464 = arith.mulf %460, %463 : vector<8x256xf32>
    %465 = math.absf %464 : vector<8x256xf32>
    %cst_203 = arith.constant 0.327591091 : f32
    %466 = vector.broadcast %cst_203 : f32 to vector<8x256xf32>
    %467 = arith.mulf %466, %465 : vector<8x256xf32>
    %cst_204 = arith.constant 1.000000e+00 : f32
    %468 = vector.broadcast %cst_204 : f32 to vector<8x256xf32>
    %469 = arith.addf %468, %467 : vector<8x256xf32>
    %470 = tpu.reciprocal %469 {approx = true} : vector<8x256xf32> -> vector<8x256xf32>
    %cst_205 = arith.constant 1.06140542 : f32
    %471 = vector.broadcast %cst_205 : f32 to vector<8x256xf32>
    %472 = arith.mulf %471, %470 : vector<8x256xf32>
    %cst_206 = arith.constant -1.45315206 : f32
    %473 = vector.broadcast %cst_206 : f32 to vector<8x256xf32>
    %474 = arith.addf %472, %473 : vector<8x256xf32>
    %475 = arith.mulf %474, %470 : vector<8x256xf32>
    %cst_207 = arith.constant 1.42141378 : f32
    %476 = vector.broadcast %cst_207 : f32 to vector<8x256xf32>
    %477 = arith.addf %475, %476 : vector<8x256xf32>
    %478 = arith.mulf %477, %470 : vector<8x256xf32>
    %cst_208 = arith.constant -0.284496725 : f32
    %479 = vector.broadcast %cst_208 : f32 to vector<8x256xf32>
    %480 = arith.addf %478, %479 : vector<8x256xf32>
    %481 = arith.mulf %480, %470 : vector<8x256xf32>
    %cst_209 = arith.constant 0.254829586 : f32
    %482 = vector.broadcast %cst_209 : f32 to vector<8x256xf32>
    %483 = arith.addf %481, %482 : vector<8x256xf32>
    %484 = arith.mulf %483, %470 : vector<8x256xf32>
    %cst_210 = arith.constant 0.000000e+00 : f32
    %485 = vector.broadcast %cst_210 : f32 to vector<8x256xf32>
    %486 = arith.subf %485, %465 : vector<8x256xf32>
    %487 = arith.mulf %486, %465 : vector<8x256xf32>
    %488 = math.exp %487 : vector<8x256xf32>
    %489 = arith.mulf %484, %488 : vector<8x256xf32>
    %cst_211 = arith.constant 1.000000e+00 : f32
    %490 = vector.broadcast %cst_211 : f32 to vector<8x256xf32>
    %491 = arith.subf %490, %489 : vector<8x256xf32>
    %cst_212 = arith.constant 0.000000e+00 : f32
    %492 = vector.broadcast %cst_212 : f32 to vector<8x256xf32>
    %493 = arith.cmpf oge, %464, %492 : vector<8x256xf32>
    %cst_213 = arith.constant 0.000000e+00 : f32
    %494 = vector.broadcast %cst_213 : f32 to vector<8x256xf32>
    %495 = arith.subf %494, %491 : vector<8x256xf32>
    %496 = arith.select %493, %491, %495 : vector<8x256xi1>, vector<8x256xf32>
    %cst_214 = arith.constant 1.000000e+00 : f32
    %497 = vector.broadcast %cst_214 : f32 to vector<8x256xf32>
    %498 = arith.addf %497, %496 : vector<8x256xf32>
    %499 = arith.mulf %462, %498 : vector<8x256xf32>
    %500 = arith.truncf %499 : vector<8x256xf32> to vector<8x256xbf16>
    %c0_215 = arith.constant 0 : index
    %c2_216 = arith.constant 2 : index
    %c0_217 = arith.constant 0 : index
    %c0_218 = arith.constant 0 : index
    %501 = vector.load %arg4[%c0_215, %c2_216, %c0_217, %c0_218] : memref<1x4x8x256xbf16, #tpu.memory_space<vmem>>, vector<1x1x8x256xbf16>
    %502 = vector.shape_cast %501 : vector<1x1x8x256xbf16> to vector<8x256xbf16>
    %503 = vector.shape_cast %500 : vector<8x256xbf16> to vector<1x1x8x256xbf16>
    tpu.vector_store %arg4[%c0_215, %c2_216, %c0_217, %c0_218], %503 {strides = array<i32>} : memref<1x4x8x256xbf16, #tpu.memory_space<vmem>>, vector<1x1x8x256xbf16>,
    %cst_219 = arith.constant dense<0.000000e+00> : vector<256xf32>
    %504 = vector.multi_reduction <add>, %499, %cst_219 [0] : vector<8x256xf32> to vector<256xf32>
    %505 = vector.shape_cast %504 : vector<256xf32> to vector<1x256xf32>
    %506 = arith.addf %323, %505 : vector<1x256xf32>
    %507 = arith.mulf %499, %499 : vector<8x256xf32>
    %cst_220 = arith.constant dense<0.000000e+00> : vector<256xf32>
    %508 = vector.multi_reduction <add>, %507, %cst_220 [0] : vector<8x256xf32> to vector<256xf32>
    %509 = vector.shape_cast %508 : vector<256xf32> to vector<1x256xf32>
    %510 = arith.addf %327, %509 : vector<1x256xf32>
    %cst_221 = arith.constant 0.000000e+00 : f32
    %511 = vector.broadcast %cst_221 : f32 to vector<8x320xf32>
    %cst_222 = arith.constant 0.000000e+00 : f32
    %512 = vector.broadcast %cst_222 : f32 to vector<8x320xf32>
    %cst_223 = arith.constant 0.000000e+00 : f32
    %513 = vector.broadcast %cst_223 : f32 to vector<8x320xf32>
    %c0_224 = arith.constant 0 : index
    %c2_225 = arith.constant 2 : index
    %c0_226 = arith.constant 0 : index
    %c0_227 = arith.constant 0 : index
    %514 = vector.load %arg1[%c0_224, %c2_225, %c0_226, %c0_227] : memref<1x4x10x320xf32, #tpu.memory_space<vmem>>, vector<1x1x10x320xf32>
    %515 = vector.shape_cast %514 : vector<1x1x10x320xf32> to vector<10x320xf32>
    %516 = vector.extract_strided_slice %515 {offsets = [0, 0], sizes = [8, 320], strides = [1, 1]} : vector<10x320xf32> to vector<8x320xf32>
    %c0_228 = arith.constant 0 : index
    %c0_229 = arith.constant 0 : index
    %517 = vector.load %arg2[%c0_228, %c0_229] : memref<27x320xf32, #tpu.memory_space<vmem>>, vector<1x320xf32>
    %518 = vector.broadcast %517 : vector<1x320xf32> to vector<8x320xf32>
    %519 = arith.mulf %516, %518 : vector<8x320xf32>
    %520 = arith.addf %511, %519 : vector<8x320xf32>
    %c1_230 = arith.constant 1 : index
    %c0_231 = arith.constant 0 : index
    %521 = vector.load %arg2[%c1_230, %c0_231] : memref<27x320xf32, #tpu.memory_space<vmem>>, vector<1x320xf32>
    %522 = vector.broadcast %521 : vector<1x320xf32> to vector<8x320xf32>
    %523 = arith.mulf %516, %522 : vector<8x320xf32>
    %524 = arith.addf %512, %523 : vector<8x320xf32>
    %c2_232 = arith.constant 2 : index
    %c0_233 = arith.constant 0 : index
    %525 = vector.load %arg2[%c2_232, %c0_233] : memref<27x320xf32, #tpu.memory_space<vmem>>, vector<1x320xf32>
    %526 = vector.broadcast %525 : vector<1x320xf32> to vector<8x320xf32>
    %527 = arith.mulf %516, %526 : vector<8x320xf32>
    %528 = arith.addf %513, %527 : vector<8x320xf32>
    %529 = vector.extract_strided_slice %515 {offsets = [1, 0], sizes = [8, 320], strides = [1, 1]} : vector<10x320xf32> to vector<8x320xf32>
    %c3_234 = arith.constant 3 : index
    %c0_235 = arith.constant 0 : index
    %530 = vector.load %arg2[%c3_234, %c0_235] : memref<27x320xf32, #tpu.memory_space<vmem>>, vector<1x320xf32>
    %531 = vector.broadcast %530 : vector<1x320xf32> to vector<8x320xf32>
    %532 = arith.mulf %529, %531 : vector<8x320xf32>
    %533 = arith.addf %520, %532 : vector<8x320xf32>
    %c4_236 = arith.constant 4 : index
    %c0_237 = arith.constant 0 : index
    %534 = vector.load %arg2[%c4_236, %c0_237] : memref<27x320xf32, #tpu.memory_space<vmem>>, vector<1x320xf32>
    %535 = vector.broadcast %534 : vector<1x320xf32> to vector<8x320xf32>
    %536 = arith.mulf %529, %535 : vector<8x320xf32>
    %537 = arith.addf %524, %536 : vector<8x320xf32>
    %c5_238 = arith.constant 5 : index
    %c0_239 = arith.constant 0 : index
    %538 = vector.load %arg2[%c5_238, %c0_239] : memref<27x320xf32, #tpu.memory_space<vmem>>, vector<1x320xf32>
    %539 = vector.broadcast %538 : vector<1x320xf32> to vector<8x320xf32>
    %540 = arith.mulf %529, %539 : vector<8x320xf32>
    %541 = arith.addf %528, %540 : vector<8x320xf32>
    %542 = vector.extract_strided_slice %515 {offsets = [2, 0], sizes = [8, 320], strides = [1, 1]} : vector<10x320xf32> to vector<8x320xf32>
    %c6_240 = arith.constant 6 : index
    %c0_241 = arith.constant 0 : index
    %543 = vector.load %arg2[%c6_240, %c0_241] : memref<27x320xf32, #tpu.memory_space<vmem>>, vector<1x320xf32>
    %544 = vector.broadcast %543 : vector<1x320xf32> to vector<8x320xf32>
    %545 = arith.mulf %542, %544 : vector<8x320xf32>
    %546 = arith.addf %533, %545 : vector<8x320xf32>
    %c7_242 = arith.constant 7 : index
    %c0_243 = arith.constant 0 : index
    %547 = vector.load %arg2[%c7_242, %c0_243] : memref<27x320xf32, #tpu.memory_space<vmem>>, vector<1x320xf32>
    %548 = vector.broadcast %547 : vector<1x320xf32> to vector<8x320xf32>
    %549 = arith.mulf %542, %548 : vector<8x320xf32>
    %550 = arith.addf %537, %549 : vector<8x320xf32>
    %c8_244 = arith.constant 8 : index
    %c0_245 = arith.constant 0 : index
    %551 = vector.load %arg2[%c8_244, %c0_245] : memref<27x320xf32, #tpu.memory_space<vmem>>, vector<1x320xf32>
    %552 = vector.broadcast %551 : vector<1x320xf32> to vector<8x320xf32>
    %553 = arith.mulf %542, %552 : vector<8x320xf32>
    %554 = arith.addf %541, %553 : vector<8x320xf32>
    %c0_246 = arith.constant 0 : index
    %c3_247 = arith.constant 3 : index
    %c0_248 = arith.constant 0 : index
    %c0_249 = arith.constant 0 : index
    %555 = vector.load %arg1[%c0_246, %c3_247, %c0_248, %c0_249] : memref<1x4x10x320xf32, #tpu.memory_space<vmem>>, vector<1x1x10x320xf32>
    %556 = vector.shape_cast %555 : vector<1x1x10x320xf32> to vector<10x320xf32>
    %557 = vector.extract_strided_slice %556 {offsets = [0, 0], sizes = [8, 320], strides = [1, 1]} : vector<10x320xf32> to vector<8x320xf32>
    %c9_250 = arith.constant 9 : index
    %c0_251 = arith.constant 0 : index
    %558 = vector.load %arg2[%c9_250, %c0_251] : memref<27x320xf32, #tpu.memory_space<vmem>>, vector<1x320xf32>
    %559 = vector.broadcast %558 : vector<1x320xf32> to vector<8x320xf32>
    %560 = arith.mulf %557, %559 : vector<8x320xf32>
    %561 = arith.addf %546, %560 : vector<8x320xf32>
    %c10_252 = arith.constant 10 : index
    %c0_253 = arith.constant 0 : index
    %562 = vector.load %arg2[%c10_252, %c0_253] : memref<27x320xf32, #tpu.memory_space<vmem>>, vector<1x320xf32>
    %563 = vector.broadcast %562 : vector<1x320xf32> to vector<8x320xf32>
    %564 = arith.mulf %557, %563 : vector<8x320xf32>
    %565 = arith.addf %550, %564 : vector<8x320xf32>
    %c11_254 = arith.constant 11 : index
    %c0_255 = arith.constant 0 : index
    %566 = vector.load %arg2[%c11_254, %c0_255] : memref<27x320xf32, #tpu.memory_space<vmem>>, vector<1x320xf32>
    %567 = vector.broadcast %566 : vector<1x320xf32> to vector<8x320xf32>
    %568 = arith.mulf %557, %567 : vector<8x320xf32>
    %569 = arith.addf %554, %568 : vector<8x320xf32>
    %570 = vector.extract_strided_slice %556 {offsets = [1, 0], sizes = [8, 320], strides = [1, 1]} : vector<10x320xf32> to vector<8x320xf32>
    %c12_256 = arith.constant 12 : index
    %c0_257 = arith.constant 0 : index
    %571 = vector.load %arg2[%c12_256, %c0_257] : memref<27x320xf32, #tpu.memory_space<vmem>>, vector<1x320xf32>
    %572 = vector.broadcast %571 : vector<1x320xf32> to vector<8x320xf32>
    %573 = arith.mulf %570, %572 : vector<8x320xf32>
    %574 = arith.addf %561, %573 : vector<8x320xf32>
    %c13_258 = arith.constant 13 : index
    %c0_259 = arith.constant 0 : index
    %575 = vector.load %arg2[%c13_258, %c0_259] : memref<27x320xf32, #tpu.memory_space<vmem>>, vector<1x320xf32>
    %576 = vector.broadcast %575 : vector<1x320xf32> to vector<8x320xf32>
    %577 = arith.mulf %570, %576 : vector<8x320xf32>
    %578 = arith.addf %565, %577 : vector<8x320xf32>
    %c14_260 = arith.constant 14 : index
    %c0_261 = arith.constant 0 : index
    %579 = vector.load %arg2[%c14_260, %c0_261] : memref<27x320xf32, #tpu.memory_space<vmem>>, vector<1x320xf32>
    %580 = vector.broadcast %579 : vector<1x320xf32> to vector<8x320xf32>
    %581 = arith.mulf %570, %580 : vector<8x320xf32>
    %582 = arith.addf %569, %581 : vector<8x320xf32>
    %583 = vector.extract_strided_slice %556 {offsets = [2, 0], sizes = [8, 320], strides = [1, 1]} : vector<10x320xf32> to vector<8x320xf32>
    %c15_262 = arith.constant 15 : index
    %c0_263 = arith.constant 0 : index
    %584 = vector.load %arg2[%c15_262, %c0_263] : memref<27x320xf32, #tpu.memory_space<vmem>>, vector<1x320xf32>
    %585 = vector.broadcast %584 : vector<1x320xf32> to vector<8x320xf32>
    %586 = arith.mulf %583, %585 : vector<8x320xf32>
    %587 = arith.addf %574, %586 : vector<8x320xf32>
    %c16_264 = arith.constant 16 : index
    %c0_265 = arith.constant 0 : index
    %588 = vector.load %arg2[%c16_264, %c0_265] : memref<27x320xf32, #tpu.memory_space<vmem>>, vector<1x320xf32>
    %589 = vector.broadcast %588 : vector<1x320xf32> to vector<8x320xf32>
    %590 = arith.mulf %583, %589 : vector<8x320xf32>
    %591 = arith.addf %578, %590 : vector<8x320xf32>
    %c17_266 = arith.constant 17 : index
    %c0_267 = arith.constant 0 : index
    %592 = vector.load %arg2[%c17_266, %c0_267] : memref<27x320xf32, #tpu.memory_space<vmem>>, vector<1x320xf32>
    %593 = vector.broadcast %592 : vector<1x320xf32> to vector<8x320xf32>
    %594 = arith.mulf %583, %593 : vector<8x320xf32>
    %595 = arith.addf %582, %594 : vector<8x320xf32>
    %596 = vector.extract_strided_slice %587 {offsets = [0, 0], sizes = [8, 256], strides = [1, 1]} : vector<8x320xf32> to vector<8x256xf32>
    %597 = vector.extract_strided_slice %591 {offsets = [0, 32], sizes = [8, 256], strides = [1, 1]} : vector<8x320xf32> to vector<8x256xf32>
    %598 = arith.addf %596, %597 : vector<8x256xf32>
    %599 = vector.extract_strided_slice %595 {offsets = [0, 64], sizes = [8, 256], strides = [1, 1]} : vector<8x320xf32> to vector<8x256xf32>
    %600 = arith.addf %598, %599 : vector<8x256xf32>
    %601 = vector.broadcast %0 : vector<1x256xf32> to vector<8x256xf32>
    %602 = arith.addf %600, %601 : vector<8x256xf32>
    %cst_268 = arith.constant 5.000000e-01 : f32
    %603 = vector.broadcast %cst_268 : f32 to vector<8x256xf32>
    %604 = arith.mulf %603, %602 : vector<8x256xf32>
    %cst_269 = arith.constant 0.707106769 : f32
    %605 = vector.broadcast %cst_269 : f32 to vector<8x256xf32>
    %606 = arith.mulf %602, %605 : vector<8x256xf32>
    %607 = math.absf %606 : vector<8x256xf32>
    %cst_270 = arith.constant 0.327591091 : f32
    %608 = vector.broadcast %cst_270 : f32 to vector<8x256xf32>
    %609 = arith.mulf %608, %607 : vector<8x256xf32>
    %cst_271 = arith.constant 1.000000e+00 : f32
    %610 = vector.broadcast %cst_271 : f32 to vector<8x256xf32>
    %611 = arith.addf %610, %609 : vector<8x256xf32>
    %612 = tpu.reciprocal %611 {approx = true} : vector<8x256xf32> -> vector<8x256xf32>
    %cst_272 = arith.constant 1.06140542 : f32
    %613 = vector.broadcast %cst_272 : f32 to vector<8x256xf32>
    %614 = arith.mulf %613, %612 : vector<8x256xf32>
    %cst_273 = arith.constant -1.45315206 : f32
    %615 = vector.broadcast %cst_273 : f32 to vector<8x256xf32>
    %616 = arith.addf %614, %615 : vector<8x256xf32>
    %617 = arith.mulf %616, %612 : vector<8x256xf32>
    %cst_274 = arith.constant 1.42141378 : f32
    %618 = vector.broadcast %cst_274 : f32 to vector<8x256xf32>
    %619 = arith.addf %617, %618 : vector<8x256xf32>
    %620 = arith.mulf %619, %612 : vector<8x256xf32>
    %cst_275 = arith.constant -0.284496725 : f32
    %621 = vector.broadcast %cst_275 : f32 to vector<8x256xf32>
    %622 = arith.addf %620, %621 : vector<8x256xf32>
    %623 = arith.mulf %622, %612 : vector<8x256xf32>
    %cst_276 = arith.constant 0.254829586 : f32
    %624 = vector.broadcast %cst_276 : f32 to vector<8x256xf32>
    %625 = arith.addf %623, %624 : vector<8x256xf32>
    %626 = arith.mulf %625, %612 : vector<8x256xf32>
    %cst_277 = arith.constant 0.000000e+00 : f32
    %627 = vector.broadcast %cst_277 : f32 to vector<8x256xf32>
    %628 = arith.subf %627, %607 : vector<8x256xf32>
    %629 = arith.mulf %628, %607 : vector<8x256xf32>
    %630 = math.exp %629 : vector<8x256xf32>
    %631 = arith.mulf %626, %630 : vector<8x256xf32>
    %cst_278 = arith.constant 1.000000e+00 : f32
    %632 = vector.broadcast %cst_278 : f32 to vector<8x256xf32>
    %633 = arith.subf %632, %631 : vector<8x256xf32>
    %cst_279 = arith.constant 0.000000e+00 : f32
    %634 = vector.broadcast %cst_279 : f32 to vector<8x256xf32>
    %635 = arith.cmpf oge, %606, %634 : vector<8x256xf32>
    %cst_280 = arith.constant 0.000000e+00 : f32
    %636 = vector.broadcast %cst_280 : f32 to vector<8x256xf32>
    %637 = arith.subf %636, %633 : vector<8x256xf32>
    %638 = arith.select %635, %633, %637 : vector<8x256xi1>, vector<8x256xf32>
    %cst_281 = arith.constant 1.000000e+00 : f32
    %639 = vector.broadcast %cst_281 : f32 to vector<8x256xf32>
    %640 = arith.addf %639, %638 : vector<8x256xf32>
    %641 = arith.mulf %604, %640 : vector<8x256xf32>
    %642 = arith.truncf %641 : vector<8x256xf32> to vector<8x256xbf16>
    %c0_282 = arith.constant 0 : index
    %c3_283 = arith.constant 3 : index
    %c0_284 = arith.constant 0 : index
    %c0_285 = arith.constant 0 : index
    %643 = vector.load %arg4[%c0_282, %c3_283, %c0_284, %c0_285] : memref<1x4x8x256xbf16, #tpu.memory_space<vmem>>, vector<1x1x8x256xbf16>
    %644 = vector.shape_cast %643 : vector<1x1x8x256xbf16> to vector<8x256xbf16>
    %645 = vector.shape_cast %642 : vector<8x256xbf16> to vector<1x1x8x256xbf16>
    tpu.vector_store %arg4[%c0_282, %c3_283, %c0_284, %c0_285], %645 {strides = array<i32>} : memref<1x4x8x256xbf16, #tpu.memory_space<vmem>>, vector<1x1x8x256xbf16>,
    %cst_286 = arith.constant dense<0.000000e+00> : vector<256xf32>
    %646 = vector.multi_reduction <add>, %641, %cst_286 [0] : vector<8x256xf32> to vector<256xf32>
    %647 = vector.shape_cast %646 : vector<256xf32> to vector<1x256xf32>
    %648 = arith.addf %506, %647 : vector<1x256xf32>
    %649 = arith.mulf %641, %641 : vector<8x256xf32>
    %cst_287 = arith.constant dense<0.000000e+00> : vector<256xf32>
    %650 = vector.multi_reduction <add>, %649, %cst_287 [0] : vector<8x256xf32> to vector<256xf32>
    %651 = vector.shape_cast %650 : vector<256xf32> to vector<1x256xf32>
    %652 = arith.addf %510, %651 : vector<1x256xf32>
    %c0_288 = arith.constant 0 : index
    %c0_289 = arith.constant 0 : index
    %c0_290 = arith.constant 0 : index
    %653 = vector.load %arg5[%c0_288, %c0_289, %c0_290] : memref<1x2x256xf32, #tpu.memory_space<vmem>>, vector<1x1x256xf32>
    %654 = vector.shape_cast %653 : vector<1x1x256xf32> to vector<1x256xf32>
    %655 = vector.shape_cast %648 : vector<1x256xf32> to vector<1x1x256xf32>
    tpu.vector_store %arg5[%c0_288, %c0_289, %c0_290], %655 {strides = array<i32>} : memref<1x2x256xf32, #tpu.memory_space<vmem>>, vector<1x1x256xf32>,
    %c0_291 = arith.constant 0 : index
    %c1_292 = arith.constant 1 : index
    %c0_293 = arith.constant 0 : index
    %656 = vector.load %arg5[%c0_291, %c1_292, %c0_293] : memref<1x2x256xf32, #tpu.memory_space<vmem>>, vector<1x1x256xf32>
    %657 = vector.shape_cast %656 : vector<1x1x256xf32> to vector<1x256xf32>
    %658 = vector.shape_cast %652 : vector<1x256xf32> to vector<1x1x256xf32>
    tpu.vector_store %arg5[%c0_291, %c1_292, %c0_293], %658 {strides = array<i32>} : memref<1x2x256xf32, #tpu.memory_space<vmem>>, vector<1x1x256xf32>,
    return
  }
  func.func @transform_0(%arg0: i32) -> (i32, i32, i32, i32) {
    %c0_i32 = arith.constant 0 : i32
    %c0_i32_0 = arith.constant 0 : i32
    %c0_i32_1 = arith.constant 0 : i32
    %c0_i32_2 = arith.constant 0 : i32
    return %arg0, %c0_i32, %c0_i32_0, %c0_i32_1 : i32, i32, i32, i32
  }
  func.func @transform_1(%arg0: i32) -> (i32, i32) {
    %c0_i32 = arith.constant 0 : i32
    %c0_i32_0 = arith.constant 0 : i32
    %c0_i32_1 = arith.constant 0 : i32
    return %c0_i32, %c0_i32_0 : i32, i32
  }
  func.func @transform_2(%arg0: i32) -> (i32, i32) {
    %c0_i32 = arith.constant 0 : i32
    %c0_i32_0 = arith.constant 0 : i32
    %c0_i32_1 = arith.constant 0 : i32
    return %c0_i32, %c0_i32_0 : i32, i32
  }
  func.func @transform_3(%arg0: i32) -> (i32, i32, i32, i32) {
    %c0_i32 = arith.constant 0 : i32
    %c0_i32_0 = arith.constant 0 : i32
    %c0_i32_1 = arith.constant 0 : i32
    %c0_i32_2 = arith.constant 0 : i32
    return %arg0, %c0_i32, %c0_i32_0, %c0_i32_1 : i32, i32, i32, i32
  }
  func.func @transform_4(%arg0: i32) -> (i32, i32, i32) {
    %c0_i32 = arith.constant 0 : i32
    %c0_i32_0 = arith.constant 0 : i32
    %c0_i32_1 = arith.constant 0 : i32
    return %arg0, %c0_i32, %c0_i32_0 : i32, i32, i32
  }
}

</mosaic_0001>

<bundles_post_ra>
// kernel: tpu_custom_call.1
= control target key start
LH: loop header
LB: loop body
LE: loop exit
PB: predicated region body
PF: predicated region fallthrough
CT: control target
= control target key end

     0   :  { %10 = vsyncpa [#allocation3], 0  ;;  %s6275_s0 = inlined_call_operand.vmem [shape: f32[2,4,10,320], index: 0, kind: input, shape index: {}]   ;;  %s6276_s1 = inlined_call_operand.vmem [shape: f32[27,320], index: 1, kind: input, shape index: {}]   ;;  %s6277_s2 = inlined_call_operand.vmem [shape: f32[1,256], index: 2, kind: input, shape index: {}]   ;;  %s6278_s3 = inlined_call_operand.hbm [shape: bf16[2,4,8,256], index: 3, kind: output, shape index: {0}]   ;;  %s6279_s4 = inlined_call_operand.hbm [shape: f32[2,2,256], index: 4, kind: output, shape index: {1}]  }
   0x1   :  { %12 = vsyncpa [#allocation3 + $0x1], 0 }
   0x2   :  { %13 = vsyncpa [#allocation5], 0 }
   0x3   :  { %15 = vsyncpa [#allocation5 + $0x1], 0  ;;  %s4362_s15 = smov 0   ;;  %s4364_s16 = smov 0  }
   0x4   :  { %s4366_s17 = smov 0   ;;  %s4368_s18 = smov 0  }
   0x5 LB: > { %s4383_s19 = sadd.s32 4294967295, %s4328_s18   ;;  %s3957_s20 = sadd.s32 4294967294, %s4328_s18   ;;  %s4328_s18 = sphi %s4368_s18, %s6285_s18   ;;  %s4324_s17 = sphi %s4366_s17, %s6284_s17   ;;  %s4320_s16 = sphi %s4364_s16, %s6283_s16   ;;  %s4316_s15 = sphi %s4362_s15, %s6282_s15  }
   0x6   : > { %s4387_s21 = sadd.s32 1, %s4328_s18   ;;  %s96_s22 = sadd.s32 1, %s4324_s17 }
   0x7   : > { %s93_s23 = ssub.s32 %s4328_s18, %s4387_s21  ;;  %p106_p0 = scmp.ne.s32.totalorder %s4324_s17, %s4320_s16 }
   0x8   : > { %p94_p1 = scmp.eq.s32.totalorder %s93_s23, 0  ;;  %p107_p2 = scmp.eq.s32.totalorder %s4383_s19, 1 }
   0x9   : > { %p112_p3 = scmp.ne.s32.totalorder %s4320_s16, %s4316_s15  ;;  %p113_p4 = scmp.eq.s32.totalorder %s3957_s20, 1 }
   0xa   : > { %s4398_s24 = scalar_select %p94_p1, %s4324_s17, %s96_s22  }
   0xb   : > { %p4400_p5 = por %p107_p2, %p106_p0  ;;  %p4404_p6 = por %p113_p4, %p112_p3 }
   0xc   : > { %p3960_p7 = scmp.ge.s32.totalorder %s4328_s18, 1  ;;  %p171_p8 = scmp.lt.s32.totalorder %s4328_s18, 3 }
   0xe   : > { %p172_p9 = pnand %p3960_p7, %p171_p8 }
   0xf   : > { %p202_p10 = scmp.lt.s32.totalorder (!%p172_p9), %s4383_s19, 1  ;;  %s4330_s13 = smov (!%p172_p9), 96  }
  0x10   : > { %175 = sbr.rel (%p172_p9) target bundleno = 518 (0x206), region = 32  ;;  %s4331_s8 = smov (!%p172_p9), 64  }
  0x11   : > { %s4332_s30 = smov (!%p172_p9), [#allocation2]  }
  0x15   : > { %v217_v0 = vlaneseq  ;;  %v4414_v1 = vld [vmem:[%s6276_s1 + $0x1a] ss:$8 sm:$0x7]  ;;  %v4419_v2 = vld [vmem:[%s6276_s1 + $0x1d] ss:$8 sm:$0x7] }
  0x16   : > { %s203_s5 = scalar_select %p202_p10, %s4383_s19, 1  ;;  %v4428_v4 = vld [vmem:[%s6276_s1 + $0x30] ss:$8 sm:$0x7]  ;;  %vm300_vm0 = vcmask 1046528   ;;  %vm422_vm1 = vcmask 1045504  }
  0x17   : > { %v4423_v3 = vshrl.u32 %v217_v0, 7  ;;  %v4433_v5 = vld [vmem:[%s6276_s1 + $0x33] ss:$8 sm:$0x7]  ;;  %vm846_vm2 = vcmask 785408   ;;  %vm862_vm3 = vcmask 523264  }
  0x18   : > { %v4438_v6 = vld [vmem:[%s6276_s1 + $0x36] ss:$8 sm:$0x7]  ;;  %s4121_s12 = smul.u32 192, %s203_s5  ;;  %s4242_s5 = sshll.u32 %s4332_s30, 4  ;;  %s4243_s5 = int_to_ptr.vmem [resolvable:$false] %s4242_s5 }
  0x19   : > { %v4441_v7 = vsub.s32 0, %v4423_v3  ;;  %v4444_v8 = vsub.s32 2, %v4423_v3  ;;  %v4449_v9 = vld [vmem:[%s6276_s1 + $0x49] ss:$8 sm:$0x7]  ;;  %v4452_v10 = vsub.s32 1, %v4423_v3 }
  0x1a   : > { %s4457_s23 = scalar_lea.vmem %s6275_s0, %s4121_s12  ;;  %v4530_v63 = vld [vmem:[%s6276_s1 + $0x1b] ss:$8 sm:$0x7]  ;;  %s5948_s12 = sand.u32 1, %s4320_s16  }
  0x1b   : > { %v245_v11 = vrot.slane %v4414_v1, %v4444_v8  ;;  %v325_v12 = vrot.slane %v4419_v2, %v4444_v8  ;;  %v447_v13 = vrot.slane %v4428_v4, %v4444_v8  ;;  %v561_v14 = vrot.slane %v4433_v5, %v4444_v8  ;;  %v4468_v15 = vld [vmem:[%s4457_s23 + $0x10] sm:$0xff]  ;;  %v4471_v16 = vld [vmem:[%s4457_s23 + $0x28] sm:$0x3]  ;;  %v4474_v17 = vld [vmem:[%s4457_s23 + $0x40] sm:$0xff]  ;;  %s3961_s14 = sshll.u32 %s5948_s12, 5  ;;  %s3831_s28 = scalar_lea.sflag [#allocation3], %s5948_s12 }
  0x1c   : > { %v640_v18 = vrot.slane %v4438_v6, %v4444_v8  ;;  %v761_v19 = vrot.slane %v4449_v9, %v4444_v8  ;;  %v237_v20 = vrot.slane %v4414_v1, %v4441_v7  ;;  %v317_v21 = vrot.slane %v4419_v2, %v4441_v7  ;;  %v4489_v26 = vld [vmem:[%s4457_s23 + $0x58] sm:$0x3]  ;;  %v4496_v31 = vld [vmem:[%s4457_s23] sm:$0xff]  ;;  %v4509_v49 = vld [vmem:[%s4457_s23 + $0x30] sm:$0xff]  ;;  %s5977_s20 = scalar_lea.vmem [#allocation2], %s3961_s14  ;;  %s4244_s6 = scalar_lea.vmem %s4243_s5, 1024 }
  0x1d   : > { %v251_v22 = vmul.f32 %v245_v11, %v4468_v15  ;;  %v331_v23 = vmul.f32 %v325_v12, %v4468_v15  ;;  %v334_v24 = vmul.f32 %v325_v12, %v4471_v16  ;;  %v453_v25 = vmul.f32 %v447_v13, %v4468_v15  ;;  %v4501_v40 = vld [vmem:[%s4457_s23 + $0x18] sm:$0x3]  ;;  %v4515_v53 = vld [vmem:[%s4457_s23 + $0x48] sm:$0x3]  ;;  %s3849_s11 = sshll.u32 %s5977_s20, 4  ;;  %s6208_s11 = int_to_ptr.vmem [resolvable:$true] %s3849_s11 }
  0x1e   : > { %v456_v27 = vmul.f32 %v447_v13, %v4471_v16  ;;  %v567_v28 = vmul.f32 %v4474_v17, %v561_v14  ;;  %v646_v29 = vmul.f32 %v4474_v17, %v640_v18  ;;  %v649_v30 = vmul.f32 %v4489_v26, %v640_v18  ;;  %v4538_v18 = vld [vmem:[%s6276_s1 + $0x1e] ss:$8 sm:$0x7]  ;;  %s4238_s29 = scalar_lea.vmem %s6208_s11, 512  ;;  %p4245_p0 = scmp.lt.s32.totalorder %s6208_s11, %s4243_s5 }
  0x1f   : > { %v347_v32 = vrot.slane %v331_v23, 1  ;;  %v348_v33 = vrot.slane %v334_v24, 1  ;;  %v469_v34 = vrot.slane %v453_v25, 2  ;;  %v767_v35 = vmul.f32 %v4474_v17, %v761_v19  ;;  %v4550_v24 = vld [vmem:[%s6276_s1 + $0x34] ss:$8 sm:$0x7]  ;;  %p4239_p11 = scmp.ne.s32.totalorder %s6208_s11, %s4238_s29  ;;  %p4246_p1 = scmp.lt.s32.totalorder %s4244_s6, %s4238_s29 }
  0x20   : > { %v470_v36 = vrot.slane %v456_v27, 2  ;;  %v662_v37 = vrot.slane %v646_v29, 1  ;;  %v663_v38 = vrot.slane %v649_v30, 1  ;;  %v770_v39 = vmul.f32 %v4489_v26, %v761_v19  ;;  %v4543_v19 = vld [vmem:[%s6276_s1 + $0x31] ss:$8 sm:$0x7] }
  0x21   : > { %v349_v41 = vsel %vm300_vm0, %v347_v32, %v348_v33  ;;  %v783_v42 = vrot.slane %v767_v35, 2  ;;  %v249_v43 = vmul.f32 %v237_v20, %v4496_v31  ;;  %v329_v44 = vmul.f32 %v317_v21, %v4496_v31  ;;  %v212_v30 = vld [vmem:[%s4457_s23 + $0x20] sm:$0x3]  ;;  %v4555_v35 = vld [vmem:[%s4457_s23 + $0x8] sm:$0xff]  ;;  %p4240_p12 = pnand %p4239_p11, %p4400_p5  ;;  %p4247_p2 = por %p4246_p1, %p4245_p0 }
  0x22   : > { %v355_v45 = vadd.f32 %v349_v41, %v251_v22  ;;  %v471_v46 = vsel %vm422_vm1, %v469_v34, %v470_v36  ;;  %v664_v47 = vsel %vm300_vm0, %v662_v37, %v663_v38  ;;  %v784_v48 = vrot.slane %v770_v39, 2  ;;  %v4562_v37 = vld [vmem:[%s6276_s1 + $0x37] ss:$8 sm:$0x7] }
  0x23   : > { %v332_v50 = vmul.f32 %v317_v21, %v4501_v40  ;;  %v341_v51 = vrot.slane %v329_v44, 1  ;;  %v439_v52 = vrot.slane %v4428_v4, %v4441_v7  ;;  %v553_v54 = vrot.slane %v4433_v5, %v4441_v7  ;;  %v4573_v44 = vld [vmem:[%s6276_s1 + $0x4a] ss:$8 sm:$0x7]  ;;  %p4241_p13 = pneg %p4240_p12 }
  0x24   : > { %v477_v55 = vadd.f32 %v471_v46, %v355_v45  ;;  %v785_v56 = vsel %vm422_vm1, %v783_v42, %v784_v48  ;;  %v632_v57 = vrot.slane %v4438_v6, %v4441_v7  ;;  %v753_v58 = vrot.slane %v4449_v9, %v4441_v7 }
  0x25   : > { %v342_v59 = vrot.slane %v332_v50, 1  ;;  %v451_v60 = vmul.f32 %v439_v52, %v4496_v31  ;;  %v454_v61 = vmul.f32 %v439_v52, %v4501_v40  ;;  %v565_v62 = vmul.f32 %v4509_v49, %v553_v54  ;;  %v4584_v54 = vld [vmem:[%s4457_s23 + $0x50] sm:$0x3]  ;;  %p4248_p3 = pnand %p4247_p2, %p4241_p13 }
  0x26   : > { %v570_v11 = vadd.f32 %v567_v28, %v477_v55  ;;  %v644_v12 = vmul.f32 %v4509_v49, %v632_v57  ;;  %v647_v13 = vmul.f32 %v4515_v53, %v632_v57  ;;  %v765_v14 = vmul.f32 %v4509_v49, %v753_v58 }
  0x27   : > { %v343_v20 = vsel %vm300_vm0, %v341_v51, %v342_v59  ;;  %v463_v21 = vrot.slane %v451_v60, 2  ;;  %v464_v22 = vrot.slane %v454_v61, 2  ;;  %v768_v23 = vmul.f32 %v4515_v53, %v753_v58 }
  0x28   : > { %v670_v25 = vadd.f32 %v664_v47, %v570_v11  ;;  %v353_v27 = vadd.f32 %v343_v20, %v249_v43  ;;  %v656_v28 = vrot.slane %v644_v12, 1  ;;  %v657_v29 = vrot.slane %v647_v13, 1  ;;  %v4568_v43 = vld [vmem:[%s4457_s23 + $0x38] sm:$0xff] }
  0x29   : > { %v465_v32 = vsel %vm422_vm1, %v463_v21, %v464_v22  ;;  %v777_v33 = vrot.slane %v765_v14, 2  ;;  %v778_v34 = vrot.slane %v768_v23, 2  ;;  %v265_v36 = vrot.slane %v4530_v63, %v4452_v10 }
  0x2a   : > { %v791_v38 = vadd.f32 %v785_v56, %v670_v25  ;;  %v475_v39 = vadd.f32 %v465_v32, %v353_v27  ;;  %v658_v41 = vsel %vm300_vm0, %v656_v28, %v657_v29  ;;  %v366_v42 = vrot.slane %v4538_v18, %v4452_v10 }
  0x2b   : > { %v779_v45 = vsel %vm422_vm1, %v777_v33, %v778_v34  ;;  %v274_v46 = vmul.f32 %v265_v36, %v4555_v35  ;;  %v488_v47 = vrot.slane %v4543_v19, %v4452_v10  ;;  %v581_v48 = vrot.slane %v4550_v24, %v4452_v10 }
  0x2c   : > { %844 = vrot.lane.b32.xlu1 %v791_v38, %s4330_s13  ;;  %v568_v50 = vadd.f32 %v565_v62, %v475_v39  ;;  %v375_v51 = vmul.f32 %v366_v42, %v4555_v35  ;;  %v378_v52 = vmul.f32 %v366_v42, %v212_v30  ;;  %v681_v55 = vrot.slane %v4562_v37, %v4452_v10 }
  0x2d   : > { %v497_v56 = vmul.f32 %v488_v47, %v4555_v35  ;;  %v500_v57 = vmul.f32 %v488_v47, %v212_v30  ;;  %v590_v58 = vmul.f32 %v4568_v43, %v581_v48  ;;  %v802_v59 = vrot.slane %v4573_v44, %v4452_v10 }
  0x2e   : > { %v668_v60 = vadd.f32 %v658_v41, %v568_v50  ;;  %v389_v61 = vrot.slane %v375_v51, 1  ;;  %v390_v11 = vrot.slane %v378_v52, 1  ;;  %v690_v62 = vmul.f32 %v4568_v43, %v681_v55 }
  0x2f   : > { %v511_v12 = vrot.slane %v497_v56, 2  ;;  %v512_v13 = vrot.slane %v500_v57, 2  ;;  %v693_v14 = vmul.f32 %v4584_v54, %v681_v55  ;;  %v811_v20 = vmul.f32 %v4568_v43, %v802_v59  ;;  %v4625_v57 = vld [vmem:[%s6276_s1 + $0x4] ss:$8 sm:$0x7] }
  0x30   : > { %v789_v21 = vadd.f32 %v779_v45, %v668_v60  ;;  %v391_v22 = vsel %vm300_vm0, %v389_v61, %v390_v11  ;;  %v704_v23 = vrot.slane %v690_v62, 1  ;;  %v814_v25 = vmul.f32 %v4584_v54, %v802_v59  ;;  %v4632_v61 = vld [vmem:[%s6276_s1 + $0x7] ss:$8 sm:$0x7] }
  0x31   : > { %v399_v27 = vadd.f32 %v391_v22, %v274_v46  ;;  %v513_v28 = vsel %vm422_vm1, %v511_v12, %v512_v13  ;;  %v705_v29 = vrot.slane %v693_v14, 1  ;;  %v825_v32 = vrot.slane %v811_v20, 2  ;;  %v4640_v14 = vld [vmem:[%s6276_s1 + $0x1a] ss:$8 sm:$0x7] }
  0x32   : > { %840 = vrot.lane.b32.xlu0 %v789_v21, %s4330_s13  ;;  %v826_v33 = vrot.slane %v814_v25, 2  ;;  %v241_v34 = vrot.slane %v4414_v1, %v4452_v10  ;;  %v321_v36 = vrot.slane %v4419_v2, %v4452_v10  ;;  %v443_v38 = vrot.slane %v4428_v4, %v4452_v10  ;;  %v4650_v25 = vld [vmem:[%s6276_s1 + $0x1d] ss:$8 sm:$0x7] }
  0x33   : > { %v521_v39 = vadd.f32 %v513_v28, %v399_v27  ;;  %v706_v41 = vsel %vm300_vm0, %v704_v23, %v705_v29  ;;  %v557_v42 = vrot.slane %v4433_v5, %v4452_v10  ;;  %v636_v45 = vrot.slane %v4438_v6, %v4452_v10  ;;  %v4618_v5 = vld [vmem:[%s6276_s1 + $0x1] ss:$8 sm:$0x7]  ;;  %v4645_v23 = vld [vmem:[%s4457_s23 + $0x18] sm:$0x3] }
  0x34   : > { %v827_v46 = vsel %vm422_vm1, %v825_v32, %v826_v33  ;;  %v250_v47 = vmul.f32 %v241_v34, %v4555_v35  ;;  %v330_v1 = vmul.f32 %v321_v36, %v4555_v35  ;;  %v333_v48 = vmul.f32 %v321_v36, %v212_v30 }
  0x35   : > { %v593_v2 = vadd.f32 %v590_v58, %v521_v39  ;;  %v452_v50 = vmul.f32 %v443_v38, %v4555_v35  ;;  %v455_v4 = vmul.f32 %v443_v38, %v212_v30  ;;  %v566_v51 = vmul.f32 %v4568_v43, %v557_v42  ;;  %v4665_v42 = vld [vmem:[%s4457_s23 + $0x48] sm:$0x3] }
  0x36   : > { %v344_v52 = vrot.slane %v330_v1, 1  ;;  %v345_v6 = vrot.slane %v333_v48, 1  ;;  %v645_v55 = vmul.f32 %v4568_v43, %v636_v45  ;;  %v648_v56 = vmul.f32 %v4584_v54, %v636_v45 }
  0x37   : > { %v714_v30 = vadd.f32 %v706_v41, %v593_v2  ;;  %v466_v58 = vrot.slane %v452_v50, 2  ;;  %v467_v59 = vrot.slane %v455_v4, 2  ;;  %v757_v60 = vrot.slane %v4449_v9, %v4452_v10  ;;  %v4675_v2 = vld [vmem:[%s6276_s1 + $0x30] ss:$8 sm:$0x7] }
  0x38   : > { %v346_v11 = vsel %vm300_vm0, %v344_v52, %v345_v6  ;;  %v659_v62 = vrot.slane %v645_v55, 1  ;;  %v660_v12 = vrot.slane %v648_v56, 1  ;;  %v1001_v13 = vrot.slane %v4618_v5, %v4441_v7  ;;  %v4680_v50 = vld [vmem:[%s6276_s1 + $0x33] ss:$8 sm:$0x7] }
  0x39   : > { %v835_v20 = vadd.f32 %v827_v46, %v714_v30  ;;  %v354_v21 = vadd.f32 %v346_v11, %v250_v47  ;;  %v468_v9 = vsel %vm422_vm1, %v466_v58, %v467_v59  ;;  %v766_v22 = vmul.f32 %v4568_v43, %v757_v60  ;;  %v4686_v59 = vld [vmem:[%s4457_s23 + $0x60] sm:$0xff] }
  0x3a   : > { %v661_v27 = vsel %vm300_vm0, %v659_v62, %v660_v12  ;;  %v769_v28 = vmul.f32 %v4584_v54, %v757_v60  ;;  %v1013_v29 = vmul.f32 %v1001_v13, %v4496_v31  ;;  %v1080_v32 = vrot.slane %v4625_v57, %v4441_v7  ;;  %v4691_v60 = vld [vmem:[%s6276_s1 + $0x36] ss:$8 sm:$0x7] }
  0x3b   : > { %858 = vrot.lane.b32.xlu1 %v835_v20, %s4331_s8  ;;  %v476_v33 = vadd.f32 %v468_v9, %v354_v21  ;;  %v780_v34 = vrot.slane %v766_v22, 2  ;;  %v1201_v36 = vrot.slane %v4632_v61, %v4441_v7  ;;  %v1312_v38 = vrot.slane %v4640_v14, %v4441_v7  ;;  %v4701_v20 = vld [vmem:[%s6276_s1 + $0x49] ss:$8 sm:$0x7] }
  0x3c   : > { %v781_v39 = vrot.slane %v769_v28, 2  ;;  %v1092_v41 = vmul.f32 %v1080_v32, %v4496_v31  ;;  %v1095_v54 = vmul.f32 %v1080_v32, %v4645_v23  ;;  %v1388_v45 = vrot.slane %v4650_v25, %v4441_v7  ;;  %v4705_v28 = vld [vmem:[%s4457_s23 + $0x78] sm:$0x3] }
  0x3d   : > { %v569_v46 = vadd.f32 %v566_v51, %v476_v33  ;;  %v1213_v47 = vmul.f32 %v1201_v36, %v4496_v31  ;;  %v1216_v1 = vmul.f32 %v1201_v36, %v4645_v23  ;;  %v1324_v48 = vmul.f32 %v4509_v49, %v1312_v38 }
  0x3e   : > { %v782_v4 = vsel %vm422_vm1, %v780_v34, %v781_v39  ;;  %v1104_v52 = vrot.slane %v1092_v41, 1  ;;  %v1105_v51 = vrot.slane %v1095_v54, 1  ;;  %v1400_v6 = vmul.f32 %v4509_v49, %v1388_v45 }
  0x3f   : > { %v669_v55 = vadd.f32 %v661_v27, %v569_v46  ;;  %v1225_v56 = vrot.slane %v1213_v47, 2  ;;  %v1226_v30 = vrot.slane %v1216_v1, 2  ;;  %v1403_v58 = vmul.f32 %v4665_v42, %v1388_v45 }
  0x40   : > { %v1106_v11 = vsel %vm300_vm0, %v1104_v52, %v1105_v51  ;;  %v1412_v62 = vrot.slane %v1400_v6, 1  ;;  %v1506_v12 = vrot.slane %v4675_v2, %v4441_v7  ;;  %v1617_v13 = vrot.slane %v4680_v50, %v4441_v7 }
  0x41   : > { %v790_v21 = vadd.f32 %v782_v4, %v669_v55  ;;  %v1116_v9 = vadd.f32 %v1106_v11, %v1013_v29  ;;  %v1227_v22 = vsel %vm422_vm1, %v1225_v56, %v1226_v30  ;;  %v1413_v27 = vrot.slane %v1403_v58, 1 }
  0x42   : > { %v1518_v32 = vmul.f32 %v4509_v49, %v1506_v12  ;;  %v1521_v33 = vmul.f32 %v4665_v42, %v1506_v12  ;;  %v1629_v34 = vmul.f32 %v4686_v59, %v1617_v13  ;;  %v1693_v36 = vrot.slane %v4691_v60, %v4441_v7 }
  0x43   : > { %842 = vrot.lane.b32.xlu0 %v790_v21, %s4330_s13  ;;  %v1237_v38 = vadd.f32 %v1227_v22, %v1116_v9  ;;  %v1414_v39 = vsel %vm300_vm0, %v1412_v62, %v1413_v27  ;;  %v1811_v29 = vrot.slane %v4701_v20, %v4441_v7  ;;  %v261_v41 = vrot.slane %v4530_v63, %v4441_v7 }
  0x44   : > { %v1530_v54 = vrot.slane %v1518_v32, 2  ;;  %v1531_v45 = vrot.slane %v1521_v33, 2  ;;  %v1705_v46 = vmul.f32 %v4686_v59, %v1693_v36  ;;  %v1708_v47 = vmul.f32 %v4705_v28, %v1693_v36 }
  0x45   : > { %v1327_v1 = vadd.f32 %v1324_v48, %v1237_v38  ;;  %v1823_v4 = vmul.f32 %v4686_v59, %v1811_v29  ;;  %v1826_v52 = vmul.f32 %v4705_v28, %v1811_v29  ;;  %v273_v51 = vmul.f32 %v261_v41, %v4496_v31 }
  0x46   : > { %v1532_v6 = vsel %vm422_vm1, %v1530_v54, %v1531_v45  ;;  %v1717_v55 = vrot.slane %v1705_v46, 1  ;;  %v1718_v56 = vrot.slane %v1708_v47, 1  ;;  %v362_v30 = vrot.slane %v4538_v18, %v4441_v7 }
  0x47   : > { %v1424_v58 = vadd.f32 %v1414_v39, %v1327_v1  ;;  %v1835_v11 = vrot.slane %v1823_v4, 2  ;;  %v1836_v62 = vrot.slane %v1826_v52, 2  ;;  %v484_v12 = vrot.slane %v4543_v19, %v4441_v7 }
  0x48   : > { %v1719_v48 = vsel %vm300_vm0, %v1717_v55, %v1718_v56  ;;  %v374_v13 = vmul.f32 %v362_v30, %v4496_v31  ;;  %v377_v21 = vmul.f32 %v362_v30, %v4501_v40  ;;  %v577_v9 = vrot.slane %v4550_v24, %v4441_v7 }
  0x49   : > { %v1542_v22 = vadd.f32 %v1532_v6, %v1424_v58  ;;  %v1837_v27 = vsel %vm422_vm1, %v1835_v11, %v1836_v62  ;;  %v496_v32 = vmul.f32 %v484_v12, %v4496_v31  ;;  %v499_v33 = vmul.f32 %v484_v12, %v4501_v40  ;;  %v4750_v11 = vld [vmem:[%s4457_s23 + $0x28] sm:$0x3] }
  0x4a   : > { %v386_v36 = vrot.slane %v374_v13, 1  ;;  %v387_v38 = vrot.slane %v377_v21, 1  ;;  %v589_v39 = vmul.f32 %v4509_v49, %v577_v9  ;;  %v677_v29 = vrot.slane %v4562_v37, %v4441_v7 }
  0x4b   : > { %v1632_v41 = vadd.f32 %v1629_v34, %v1542_v22  ;;  %v508_v54 = vrot.slane %v496_v32, 2  ;;  %v509_v45 = vrot.slane %v499_v33, 2  ;;  %v798_v46 = vrot.slane %v4573_v44, %v4441_v7 }
  0x4c   : > { %v388_v47 = vsel %vm300_vm0, %v386_v36, %v387_v38  ;;  %v689_v1 = vmul.f32 %v4509_v49, %v677_v29  ;;  %v692_v40 = vmul.f32 %v4515_v53, %v677_v29  ;;  %v1009_v4 = vrot.slane %v4618_v5, %v4444_v8  ;;  %v4764_v36 = vld [vmem:[%s4457_s23 + $0x58] sm:$0x3] }
  0x4d   : > { %v1729_v52 = vadd.f32 %v1719_v48, %v1632_v41  ;;  %v398_v6 = vadd.f32 %v388_v47, %v273_v51  ;;  %v510_v55 = vsel %vm422_vm1, %v508_v54, %v509_v45  ;;  %v810_v34 = vmul.f32 %v4509_v49, %v798_v46 }
  0x4e   : > { %v701_v56 = vrot.slane %v689_v1, 1  ;;  %v702_v30 = vrot.slane %v692_v40, 1  ;;  %v813_v58 = vmul.f32 %v4515_v53, %v798_v46  ;;  %v1015_v62 = vmul.f32 %v1009_v4, %v4468_v15 }
  0x4f   : > { %v1847_v12 = vadd.f32 %v1837_v27, %v1729_v52  ;;  %v520_v13 = vadd.f32 %v510_v55, %v398_v6  ;;  %v822_v21 = vrot.slane %v810_v34, 2  ;;  %v1088_v48 = vrot.slane %v4625_v57, %v4444_v8  ;;  %v4777_v55 = vld [vmem:[%s4457_s23 + $0x70] sm:$0xff] }
  0x50   : > { %v703_v51 = vsel %vm300_vm0, %v701_v56, %v702_v30  ;;  %v823_v9 = vrot.slane %v813_v58, 2  ;;  %v1209_v22 = vrot.slane %v4632_v61, %v4444_v8  ;;  %v1320_v32 = vrot.slane %v4640_v14, %v4444_v8 }
  0x51   : > { %1897 = vrot.lane.b32.xlu1 %v1847_v12, %s4330_s13  ;;  %v592_v53 = vadd.f32 %v589_v39, %v520_v13  ;;  %v1094_v33 = vmul.f32 %v1088_v48, %v4468_v15  ;;  %v1097_v27 = vmul.f32 %v1088_v48, %v4750_v11  ;;  %v1396_v38 = vrot.slane %v4650_v25, %v4444_v8 }
  0x52   : > { %v824_v29 = vsel %vm422_vm1, %v822_v21, %v823_v9  ;;  %v1215_v41 = vmul.f32 %v1209_v22, %v4468_v15  ;;  %v1218_v54 = vmul.f32 %v1209_v22, %v4750_v11  ;;  %v1326_v45 = vmul.f32 %v4474_v17, %v1320_v32 }
  0x53   : > { %v713_v46 = vadd.f32 %v703_v51, %v592_v53  ;;  %v1110_v39 = vrot.slane %v1094_v33, 1  ;;  %v1111_v47 = vrot.slane %v1097_v27, 1  ;;  %v1402_v1 = vmul.f32 %v4474_v17, %v1396_v38  ;;  %v4785_v51 = vld [vmem:[%s4457_s23 + $0x88] sm:$0x3] }
  0x54   : > { %v1231_v40 = vrot.slane %v1215_v41, 2  ;;  %v1232_v4 = vrot.slane %v1218_v54, 2  ;;  %v1405_v52 = vmul.f32 %v4764_v36, %v1396_v38  ;;  %v1514_v6 = vrot.slane %v4675_v2, %v4444_v8 }
  0x55   : > { %v834_v34 = vadd.f32 %v824_v29, %v713_v46  ;;  %v1112_v56 = vsel %vm300_vm0, %v1110_v39, %v1111_v47  ;;  %v1418_v30 = vrot.slane %v1402_v1, 1  ;;  %v1625_v58 = vrot.slane %v4680_v50, %v4444_v8 }
  0x56   : > { %v1118_v12 = vadd.f32 %v1112_v56, %v1015_v62  ;;  %v1233_v13 = vsel %vm422_vm1, %v1231_v40, %v1232_v4  ;;  %v1419_v21 = vrot.slane %v1405_v52, 1  ;;  %v1520_v48 = vmul.f32 %v4474_v17, %v1514_v6 }
  0x57   : > { %856 = vrot.lane.b32.xlu0 %v834_v34, %s4331_s8  ;;  %v1523_v9 = vmul.f32 %v4764_v36, %v1514_v6  ;;  %v1631_v22 = vmul.f32 %v4777_v55, %v1625_v58  ;;  %v1701_v32 = vrot.slane %v4691_v60, %v4444_v8  ;;  %v1819_v53 = vrot.slane %v4701_v20, %v4444_v8 }
  0x58   : > { %v1239_v62 = vadd.f32 %v1233_v13, %v1118_v12  ;;  %v1420_v33 = vsel %vm300_vm0, %v1418_v30, %v1419_v21  ;;  %v1536_v27 = vrot.slane %v1520_v48, 2  ;;  %v269_v38 = vrot.slane %v4530_v63, %v4444_v8 }
  0x59   : > { %v1537_v29 = vrot.slane %v1523_v9, 2  ;;  %v1707_v41 = vmul.f32 %v4777_v55, %v1701_v32  ;;  %v1710_v54 = vmul.f32 %v4785_v51, %v1701_v32  ;;  %v1825_v46 = vmul.f32 %v4777_v55, %v1819_v53 }
  0x5a   : > { %v1329_v39 = vadd.f32 %v1326_v45, %v1239_v62  ;;  %v1828_v47 = vmul.f32 %v4785_v51, %v1819_v53  ;;  %v275_v1 = vmul.f32 %v269_v38, %v4468_v15  ;;  %v370_v40 = vrot.slane %v4538_v18, %v4444_v8 }
  0x5b   : > { %v1538_v4 = vsel %vm422_vm1, %v1536_v27, %v1537_v29  ;;  %v1723_v52 = vrot.slane %v1707_v41, 1  ;;  %v1724_v6 = vrot.slane %v1710_v54, 1  ;;  %v1841_v63 = vrot.slane %v1825_v46, 2  ;;  %v4836_v41 = vld [vmem:[%s6276_s1 + $0x18] ss:$8 sm:$0x7] }
  0x5c   : > { %v1426_v34 = vadd.f32 %v1420_v33, %v1329_v39  ;;  %v1842_v56 = vrot.slane %v1828_v47, 2  ;;  %v376_v30 = vmul.f32 %v370_v40, %v4468_v15  ;;  %v379_v58 = vmul.f32 %v370_v40, %v4471_v16 }
  0x5d   : > { %v1725_v45 = vsel %vm300_vm0, %v1723_v52, %v1724_v6  ;;  %v492_v12 = vrot.slane %v4543_v19, %v4444_v8  ;;  %v585_v13 = vrot.slane %v4550_v24, %v4444_v8  ;;  %v685_v18 = vrot.slane %v4562_v37, %v4444_v8  ;;  %v4822_v19 = vld [vmem:[%s6276_s1 + $0x2] ss:$8 sm:$0x7] }
  0x5e   : > { %v1544_v21 = vadd.f32 %v1538_v4, %v1426_v34  ;;  %v1843_v48 = vsel %vm422_vm1, %v1841_v63, %v1842_v56  ;;  %v392_v9 = vrot.slane %v376_v30, 1  ;;  %v393_v32 = vrot.slane %v379_v58, 1  ;;  %v4850_v34 = vld [vmem:[%s6276_s1 + $0x1b] ss:$8 sm:$0x7] }
  0x5f   : > { %v498_v53 = vmul.f32 %v492_v12, %v4468_v15  ;;  %v501_v62 = vmul.f32 %v492_v12, %v4471_v16  ;;  %v591_v33 = vmul.f32 %v4474_v17, %v585_v13  ;;  %v691_v27 = vmul.f32 %v4474_v17, %v685_v18  ;;  %v4831_v16 = vld [vmem:[%s6276_s1 + $0x5] ss:$8 sm:$0x7] }
  0x60   : > { %v1634_v24 = vadd.f32 %v1631_v22, %v1544_v21  ;;  %v394_v37 = vsel %vm300_vm0, %v392_v9, %v393_v32  ;;  %v694_v38 = vmul.f32 %v4489_v26, %v685_v18  ;;  %v806_v29 = vrot.slane %v4573_v44, %v4444_v8 }
  0x61   : > { %v400_v54 = vadd.f32 %v394_v37, %v275_v1  ;;  %v514_v46 = vrot.slane %v498_v53, 2  ;;  %v515_v22 = vrot.slane %v501_v62, 2  ;;  %v707_v39 = vrot.slane %v691_v27, 1  ;;  %v4869_v62 = vld [vmem:[%s6276_s1 + $0x31] ss:$8 sm:$0x7] }
  0x62   : > { %v1731_v47 = vadd.f32 %v1725_v45, %v1634_v24  ;;  %v708_v40 = vrot.slane %v694_v38, 1  ;;  %v812_v4 = vmul.f32 %v4474_v17, %v806_v29  ;;  %v815_v44 = vmul.f32 %v4489_v26, %v806_v29  ;;  %v4856_v45 = vld [vmem:[%s6276_s1 + $0x1e] ss:$8 sm:$0x7] }
  0x63   : > { %v516_v52 = vsel %vm422_vm1, %v514_v46, %v515_v22  ;;  %v1025_v6 = vrot.slane %v4822_v19, %v4441_v7  ;;  %v1125_v63 = vrot.slane %v4831_v16, %v4441_v7  ;;  %v1246_v1 = vrot.slane %v4836_v41, %v4441_v7 }
  0x64   : > { %v1849_v56 = vadd.f32 %v1843_v48, %v1731_v47  ;;  %v522_v30 = vadd.f32 %v516_v52, %v400_v54  ;;  %v709_v26 = vsel %vm300_vm0, %v707_v39, %v708_v40  ;;  %v828_v58 = vrot.slane %v812_v4, 2  ;;  %v4888_v40 = vld [vmem:[%s6276_s1 + $0x37] ss:$8 sm:$0x7] }
  0x65   : > { %v829_v12 = vrot.slane %v815_v44, 2  ;;  %v1037_v13 = vmul.f32 %v1025_v6, %v4496_v31  ;;  %v1137_v18 = vmul.f32 %v1125_v63, %v4496_v31  ;;  %v1140_v21 = vmul.f32 %v1125_v63, %v4645_v23  ;;  %v4893_v4 = vld [vmem:[%s6276_s1 + $0x4a] ss:$8 sm:$0x7] }
  0x66   : > { %1901 = vrot.lane.b32.xlu1 %v1849_v56, %s4330_s13  ;;  %v594_v9 = vadd.f32 %v591_v33, %v522_v30  ;;  %v1258_v48 = vmul.f32 %v1246_v1, %v4496_v31  ;;  %v1261_v32 = vmul.f32 %v1246_v1, %v4645_v23  ;;  %v1335_v53 = vrot.slane %v4850_v34, %v4441_v7  ;;  %v4877_v31 = vld [vmem:[%s6276_s1 + $0x34] ss:$8 sm:$0x7] }
  0x67   : > { %v830_v27 = vsel %vm422_vm1, %v828_v58, %v829_v12  ;;  %v1149_v24 = vrot.slane %v1137_v18, 1  ;;  %v1150_v37 = vrot.slane %v1140_v21, 1  ;;  %v1432_v38 = vrot.slane %v4856_v45, %v4441_v7 }
  0x68   : > { %v715_v23 = vadd.f32 %v709_v26, %v594_v9  ;;  %v1270_v33 = vrot.slane %v1258_v48, 2  ;;  %v1271_v29 = vrot.slane %v1261_v32, 2  ;;  %v1347_v54 = vmul.f32 %v4509_v49, %v1335_v53 }
  0x69   : > { %v1151_v46 = vsel %vm300_vm0, %v1149_v24, %v1150_v37  ;;  %v1444_v22 = vmul.f32 %v4509_v49, %v1432_v38  ;;  %v1447_v39 = vmul.f32 %v4665_v42, %v1432_v38  ;;  %v1550_v47 = vrot.slane %v4869_v62, %v4441_v7  ;;  %v4913_v24 = vld [vmem:[%s4457_s23 + $0x20] sm:$0x3] }
  0x6a   : > { %v836_v44 = vadd.f32 %v830_v27, %v715_v23  ;;  %v1161_v52 = vadd.f32 %v1151_v46, %v1037_v13  ;;  %v1272_v6 = vsel %vm422_vm1, %v1270_v33, %v1271_v29  ;;  %v1640_v63 = vrot.slane %v4877_v31, %v4441_v7 }
  0x6b   : > { %v1456_v1 = vrot.slane %v1444_v22, 1  ;;  %v1457_v56 = vrot.slane %v1447_v39, 1  ;;  %v1562_v30 = vmul.f32 %v4509_v49, %v1550_v47  ;;  %v1565_v26 = vmul.f32 %v4665_v42, %v1550_v47 }
  0x6c   : > { %860 = vrot.lane.b32.xlu0 %v836_v44, %s4331_s8  ;;  %v1282_v58 = vadd.f32 %v1272_v6, %v1161_v52  ;;  %v1652_v12 = vmul.f32 %v4686_v59, %v1640_v63  ;;  %v1737_v13 = vrot.slane %v4888_v40, %v4441_v7  ;;  %v1855_v18 = vrot.slane %v4893_v4, %v4441_v7  ;;  %v4926_v6 = vld [vmem:[%s4457_s23 + $0x50] sm:$0x3] }
  0x6d   : > { %v1458_v21 = vsel %vm300_vm0, %v1456_v1, %v1457_v56  ;;  %v1574_v9 = vrot.slane %v1562_v30, 2  ;;  %v1575_v48 = vrot.slane %v1565_v26, 2  ;;  %v1005_v49 = vrot.slane %v4618_v5, %v4452_v10 }
  0x6e   : > { %v1350_v32 = vadd.f32 %v1347_v54, %v1282_v58  ;;  %v1749_v42 = vmul.f32 %v4686_v59, %v1737_v13  ;;  %v1752_v53 = vmul.f32 %v4705_v28, %v1737_v13  ;;  %v1867_v27 = vmul.f32 %v4686_v59, %v1855_v18 }
  0x6f   : > { %v1576_v37 = vsel %vm422_vm1, %v1574_v9, %v1575_v48  ;;  %v1870_v38 = vmul.f32 %v4705_v28, %v1855_v18  ;;  %v1014_v23 = vmul.f32 %v1005_v49, %v4555_v35  ;;  %v1084_v33 = vrot.slane %v4625_v57, %v4452_v10 }
  0x70   : > { %v1468_v5 = vadd.f32 %v1458_v21, %v1350_v32  ;;  %v1761_v29 = vrot.slane %v1749_v42, 1  ;;  %v1762_v54 = vrot.slane %v1752_v53, 1  ;;  %v1879_v46 = vrot.slane %v1867_v27, 2 }
  0x71   : > { %v1880_v22 = vrot.slane %v1870_v38, 2  ;;  %v1093_v39 = vmul.f32 %v1084_v33, %v4555_v35  ;;  %v1096_v47 = vmul.f32 %v1084_v33, %v4913_v24  ;;  %v1205_v44 = vrot.slane %v4632_v61, %v4452_v10  ;;  %v4947_v38 = vld [vmem:[%s4457_s23 + $0x80] sm:$0x3] }
  0x72   : > { %v1586_v52 = vadd.f32 %v1576_v37, %v1468_v5  ;;  %v1763_v28 = vsel %vm300_vm0, %v1761_v29, %v1762_v54  ;;  %v1316_v57 = vrot.slane %v4640_v14, %v4452_v10  ;;  %v1392_v63 = vrot.slane %v4650_v25, %v4452_v10  ;;  %v4944_v37 = vld [vmem:[%s4457_s23 + $0x68] sm:$0xff] }
  0x73   : > { %v1881_v1 = vsel %vm422_vm1, %v1879_v46, %v1880_v22  ;;  %v1107_v56 = vrot.slane %v1093_v39, 1  ;;  %v1108_v30 = vrot.slane %v1096_v47, 1  ;;  %v1214_v26 = vmul.f32 %v1205_v44, %v4555_v35 }
  0x74   : > { %v1655_v58 = vadd.f32 %v1652_v12, %v1586_v52  ;;  %v1217_v61 = vmul.f32 %v1205_v44, %v4913_v24  ;;  %v1325_v13 = vmul.f32 %v4568_v43, %v1316_v57  ;;  %v1401_v18 = vmul.f32 %v4568_v43, %v1392_v63 }
  0x75   : > { %v1109_v14 = vsel %vm300_vm0, %v1107_v56, %v1108_v30  ;;  %v1228_v21 = vrot.slane %v1214_v26, 2  ;;  %v1404_v25 = vmul.f32 %v4926_v6, %v1392_v63  ;;  %v1510_v9 = vrot.slane %v4675_v2, %v4452_v10 }
  0x76   : > { %v1773_v48 = vadd.f32 %v1763_v28, %v1655_v58  ;;  %v1117_v49 = vadd.f32 %v1109_v14, %v1014_v23  ;;  %v1229_v32 = vrot.slane %v1217_v61, 2  ;;  %v1415_v42 = vrot.slane %v1401_v18, 1 }
  0x77   : > { %v1416_v12 = vrot.slane %v1404_v25, 1  ;;  %v1519_v53 = vmul.f32 %v4568_v43, %v1510_v9  ;;  %v1522_v27 = vmul.f32 %v4926_v6, %v1510_v9  ;;  %v1621_v33 = vrot.slane %v4680_v50, %v4452_v10 }
  0x78   : > { %v1891_v5 = vadd.f32 %v1881_v1, %v1773_v48  ;;  %v1230_v29 = vsel %vm422_vm1, %v1228_v21, %v1229_v32  ;;  %v1697_v2 = vrot.slane %v4691_v60, %v4452_v10  ;;  %v1815_v23 = vrot.slane %v4701_v20, %v4452_v10 }
  0x79   : > { %v1238_v54 = vadd.f32 %v1230_v29, %v1117_v49  ;;  %v1417_v46 = vsel %vm300_vm0, %v1415_v42, %v1416_v12  ;;  %v1533_v22 = vrot.slane %v1519_v53, 2  ;;  %v1534_v39 = vrot.slane %v1522_v27, 2 }
  0x7a   : > { %1912 = vrot.lane.b32.xlu1 %v1891_v5, %s4331_s8  ;;  %v1630_v47 = vmul.f32 %v4944_v37, %v1621_v33  ;;  %v1706_v50 = vmul.f32 %v4944_v37, %v1697_v2  ;;  %v1709_v44 = vmul.f32 %v4947_v38, %v1697_v2  ;;  %v1824_v52 = vmul.f32 %v4944_v37, %v1815_v23 }
  0x7b   : > { %v1328_v28 = vadd.f32 %v1325_v13, %v1238_v54  ;;  %v1535_v60 = vsel %vm422_vm1, %v1533_v22, %v1534_v39  ;;  %v1827_v20 = vmul.f32 %v4947_v38, %v1815_v23  ;;  %v1033_v57 = vrot.slane %v4822_v19, %v4444_v8 }
  0x7c   : > { %v1720_v63 = vrot.slane %v1706_v50, 1  ;;  %v1721_v1 = vrot.slane %v1709_v44, 1  ;;  %v1838_v56 = vrot.slane %v1824_v52, 2  ;;  %v1133_v30 = vrot.slane %v4831_v16, %v4444_v8 }
  0x7d   : > { %v1425_v26 = vadd.f32 %v1417_v46, %v1328_v28  ;;  %v1839_v58 = vrot.slane %v1827_v20, 2  ;;  %v1039_v61 = vmul.f32 %v1033_v57, %v4468_v15  ;;  %v1254_v13 = vrot.slane %v4836_v41, %v4444_v8 }
  0x7e   : > { %v1722_v18 = vsel %vm300_vm0, %v1720_v63, %v1721_v1  ;;  %v1139_v14 = vmul.f32 %v1133_v30, %v4468_v15  ;;  %v1142_v21 = vmul.f32 %v1133_v30, %v4750_v11  ;;  %v1343_v25 = vrot.slane %v4850_v34, %v4444_v8 }
  0x7f   : > { %v1543_v9 = vadd.f32 %v1535_v60, %v1425_v26  ;;  %v1840_v48 = vsel %vm422_vm1, %v1838_v56, %v1839_v58  ;;  %v1260_v49 = vmul.f32 %v1254_v13, %v4468_v15  ;;  %v1263_v32 = vmul.f32 %v1254_v13, %v4750_v11 }
  0x80   : > { %v1155_v42 = vrot.slane %v1139_v14, 1  ;;  %v1156_v12 = vrot.slane %v1142_v21, 1  ;;  %v1349_v53 = vmul.f32 %v4474_v17, %v1343_v25  ;;  %v1440_v27 = vrot.slane %v4856_v45, %v4444_v8 }
  0x81   : > { %v1633_v33 = vadd.f32 %v1630_v47, %v1543_v9  ;;  %v1276_v5 = vrot.slane %v1260_v49, 2  ;;  %v1277_v29 = vrot.slane %v1263_v32, 2  ;;  %v1558_v2 = vrot.slane %v4869_v62, %v4444_v8 }
  0x82   : > { %v1157_v23 = vsel %vm300_vm0, %v1155_v42, %v1156_v12  ;;  %v1446_v54 = vmul.f32 %v4474_v17, %v1440_v27  ;;  %v1449_v15 = vmul.f32 %v4764_v36, %v1440_v27  ;;  %v1648_v11 = vrot.slane %v4877_v31, %v4444_v8 }
  0x83   : > { %v1730_v46 = vadd.f32 %v1722_v18, %v1633_v33  ;;  %v1163_v22 = vadd.f32 %v1157_v23, %v1039_v61  ;;  %v1278_v39 = vsel %vm422_vm1, %v1276_v5, %v1277_v29  ;;  %v1564_v47 = vmul.f32 %v4474_v17, %v1558_v2 }
  0x84   : > { %v1462_v50 = vrot.slane %v1446_v54, 1  ;;  %v1463_v44 = vrot.slane %v1449_v15, 1  ;;  %v1567_v52 = vmul.f32 %v4764_v36, %v1558_v2  ;;  %v1654_v28 = vmul.f32 %v4777_v55, %v1648_v11 }
  0x85   : > { %v1848_v60 = vadd.f32 %v1840_v48, %v1730_v46  ;;  %v1284_v20 = vadd.f32 %v1278_v39, %v1163_v22  ;;  %v1580_v57 = vrot.slane %v1564_v47, 2  ;;  %v1745_v63 = vrot.slane %v4888_v40, %v4444_v8 }
  0x86   : > { %v1464_v1 = vsel %vm300_vm0, %v1462_v50, %v1463_v44  ;;  %v1581_v56 = vrot.slane %v1567_v52, 2  ;;  %v1863_v30 = vrot.slane %v4893_v4, %v4444_v8  ;;  %v1029_v17 = vrot.slane %v4822_v19, %v4452_v10  ;;  %v5036_v52 = vld [vmem:[%s6276_s1 + $0x1] ss:$8 sm:$0x7] }
  0x87   : > { %1899 = vrot.lane.b32.xlu0 %v1848_v60, %s4330_s13  ;;  %v1352_v36 = vadd.f32 %v1349_v53, %v1284_v20  ;;  %v1751_v26 = vmul.f32 %v4777_v55, %v1745_v63  ;;  %v1754_v58 = vmul.f32 %v4785_v51, %v1745_v63  ;;  %v1129_v61 = vrot.slane %v4831_v16, %v4452_v10 }
  0x88   : > { %v1582_v13 = vsel %vm422_vm1, %v1580_v57, %v1581_v56  ;;  %v1869_v18 = vmul.f32 %v4777_v55, %v1863_v30  ;;  %v1872_v14 = vmul.f32 %v4785_v51, %v1863_v30  ;;  %v1038_v21 = vmul.f32 %v1029_v17, %v4555_v35 }
  0x89   : > { %v1470_v25 = vadd.f32 %v1464_v1, %v1352_v36  ;;  %v1767_v19 = vrot.slane %v1751_v26, 1  ;;  %v1768_v9 = vrot.slane %v1754_v58, 1  ;;  %v1138_v48 = vmul.f32 %v1129_v61, %v4555_v35  ;;  %v5050_v36 = vld [vmem:[%s4457_s23 + $0x50] sm:$0x3] }
  0x8a   : > { %v1885_v49 = vrot.slane %v1869_v18, 2  ;;  %v1886_v32 = vrot.slane %v1872_v14, 2  ;;  %v1141_v42 = vmul.f32 %v1129_v61, %v4913_v24  ;;  %v1250_v16 = vrot.slane %v4836_v41, %v4452_v10  ;;  %v5063_v18 = vld [vmem:[%s6276_s1 + $0x7] ss:$8 sm:$0x7] }
  0x8b   : > { %v1588_v12 = vadd.f32 %v1582_v13, %v1470_v25  ;;  %v1769_v53 = vsel %vm300_vm0, %v1767_v19, %v1768_v9  ;;  %v1152_v27 = vrot.slane %v1138_v48, 1  ;;  %v1339_v51 = vrot.slane %v4850_v34, %v4452_v10  ;;  %v5071_v9 = vld [vmem:[%s6276_s1 + $0x1a] ss:$8 sm:$0x7] }
  0x8c   : > { %v1887_v33 = vsel %vm422_vm1, %v1885_v49, %v1886_v32  ;;  %v1153_v5 = vrot.slane %v1141_v42, 1  ;;  %v1259_v29 = vmul.f32 %v1250_v16, %v4555_v35  ;;  %v1262_v2 = vmul.f32 %v1250_v16, %v4913_v24  ;;  %v5076_v48 = vld [vmem:[%s6276_s1 + $0x1d] ss:$8 sm:$0x7] }
  0x8d   : > { %v1657_v23 = vadd.f32 %v1654_v28, %v1588_v12  ;;  %v1348_v54 = vmul.f32 %v4568_v43, %v1339_v51  ;;  %v1436_v41 = vrot.slane %v4856_v45, %v4452_v10  ;;  %v1554_v15 = vrot.slane %v4869_v62, %v4452_v10  ;;  %v5082_v51 = vld [vmem:[%s4457_s23 + $0x80] sm:$0x3] }
  0x8e   : > { %v1154_v11 = vsel %vm300_vm0, %v1152_v27, %v1153_v5  ;;  %v1273_v46 = vrot.slane %v1259_v29, 2  ;;  %v1274_v34 = vrot.slane %v1262_v2, 2  ;;  %v1644_v22 = vrot.slane %v4877_v31, %v4452_v10  ;;  %v5041_v31 = vld [vmem:[%s6276_s1 + $0x4] ss:$8 sm:$0x7] }
  0x8f   : > { %v1775_v39 = vadd.f32 %v1769_v53, %v1657_v23  ;;  %v1162_v35 = vadd.f32 %v1154_v11, %v1038_v21  ;;  %v1445_v24 = vmul.f32 %v4568_v43, %v1436_v41  ;;  %v1448_v47 = vmul.f32 %v4926_v6, %v1436_v41  ;;  %v5095_v11 = vld [vmem:[%s6276_s1 + $0x30] ss:$8 sm:$0x7] }
  0x90   : > { %v1275_v50 = vsel %vm422_vm1, %v1273_v46, %v1274_v34  ;;  %v1563_v45 = vmul.f32 %v4568_v43, %v1554_v15  ;;  %v1566_v62 = vmul.f32 %v4926_v6, %v1554_v15  ;;  %v1653_v44 = vmul.f32 %v4944_v37, %v1644_v22  ;;  %v5100_v46 = vld [vmem:[%s6276_s1 + $0x33] ss:$8 sm:$0x7] }
  0x91   : > { %v1893_v28 = vadd.f32 %v1887_v33, %v1775_v39  ;;  %v1283_v60 = vadd.f32 %v1275_v50, %v1162_v35  ;;  %v1459_v20 = vrot.slane %v1445_v24, 1  ;;  %v1460_v57 = vrot.slane %v1448_v47, 1  ;;  %v5109_v35 = vld [vmem:[%s6276_s1 + $0x36] ss:$8 sm:$0x7] }
  0x92   : > { %v1577_v63 = vrot.slane %v1563_v45, 2  ;;  %v1578_v1 = vrot.slane %v1566_v62, 2  ;;  %v1741_v6 = vrot.slane %v4888_v40, %v4452_v10  ;;  %v1859_v56 = vrot.slane %v4893_v4, %v4452_v10  ;;  %v5114_v24 = vld [vmem:[%s6276_s1 + $0x49] ss:$8 sm:$0x7] }
  0x93   : > { %1916 = vrot.lane.b32.xlu1 %v1893_v28, %s4331_s8  ;;  %v1351_v30 = vadd.f32 %v1348_v54, %v1283_v60  ;;  %v1461_v17 = vsel %vm300_vm0, %v1459_v20, %v1460_v57  ;;  %v2049_v26 = vrot.slane %v5036_v52, %v4452_v10  ;;  %v2125_v58 = vrot.slane %v5041_v31, %v4452_v10  ;;  %v5119_v20 = vld [vmem:[%s4457_s23 + $0x98] sm:$0xff]  ;;  %v5122_v57 = vld [vmem:[%s4457_s23 + $0xb0] sm:$0x3] }
  0x94   : > { %v1579_v61 = vsel %vm422_vm1, %v1577_v63, %v1578_v1  ;;  %v1750_v40 = vmul.f32 %v4944_v37, %v1741_v6  ;;  %v1753_v13 = vmul.f32 %v4947_v38, %v1741_v6  ;;  %v1868_v4 = vmul.f32 %v4944_v37, %v1859_v56 }
  0x95   : > { %v1469_v14 = vadd.f32 %v1461_v17, %v1351_v30  ;;  %v1871_v21 = vmul.f32 %v4947_v38, %v1859_v56  ;;  %v2058_v25 = vmul.f32 %v4568_v43, %v2049_v26  ;;  %v2134_v19 = vmul.f32 %v4568_v43, %v2125_v58 }
  0x96   : > { %v1764_v49 = vrot.slane %v1750_v40, 1  ;;  %v1765_v32 = vrot.slane %v1753_v13, 1  ;;  %v1882_v42 = vrot.slane %v1868_v4, 2  ;;  %v2137_v16 = vmul.f32 %v5050_v36, %v2125_v58 }
  0x97   : > { %v1587_v38 = vadd.f32 %v1579_v61, %v1469_v14  ;;  %v1883_v12 = vrot.slane %v1871_v21, 2  ;;  %v2148_v53 = vrot.slane %v2134_v19, 1  ;;  %v2243_v27 = vrot.slane %v5063_v18, %v4452_v10 }
  0x98   : > { %v1766_v33 = vsel %vm300_vm0, %v1764_v49, %v1765_v32  ;;  %v2149_v5 = vrot.slane %v2137_v16, 1  ;;  %v2353_v29 = vrot.slane %v5071_v9, %v4452_v10  ;;  %v2429_v2 = vrot.slane %v5076_v48, %v4452_v10 }
  0x99   : > { %v1656_v23 = vadd.f32 %v1653_v44, %v1587_v38  ;;  %v1884_v54 = vsel %vm422_vm1, %v1882_v42, %v1883_v12  ;;  %v2252_v41 = vmul.f32 %v4568_v43, %v2243_v27  ;;  %v2255_v15 = vmul.f32 %v5050_v36, %v2243_v27  ;;  %v5141_v38 = vld [vmem:[%s4457_s23 + $0x30] sm:$0xff]  ;;  %v5144_v12 = vld [vmem:[%s4457_s23 + $0x48] sm:$0x3] }
  0x9a   : > { %v2150_v34 = vsel %vm300_vm0, %v2148_v53, %v2149_v5  ;;  %v2362_v22 = vmul.f32 %v4944_v37, %v2353_v29  ;;  %v2438_v43 = vmul.f32 %v4944_v37, %v2429_v2  ;;  %v2441_v39 = vmul.f32 %v5082_v51, %v2429_v2 }
  0x9b   : > { %v1774_v47 = vadd.f32 %v1766_v33, %v1656_v23  ;;  %v2158_v50 = vadd.f32 %v2150_v34, %v2058_v25  ;;  %v2266_v45 = vrot.slane %v2252_v41, 2  ;;  %v2267_v62 = vrot.slane %v2255_v15, 2 }
  0x9c   : > { %v2452_v44 = vrot.slane %v2438_v43, 1  ;;  %v2453_v28 = vrot.slane %v2441_v39, 1  ;;  %v2547_v60 = vrot.slane %v5095_v11, %v4452_v10  ;;  %v2658_v63 = vrot.slane %v5100_v46, %v4452_v10  ;;  %v5161_v39 = vld [vmem:[%s4457_s23 + $0x78] sm:$0x3] }
  0x9d   : > { %v1892_v1 = vadd.f32 %v1884_v54, %v1774_v47  ;;  %v2268_v6 = vsel %vm422_vm1, %v2266_v45, %v2267_v62  ;;  %v2734_v56 = vrot.slane %v5109_v35, %v4452_v10  ;;  %v2852_v30 = vrot.slane %v5114_v24, %v4452_v10 }
  0x9e   : > { %v2276_v17 = vadd.f32 %v2268_v6, %v2158_v50  ;;  %v2454_v26 = vsel %vm300_vm0, %v2452_v44, %v2453_v28  ;;  %v2556_v58 = vmul.f32 %v4944_v37, %v2547_v60  ;;  %v2559_v61 = vmul.f32 %v5082_v51, %v2547_v60 }
  0x9f   : > { %1914 = vrot.lane.b32.xlu0 %v1892_v1, %s4331_s8  ;;  %v2667_v40 = vmul.f32 %v5119_v20, %v2658_v63  ;;  %v2743_v13 = vmul.f32 %v5119_v20, %v2734_v56  ;;  %v2746_v4 = vmul.f32 %v5122_v57, %v2734_v56  ;;  %v2861_v14 = vmul.f32 %v5119_v20, %v2852_v30 }
  0xa0   : > { %v2365_v21 = vadd.f32 %v2362_v22, %v2276_v17  ;;  %v2570_v25 = vrot.slane %v2556_v58, 2  ;;  %v2571_v19 = vrot.slane %v2559_v61, 2  ;;  %v2864_v49 = vmul.f32 %v5122_v57, %v2852_v30 }
  0xa1   : > { %v2757_v32 = vrot.slane %v2743_v13, 1  ;;  %v2758_v42 = vrot.slane %v2746_v4, 1  ;;  %v2875_v16 = vrot.slane %v2861_v14, 2  ;;  %v2045_v53 = vrot.slane %v5036_v52, %v4441_v7 }
  0xa2   : > { %v2462_v27 = vadd.f32 %v2454_v26, %v2365_v21  ;;  %v2572_v33 = vsel %vm422_vm1, %v2570_v25, %v2571_v19  ;;  %v2876_v5 = vrot.slane %v2864_v49, 2  ;;  %v2121_v29 = vrot.slane %v5041_v31, %v4441_v7  ;;  %v5182_v25 = vld [vmem:[%s4457_s23 + $0x90] sm:$0xff] }
  0xa3   : > { %v2759_v2 = vsel %vm300_vm0, %v2757_v32, %v2758_v42  ;;  %v2057_v23 = vmul.f32 %v5141_v38, %v2045_v53  ;;  %v2239_v54 = vrot.slane %v5063_v18, %v4441_v7  ;;  %v2349_v41 = vrot.slane %v5071_v9, %v4441_v7  ;;  %v5187_v19 = vld [vmem:[%s6276_s1 + $0x5] ss:$8 sm:$0x7]  ;;  %v5190_v42 = vld [vmem:[%s4457_s23 + $0xa8] sm:$0x3] }
  0xa4   : > { %v2580_v15 = vadd.f32 %v2572_v33, %v2462_v27  ;;  %v2877_v34 = vsel %vm422_vm1, %v2875_v16, %v2876_v5  ;;  %v2133_v22 = vmul.f32 %v5141_v38, %v2121_v29  ;;  %v2136_v43 = vmul.f32 %v5144_v12, %v2121_v29 }
  0xa5   : > { %v2251_v47 = vmul.f32 %v5141_v38, %v2239_v54  ;;  %v2254_v50 = vmul.f32 %v5144_v12, %v2239_v54  ;;  %v2361_v45 = vmul.f32 %v4686_v59, %v2349_v41  ;;  %v2425_v62 = vrot.slane %v5076_v48, %v4441_v7 }
  0xa6   : > { %v2670_v44 = vadd.f32 %v2667_v40, %v2580_v15  ;;  %v2145_v28 = vrot.slane %v2133_v22, 1  ;;  %v2146_v60 = vrot.slane %v2136_v43, 1  ;;  %v2543_v63 = vrot.slane %v5095_v11, %v4441_v7  ;;  %v5178_v40 = vld [vmem:[%s6276_s1 + $0x2] ss:$8 sm:$0x7] }
  0xa7   : > { %v2263_v1 = vrot.slane %v2251_v47, 2  ;;  %v2264_v6 = vrot.slane %v2254_v50, 2  ;;  %v2437_v56 = vmul.f32 %v4686_v59, %v2425_v62  ;;  %v2440_v30 = vmul.f32 %v5161_v39, %v2425_v62  ;;  %v5212_v43 = vld [vmem:[%s6276_s1 + $0x18] ss:$8 sm:$0x7] }
  0xa8   : > { %v2767_v17 = vadd.f32 %v2759_v2, %v2670_v44  ;;  %v2147_v26 = vsel %vm300_vm0, %v2145_v28, %v2146_v60  ;;  %v2555_v58 = vmul.f32 %v4686_v59, %v2543_v63  ;;  %v2558_v61 = vmul.f32 %v5161_v39, %v2543_v63  ;;  %v5226_v28 = vld [vmem:[%s6276_s1 + $0x1e] ss:$8 sm:$0x7] }
  0xa9   : > { %v2157_v13 = vadd.f32 %v2147_v26, %v2057_v23  ;;  %v2265_v4 = vsel %vm422_vm1, %v2263_v1, %v2264_v6  ;;  %v2449_v14 = vrot.slane %v2437_v56, 1  ;;  %v2450_v21 = vrot.slane %v2440_v30, 1 }
  0xaa   : > { %v2885_v59 = vadd.f32 %v2877_v34, %v2767_v17  ;;  %v2567_v49 = vrot.slane %v2555_v58, 2  ;;  %v2568_v32 = vrot.slane %v2558_v61, 2  ;;  %v2654_v16 = vrot.slane %v5100_v46, %v4441_v7 }
  0xab   : > { %v2275_v53 = vadd.f32 %v2265_v4, %v2157_v13  ;;  %v2451_v27 = vsel %vm300_vm0, %v2449_v14, %v2450_v21  ;;  %v2730_v33 = vrot.slane %v5109_v35, %v4441_v7  ;;  %v2848_v5 = vrot.slane %v5114_v24, %v4441_v7  ;;  %v5238_v14 = vld [vmem:[%s6276_s1 + $0x31] ss:$8 sm:$0x7] }
  0xac   : > { %2936 = vrot.lane.b32.xlu1 %v2885_v59, %s4330_s13  ;;  %v2569_v29 = vsel %vm422_vm1, %v2567_v49, %v2568_v32  ;;  %v2666_v2 = vmul.f32 %v5182_v25, %v2654_v16  ;;  %v2068_v23 = vrot.slane %v5178_v40, %v4441_v7  ;;  %v2165_v54 = vrot.slane %v5187_v19, %v4441_v7  ;;  %v5247_v16 = vld [vmem:[%s6276_s1 + $0x34] ss:$8 sm:$0x7] }
  0xad   : > { %v2364_v41 = vadd.f32 %v2361_v45, %v2275_v53  ;;  %v2742_v15 = vmul.f32 %v5182_v25, %v2730_v33  ;;  %v2745_v34 = vmul.f32 %v5190_v42, %v2730_v33  ;;  %v2860_v22 = vmul.f32 %v5182_v25, %v2848_v5  ;;  %v5221_v45 = vld [vmem:[%s6276_s1 + $0x1b] ss:$8 sm:$0x7]  ;;  %v5252_v53 = vld [vmem:[%s6276_s1 + $0x37] ss:$8 sm:$0x7] }
  0xae   : > { %v2863_v47 = vmul.f32 %v5190_v42, %v2848_v5  ;;  %v2080_v50 = vmul.f32 %v5141_v38, %v2068_v23  ;;  %v2177_v62 = vmul.f32 %v5141_v38, %v2165_v54  ;;  %v2180_v44 = vmul.f32 %v5144_v12, %v2165_v54  ;;  %v4203_v5 = vld [vmem:[%s4457_s23 + $0x60] sm:$0xff] }
  0xaf   : > { %v2461_v60 = vadd.f32 %v2451_v27, %v2364_v41  ;;  %v2754_v63 = vrot.slane %v2742_v15, 1  ;;  %v2755_v1 = vrot.slane %v2745_v34, 1  ;;  %v2872_v6 = vrot.slane %v2860_v22, 2 }
  0xb0   : > { %v2873_v56 = vrot.slane %v2863_v47, 2  ;;  %v2189_v30 = vrot.slane %v2177_v62, 1  ;;  %v2190_v17 = vrot.slane %v2180_v44, 1  ;;  %v2283_v26 = vrot.slane %v5212_v43, %v4441_v7 }
  0xb1   : > { %v2579_v58 = vadd.f32 %v2569_v29, %v2461_v60  ;;  %v2756_v61 = vsel %vm300_vm0, %v2754_v63, %v2755_v1  ;;  %v2372_v13 = vrot.slane %v5221_v45, %v4441_v7  ;;  %v2469_v4 = vrot.slane %v5226_v28, %v4441_v7  ;;  %v5267_v60 = vld [vmem:[%s6276_s1 + $0x4a] ss:$8 sm:$0x7] }
  0xb2   : > { %v2874_v21 = vsel %vm422_vm1, %v2872_v6, %v2873_v56  ;;  %v2191_v59 = vsel %vm300_vm0, %v2189_v30, %v2190_v17  ;;  %v2295_v49 = vmul.f32 %v5141_v38, %v2283_v26  ;;  %v2298_v32 = vmul.f32 %v5144_v12, %v2283_v26 }
  0xb3   : > { %v2669_v27 = vadd.f32 %v2666_v2, %v2579_v58  ;;  %v2201_v33 = vadd.f32 %v2191_v59, %v2080_v50  ;;  %v2384_v29 = vmul.f32 %v4203_v5, %v2372_v13  ;;  %v2481_v23 = vmul.f32 %v4203_v5, %v2469_v4 }
  0xb4   : > { %v2307_v54 = vrot.slane %v2295_v49, 2  ;;  %v2308_v41 = vrot.slane %v2298_v32, 2  ;;  %v2484_v38 = vmul.f32 %v5161_v39, %v2469_v4  ;;  %v2587_v12 = vrot.slane %v5238_v14, %v4441_v7  ;;  %v5277_v4 = vld [vmem:[%s4457_s23 + $0x40] sm:$0xff] }
  0xb5   : > { %v2766_v15 = vadd.f32 %v2756_v61, %v2669_v27  ;;  %v2493_v34 = vrot.slane %v2481_v23, 1  ;;  %v2677_v22 = vrot.slane %v5247_v16, %v4441_v7  ;;  %v2774_v47 = vrot.slane %v5252_v53, %v4441_v7 }
  0xb6   : > { %v2309_v2 = vsel %vm422_vm1, %v2307_v54, %v2308_v41  ;;  %v2494_v50 = vrot.slane %v2484_v38, 1  ;;  %v2599_v62 = vmul.f32 %v4203_v5, %v2587_v12  ;;  %v2602_v44 = vmul.f32 %v5161_v39, %v2587_v12 }
  0xb7   : > { %v2884_v63 = vadd.f32 %v2874_v21, %v2766_v15  ;;  %v2319_v1 = vadd.f32 %v2309_v2, %v2201_v33  ;;  %v2689_v6 = vmul.f32 %v5182_v25, %v2677_v22  ;;  %v2786_v56 = vmul.f32 %v5182_v25, %v2774_v47  ;;  %v5280_v21 = vld [vmem:[%s4457_s23 + $0x58] sm:$0x3] }
  0xb8   : > { %v2495_v30 = vsel %vm300_vm0, %v2493_v34, %v2494_v50  ;;  %v2611_v17 = vrot.slane %v2599_v62, 2  ;;  %v2612_v26 = vrot.slane %v2602_v44, 2  ;;  %v2789_v58 = vmul.f32 %v5190_v42, %v2774_v47 }
  0xb9   : > { %2934 = vrot.lane.b32.xlu0 %v2884_v63, %s4330_s13  ;;  %v2387_v39 = vadd.f32 %v2384_v29, %v2319_v1  ;;  %v2798_v61 = vrot.slane %v2786_v56, 1  ;;  %v2892_v13 = vrot.slane %v5267_v60, %v4441_v7  ;;  %v2053_v59 = vrot.slane %v5036_v52, %v4444_v8  ;;  %v5301_v63 = vld [vmem:[%s4457_s23 + $0x88] sm:$0x3]  ;;  %v5306_v56 = vld [vmem:[%s4457_s23 + $0xa0] sm:$0xff] }
  0xba   : > { %v2613_v49 = vsel %vm422_vm1, %v2611_v17, %v2612_v26  ;;  %v2799_v32 = vrot.slane %v2789_v58, 1  ;;  %v2129_v27 = vrot.slane %v5041_v31, %v4444_v8  ;;  %v2247_v33 = vrot.slane %v5063_v18, %v4444_v8 }
  0xbb   : > { %v2505_v5 = vadd.f32 %v2495_v30, %v2387_v39  ;;  %v2904_v29 = vmul.f32 %v5182_v25, %v2892_v13  ;;  %v2907_v23 = vmul.f32 %v5190_v42, %v2892_v13  ;;  %v2059_v54 = vmul.f32 %v5277_v4, %v2053_v59 }
  0xbc   : > { %v2800_v41 = vsel %vm300_vm0, %v2798_v61, %v2799_v32  ;;  %v2135_v52 = vmul.f32 %v5277_v4, %v2129_v27  ;;  %v2138_v38 = vmul.f32 %v5280_v21, %v2129_v27  ;;  %v2253_v31 = vmul.f32 %v5277_v4, %v2247_v33 }
  0xbd   : > { %v2623_v12 = vadd.f32 %v2613_v49, %v2505_v5  ;;  %v2916_v15 = vrot.slane %v2904_v29, 2  ;;  %v2917_v18 = vrot.slane %v2907_v23, 2  ;;  %v2256_v34 = vmul.f32 %v5280_v21, %v2247_v33  ;;  %v5320_v49 = vld [vmem:[%s4457_s23 + $0xb8] sm:$0x3] }
  0xbe   : > { %v2151_v22 = vrot.slane %v2135_v52, 1  ;;  %v2152_v47 = vrot.slane %v2138_v38, 1  ;;  %v2269_v42 = vrot.slane %v2253_v31, 2  ;;  %v2357_v2 = vrot.slane %v5071_v9, %v4444_v8 }
  0xbf   : > { %v2692_v50 = vadd.f32 %v2689_v6, %v2623_v12  ;;  %v2918_v62 = vsel %vm422_vm1, %v2916_v15, %v2917_v18  ;;  %v2270_v44 = vrot.slane %v2256_v34, 2  ;;  %v2433_v1 = vrot.slane %v5076_v48, %v4444_v8 }
  0xc0   : > { %v2153_v30 = vsel %vm300_vm0, %v2151_v22, %v2152_v47  ;;  %v2363_v17 = vmul.f32 %v4777_v55, %v2357_v2  ;;  %v2551_v26 = vrot.slane %v5095_v11, %v4444_v8  ;;  %v2662_v9 = vrot.slane %v5100_v46, %v4444_v8 }
  0xc1   : > { %v2810_v6 = vadd.f32 %v2800_v41, %v2692_v50  ;;  %v2159_v58 = vadd.f32 %v2153_v30, %v2059_v54  ;;  %v2271_v39 = vsel %vm422_vm1, %v2269_v42, %v2270_v44  ;;  %v2439_v61 = vmul.f32 %v4777_v55, %v2433_v1 }
  0xc2   : > { %v2442_v48 = vmul.f32 %v5301_v63, %v2433_v1  ;;  %v2557_v13 = vmul.f32 %v4777_v55, %v2551_v26  ;;  %v2560_v59 = vmul.f32 %v5301_v63, %v2551_v26  ;;  %v2668_v32 = vmul.f32 %v5306_v56, %v2662_v9 }
  0xc3   : > { %v2928_v11 = vadd.f32 %v2918_v62, %v2810_v6  ;;  %v2277_v27 = vadd.f32 %v2271_v39, %v2159_v58  ;;  %v2455_v33 = vrot.slane %v2439_v61, 1  ;;  %v2738_v46 = vrot.slane %v5109_v35, %v4444_v8  ;;  %v4204_v61 = vld [vmem:[%s4457_s23 + $0x70] sm:$0xff] }
  0xc4   : > { %v2456_v5 = vrot.slane %v2442_v48, 1  ;;  %v2573_v29 = vrot.slane %v2557_v13, 2  ;;  %v2574_v23 = vrot.slane %v2560_v59, 2  ;;  %v2856_v54 = vrot.slane %v5114_v24, %v4444_v8 }
  0xc5   : > { %2949 = vrot.lane.b32.xlu1 %v2928_v11, %s4331_s8  ;;  %v2366_v55 = vadd.f32 %v2363_v17, %v2277_v27  ;;  %v2744_v41 = vmul.f32 %v5306_v56, %v2738_v46  ;;  %v2747_v52 = vmul.f32 %v5320_v49, %v2738_v46  ;;  %v2076_v38 = vrot.slane %v5178_v40, %v4444_v8 }
  0xc6   : > { %v2457_v31 = vsel %vm300_vm0, %v2455_v33, %v2456_v5  ;;  %v2575_v35 = vsel %vm422_vm1, %v2573_v29, %v2574_v23  ;;  %v2862_v12 = vmul.f32 %v5306_v56, %v2856_v54  ;;  %v2865_v15 = vmul.f32 %v5320_v49, %v2856_v54 }
  0xc7   : > { %v2463_v18 = vadd.f32 %v2457_v31, %v2366_v55  ;;  %v2760_v24 = vrot.slane %v2744_v41, 1  ;;  %v2761_v34 = vrot.slane %v2747_v52, 1  ;;  %v2082_v22 = vmul.f32 %v5277_v4, %v2076_v38 }
  0xc8   : > { %v2878_v47 = vrot.slane %v2862_v12, 2  ;;  %v2879_v42 = vrot.slane %v2865_v15, 2  ;;  %v2173_v2 = vrot.slane %v5187_v19, %v4444_v8  ;;  %v2291_v50 = vrot.slane %v5212_v43, %v4444_v8 }
  0xc9   : > { %v2581_v62 = vadd.f32 %v2575_v35, %v2463_v18  ;;  %v2762_v44 = vsel %vm300_vm0, %v2760_v24, %v2761_v34  ;;  %v2380_v1 = vrot.slane %v5221_v45, %v4444_v8  ;;  %v2477_v30 = vrot.slane %v5226_v28, %v4444_v8 }
  0xca   : > { %v2880_v17 = vsel %vm422_vm1, %v2878_v47, %v2879_v42  ;;  %v2179_v26 = vmul.f32 %v5277_v4, %v2173_v2  ;;  %v2182_v9 = vmul.f32 %v5280_v21, %v2173_v2  ;;  %v2297_v6 = vmul.f32 %v5277_v4, %v2291_v50 }
  0xcb   : > { %v2671_v58 = vadd.f32 %v2668_v32, %v2581_v62  ;;  %v2300_v39 = vmul.f32 %v5280_v21, %v2291_v50  ;;  %v2386_v48 = vmul.f32 %v4204_v61, %v2380_v1  ;;  %v2483_v13 = vmul.f32 %v4204_v61, %v2477_v30 }
  0xcc   : > { %v2195_v59 = vrot.slane %v2179_v26, 1  ;;  %v2196_v11 = vrot.slane %v2182_v9, 1  ;;  %v2313_v27 = vrot.slane %v2297_v6, 2  ;;  %v2486_v33 = vmul.f32 %v5301_v63, %v2477_v30 }
  0xcd   : > { %v2768_v46 = vadd.f32 %v2762_v44, %v2671_v58  ;;  %v2314_v5 = vrot.slane %v2300_v39, 2  ;;  %v2499_v29 = vrot.slane %v2483_v13, 1  ;;  %v2595_v23 = vrot.slane %v5238_v14, %v4444_v8 }
  0xce   : > { %v2197_v54 = vsel %vm300_vm0, %v2195_v59, %v2196_v11  ;;  %v2500_v4 = vrot.slane %v2486_v33, 1  ;;  %v2685_v21 = vrot.slane %v5247_v16, %v4444_v8  ;;  %v2782_v32 = vrot.slane %v5252_v53, %v4444_v8 }
  0xcf   : > { %v2886_v55 = vadd.f32 %v2880_v17, %v2768_v46  ;;  %v2203_v41 = vadd.f32 %v2197_v54, %v2082_v22  ;;  %v2315_v52 = vsel %vm422_vm1, %v2313_v27, %v2314_v5  ;;  %v2601_v38 = vmul.f32 %v4204_v61, %v2595_v23  ;;  %v5377_v17 = vld [vmem:[%s4457_s23 + $0x38] sm:$0xff] }
  0xd0   : > { %v2501_v31 = vsel %vm300_vm0, %v2499_v29, %v2500_v4  ;;  %v2604_v35 = vmul.f32 %v5301_v63, %v2595_v23  ;;  %v2691_v12 = vmul.f32 %v5306_v56, %v2685_v21  ;;  %v2788_v15 = vmul.f32 %v5306_v56, %v2782_v32 }
  0xd1   : > { %2938 = vrot.lane.b32.xlu0 %v2886_v55, %s4330_s13  ;;  %v2321_v18 = vadd.f32 %v2315_v52, %v2203_v41  ;;  %v2617_v24 = vrot.slane %v2601_v38, 2  ;;  %v2791_v34 = vmul.f32 %v5320_v49, %v2782_v32  ;;  %v2900_v22 = vrot.slane %v5267_v60, %v4444_v8  ;;  %v5403_v55 = vld [vmem:[%s6276_s1 + $0x4] ss:$8 sm:$0x7] }
  0xd2   : > { %v2618_v47 = vrot.slane %v2604_v35, 2  ;;  %v2804_v42 = vrot.slane %v2788_v15, 1  ;;  %v2072_v2 = vrot.slane %v5178_v40, %v4452_v10  ;;  %v2169_v63 = vrot.slane %v5187_v19, %v4452_v10 }
  0xd3   : > { %v2389_v50 = vadd.f32 %v2386_v48, %v2321_v18  ;;  %v2805_v62 = vrot.slane %v2791_v34, 1  ;;  %v2906_v44 = vmul.f32 %v5306_v56, %v2900_v22  ;;  %v2909_v1 = vmul.f32 %v5320_v49, %v2900_v22  ;;  %v5418_v18 = vld [vmem:[%s6276_s1 + $0x7] ss:$8 sm:$0x7] }
  0xd4   : > { %v2619_v30 = vsel %vm422_vm1, %v2617_v24, %v2618_v47  ;;  %v2081_v26 = vmul.f32 %v5377_v17, %v2072_v2  ;;  %v2178_v9 = vmul.f32 %v5377_v17, %v2169_v63  ;;  %v2181_v6 = vmul.f32 %v5050_v36, %v2169_v63  ;;  %v5428_v63 = vld [vmem:[%s4457_s23 + $0x80] sm:$0x3] }
  0xd5   : > { %v2507_v40 = vadd.f32 %v2501_v31, %v2389_v50  ;;  %v2806_v58 = vsel %vm300_vm0, %v2804_v42, %v2805_v62  ;;  %v2922_v19 = vrot.slane %v2906_v44, 2  ;;  %v2923_v39 = vrot.slane %v2909_v1, 2  ;;  %v5410_v31 = vld [vmem:[%s6276_s1 + $0x1] ss:$8 sm:$0x7] }
  0xd6   : > { %v2192_v61 = vrot.slane %v2178_v9, 1  ;;  %v2193_v48 = vrot.slane %v2181_v6, 1  ;;  %v2287_v49 = vrot.slane %v5212_v43, %v4452_v10  ;;  %v2376_v13 = vrot.slane %v5221_v45, %v4452_v10 }
  0xd7   : > { %v2625_v59 = vadd.f32 %v2619_v30, %v2507_v40  ;;  %v2924_v11 = vsel %vm422_vm1, %v2922_v19, %v2923_v39  ;;  %v2473_v27 = vrot.slane %v5226_v28, %v4452_v10  ;;  %v2591_v33 = vrot.slane %v5238_v14, %v4452_v10  ;;  %v5445_v39 = vld [vmem:[%s6276_s1 + $0x1a] ss:$8 sm:$0x7] }
  0xd8   : > { %v2194_v46 = vsel %vm300_vm0, %v2192_v61, %v2193_v48  ;;  %v2296_v5 = vmul.f32 %v5377_v17, %v2287_v49  ;;  %v2299_v29 = vmul.f32 %v5050_v36, %v2287_v49  ;;  %v2385_v43 = vmul.f32 %v4944_v37, %v2376_v13  ;;  %v5450_v61 = vld [vmem:[%s6276_s1 + $0x1d] ss:$8 sm:$0x7] }
  0xd9   : > { %v2694_v23 = vadd.f32 %v2691_v12, %v2625_v59  ;;  %v2202_v54 = vadd.f32 %v2194_v46, %v2081_v26  ;;  %v2482_v45 = vmul.f32 %v4944_v37, %v2473_v27  ;;  %v2485_v4 = vmul.f32 %v5082_v51, %v2473_v27  ;;  %v5457_v59 = vld [vmem:[%s6276_s1 + $0x30] ss:$8 sm:$0x7] }
  0xda   : > { %v2310_v21 = vrot.slane %v2296_v5, 2  ;;  %v2311_v32 = vrot.slane %v2299_v29, 2  ;;  %v2600_v28 = vmul.f32 %v4944_v37, %v2591_v33  ;;  %v2603_v14 = vmul.f32 %v5082_v51, %v2591_v33  ;;  %v5461_v5 = vld [vmem:[%s4457_s23 + $0xb0] sm:$0x3] }
  0xdb   : > { %v2812_v36 = vadd.f32 %v2806_v58, %v2694_v23  ;;  %v2496_v41 = vrot.slane %v2482_v45, 1  ;;  %v2497_v52 = vrot.slane %v2485_v4, 1  ;;  %v2681_v38 = vrot.slane %v5247_v16, %v4452_v10 }
  0xdc   : > { %v2312_v35 = vsel %vm422_vm1, %v2310_v21, %v2311_v32  ;;  %v2614_v51 = vrot.slane %v2600_v28, 2  ;;  %v2615_v12 = vrot.slane %v2603_v14, 2  ;;  %v2778_v15 = vrot.slane %v5252_v53, %v4452_v10 }
  0xdd   : > { %v2930_v24 = vadd.f32 %v2924_v11, %v2812_v36  ;;  %v2320_v34 = vadd.f32 %v2312_v35, %v2202_v54  ;;  %v2498_v16 = vsel %vm300_vm0, %v2496_v41, %v2497_v52  ;;  %v2690_v22 = vmul.f32 %v5119_v20, %v2681_v38 }
  0xde   : > { %v2616_v47 = vsel %vm422_vm1, %v2614_v51, %v2615_v12  ;;  %v2787_v42 = vmul.f32 %v5119_v20, %v2778_v15  ;;  %v2790_v2 = vmul.f32 %v5122_v57, %v2778_v15  ;;  %v2896_v53 = vrot.slane %v5267_v60, %v4452_v10 }
  0xdf   : > { %2953 = vrot.lane.b32.xlu1 %v2930_v24, %s4331_s8  ;;  %v2388_v50 = vadd.f32 %v2385_v43, %v2320_v34  ;;  %v3086_v62 = vrot.slane %v5410_v31, %v4452_v10  ;;  %v3162_v44 = vrot.slane %v5403_v55, %v4452_v10  ;;  %v3280_v1 = vrot.slane %v5418_v18, %v4452_v10  ;;  %v4075_v24 = vld [vmem:[%s4457_s23 + $0x60] sm:$0xff]  ;;  %v4078_v34 = vld [vmem:[%s4457_s23 + $0x78] sm:$0x3] }
  0xe0   : > { %v2801_v30 = vrot.slane %v2787_v42, 1  ;;  %v2802_v26 = vrot.slane %v2790_v2, 1  ;;  %v2905_v9 = vmul.f32 %v5119_v20, %v2896_v53  ;;  %v2908_v60 = vmul.f32 %v5122_v57, %v2896_v53 }
  0xe1   : > { %v2506_v6 = vadd.f32 %v2498_v16, %v2388_v50  ;;  %v3095_v40 = vmul.f32 %v4944_v37, %v3086_v62  ;;  %v3171_v58 = vmul.f32 %v4944_v37, %v3162_v44  ;;  %v3174_v19 = vmul.f32 %v5428_v63, %v3162_v44 }
  0xe2   : > { %v2803_v57 = vsel %vm300_vm0, %v2801_v30, %v2802_v26  ;;  %v2919_v48 = vrot.slane %v2905_v9, 2  ;;  %v2920_v49 = vrot.slane %v2908_v60, 2  ;;  %v3289_v13 = vmul.f32 %v4944_v37, %v3280_v1 }
  0xe3   : > { %v2624_v11 = vadd.f32 %v2616_v47, %v2506_v6  ;;  %v3185_v27 = vrot.slane %v3171_v58, 1  ;;  %v3186_v33 = vrot.slane %v3174_v19, 1  ;;  %v3292_v46 = vmul.f32 %v5428_v63, %v3280_v1  ;;  %v4092_v58 = vld [vmem:[%s4457_s23 + $0xa8] sm:$0x3] }
  0xe4   : > { %v2921_v29 = vsel %vm422_vm1, %v2919_v48, %v2920_v49  ;;  %v3303_v43 = vrot.slane %v3289_v13, 2  ;;  %v3390_v23 = vrot.slane %v5445_v39, %v4452_v10  ;;  %v3466_v37 = vrot.slane %v5450_v61, %v4452_v10 }
  0xe5   : > { %v2693_v54 = vadd.f32 %v2690_v22, %v2624_v11  ;;  %v3187_v45 = vsel %vm300_vm0, %v3185_v27, %v3186_v33  ;;  %v3304_v4 = vrot.slane %v3292_v46, 2  ;;  %v3584_v21 = vrot.slane %v5457_v59, %v4452_v10  ;;  %v5499_v11 = vld [vmem:[%s6276_s1 + $0x2] ss:$8 sm:$0x7] }
  0xe6   : > { %v3195_v32 = vadd.f32 %v3187_v45, %v3095_v40  ;;  %v3399_v28 = vmul.f32 %v5119_v20, %v3390_v23  ;;  %v3475_v14 = vmul.f32 %v5119_v20, %v3466_v37  ;;  %v3478_v36 = vmul.f32 %v5461_v5, %v3466_v37 }
  0xe7   : > { %v2811_v41 = vadd.f32 %v2803_v57, %v2693_v54  ;;  %v3305_v52 = vsel %vm422_vm1, %v3303_v43, %v3304_v4  ;;  %v3593_v38 = vmul.f32 %v5119_v20, %v3584_v21  ;;  %v3596_v35 = vmul.f32 %v5461_v5, %v3584_v21  ;;  %v5505_v43 = vld [vmem:[%s6276_s1 + $0x5] ss:$8 sm:$0x7]  ;;  %v5512_v4 = vld [vmem:[%s6276_s1 + $0x18] ss:$8 sm:$0x7] }
  0xe8   : > { %v3313_v51 = vadd.f32 %v3305_v52, %v3195_v32  ;;  %v3489_v12 = vrot.slane %v3475_v14, 1  ;;  %v3490_v15 = vrot.slane %v3478_v36, 1  ;;  %v3082_v16 = vrot.slane %v5410_v31, %v4441_v7  ;;  %v5517_v21 = vld [vmem:[%s6276_s1 + $0x1b] ss:$8 sm:$0x7] }
  0xe9   : > { %v2929_v22 = vadd.f32 %v2921_v29, %v2811_v41  ;;  %v3607_v47 = vrot.slane %v3593_v38, 2  ;;  %v3608_v42 = vrot.slane %v3596_v35, 2  ;;  %v3158_v2 = vrot.slane %v5403_v55, %v4441_v7 }
  0xea   : > { %v3402_v53 = vadd.f32 %v3399_v28, %v3313_v51  ;;  %v3491_v50 = vsel %vm300_vm0, %v3489_v12, %v3490_v15  ;;  %v3094_v62 = vmul.f32 %v4075_v24, %v3082_v16  ;;  %v3276_v44 = vrot.slane %v5418_v18, %v4441_v7 }
  0xeb   : > { %2951 = vrot.lane.b32.xlu0 %v2929_v22, %s4331_s8  ;;  %v3609_v1 = vsel %vm422_vm1, %v3607_v47, %v3608_v42  ;;  %v3170_v30 = vmul.f32 %v4075_v24, %v3158_v2  ;;  %v3173_v26 = vmul.f32 %v4078_v34, %v3158_v2  ;;  %v3386_v9 = vrot.slane %v5445_v39, %v4441_v7  ;;  %v5532_v22 = vld [vmem:[%s6276_s1 + $0x1e] ss:$8 sm:$0x7]  ;;  %v5537_v47 = vld [vmem:[%s6276_s1 + $0x31] ss:$8 sm:$0x7] }
  0xec   : > { %v3499_v60 = vadd.f32 %v3491_v50, %v3402_v53  ;;  %v3288_v6 = vmul.f32 %v4075_v24, %v3276_v44  ;;  %v3291_v40 = vmul.f32 %v4078_v34, %v3276_v44  ;;  %v3462_v19 = vrot.slane %v5450_v61, %v4441_v7 }
  0xed   : > { %v3182_v57 = vrot.slane %v3170_v30, 1  ;;  %v3183_v48 = vrot.slane %v3173_v26, 1  ;;  %v3398_v49 = vmul.f32 %v5182_v25, %v3386_v9  ;;  %v3580_v13 = vrot.slane %v5457_v59, %v4441_v7 }
  0xee   : > { %v3617_v27 = vadd.f32 %v3609_v1, %v3499_v60  ;;  %v3300_v33 = vrot.slane %v3288_v6, 2  ;;  %v3301_v46 = vrot.slane %v3291_v40, 2  ;;  %v3474_v29 = vmul.f32 %v5182_v25, %v3462_v19 }
  0xef   : > { %v3184_v23 = vsel %vm300_vm0, %v3182_v57, %v3183_v48  ;;  %v3477_v37 = vmul.f32 %v4092_v58, %v3462_v19  ;;  %v3592_v54 = vmul.f32 %v5182_v25, %v3580_v13  ;;  %v3595_v45 = vmul.f32 %v4092_v58, %v3580_v13 }
  0xf0   : > { %3668 = vrot.lane.b32.xlu1 %v3617_v27, %s4330_s13  ;;  %v3194_v32 = vadd.f32 %v3184_v23, %v3094_v62  ;;  %v3302_v28 = vsel %vm422_vm1, %v3300_v33, %v3301_v46  ;;  %v3486_v14 = vrot.slane %v3474_v29, 1  ;;  %v3105_v36 = vrot.slane %v5499_v11, %v4441_v7  ;;  %v4077_v23 = vld [vmem:[%s4457_s23 + $0x70] sm:$0xff] }
  0xf1   : > { %v3487_v41 = vrot.slane %v3477_v37, 1  ;;  %v3604_v52 = vrot.slane %v3592_v54, 2  ;;  %v3605_v38 = vrot.slane %v3595_v45, 2  ;;  %v3202_v35 = vrot.slane %v5505_v43, %v4441_v7 }
  0xf2   : > { %v3312_v51 = vadd.f32 %v3302_v28, %v3194_v32  ;;  %v3117_v12 = vmul.f32 %v4075_v24, %v3105_v36  ;;  %v3320_v15 = vrot.slane %v5512_v4, %v4441_v7  ;;  %v3409_v16 = vrot.slane %v5517_v21, %v4441_v7  ;;  %v4080_v32 = vld [vmem:[%s4457_s23 + $0x88] sm:$0x3] }
  0xf3   : > { %v3488_v42 = vsel %vm300_vm0, %v3486_v14, %v3487_v41  ;;  %v3606_v2 = vsel %vm422_vm1, %v3604_v52, %v3605_v38  ;;  %v3214_v53 = vmul.f32 %v4075_v24, %v3202_v35  ;;  %v3217_v50 = vmul.f32 %v4078_v34, %v3202_v35  ;;  %v5561_v52 = vld [vmem:[%s4457_s23 + $0xb8] sm:$0x3] }
  0xf4   : > { %v3401_v62 = vadd.f32 %v3398_v49, %v3312_v51  ;;  %v3332_v44 = vmul.f32 %v4075_v24, %v3320_v15  ;;  %v3335_v1 = vmul.f32 %v4078_v34, %v3320_v15  ;;  %v3421_v30 = vmul.f32 %v5182_v25, %v3409_v16 }
  0xf5   : > { %v3226_v26 = vrot.slane %v3214_v53, 1  ;;  %v3227_v9 = vrot.slane %v3217_v50, 1  ;;  %v3506_v60 = vrot.slane %v5532_v22, %v4441_v7  ;;  %v3624_v6 = vrot.slane %v5537_v47, %v4441_v7 }
  0xf6   : > { %v3498_v40 = vadd.f32 %v3488_v42, %v3401_v62  ;;  %v3344_v19 = vrot.slane %v3332_v44, 2  ;;  %v3345_v57 = vrot.slane %v3335_v1, 2  ;;  %v3090_v48 = vrot.slane %v5410_v31, %v4444_v8 }
  0xf7   : > { %v3228_v24 = vsel %vm300_vm0, %v3226_v26, %v3227_v9  ;;  %v3518_v34 = vmul.f32 %v5182_v25, %v3506_v60  ;;  %v3521_v49 = vmul.f32 %v4092_v58, %v3506_v60  ;;  %v3636_v13 = vmul.f32 %v5182_v25, %v3624_v6 }
  0xf8   : > { %v3616_v27 = vadd.f32 %v3606_v2, %v3498_v40  ;;  %v3238_v33 = vadd.f32 %v3228_v24, %v3117_v12  ;;  %v3346_v46 = vsel %vm422_vm1, %v3344_v19, %v3345_v57  ;;  %v3639_v29 = vmul.f32 %v4092_v58, %v3624_v6 }
  0xf9   : > { %v3530_v37 = vrot.slane %v3518_v34, 1  ;;  %v3531_v54 = vrot.slane %v3521_v49, 1  ;;  %v3648_v45 = vrot.slane %v3636_v13, 2  ;;  %v3096_v28 = vmul.f32 %v4077_v23, %v3090_v48 }
  0xfa   : > { %3666 = vrot.lane.b32.xlu0 %v3616_v27, %s4330_s13  ;;  %v3356_v31 = vadd.f32 %v3346_v46, %v3238_v33  ;;  %v3649_v14 = vrot.slane %v3639_v29, 2  ;;  %v3166_v36 = vrot.slane %v5403_v55, %v4444_v8  ;;  %v3284_v25 = vrot.slane %v5418_v18, %v4444_v8 }
  0xfb   : > { %v3532_v41 = vsel %vm300_vm0, %v3530_v37, %v3531_v54  ;;  %v3394_v58 = vrot.slane %v5445_v39, %v4444_v8  ;;  %v3470_v38 = vrot.slane %v5450_v61, %v4444_v8  ;;  %v3588_v35 = vrot.slane %v5457_v59, %v4444_v8 }
  0xfc   : > { %v3424_v51 = vadd.f32 %v3421_v30, %v3356_v31  ;;  %v3650_v12 = vsel %vm422_vm1, %v3648_v45, %v3649_v14  ;;  %v3172_v55 = vmul.f32 %v4077_v23, %v3166_v36  ;;  %v3175_v15 = vmul.f32 %v4080_v32, %v3166_v36 }
  0xfd   : > { %v3290_v16 = vmul.f32 %v4077_v23, %v3284_v25  ;;  %v3293_v18 = vmul.f32 %v4080_v32, %v3284_v25  ;;  %v3400_v42 = vmul.f32 %v5306_v56, %v3394_v58  ;;  %v3476_v2 = vmul.f32 %v5306_v56, %v3470_v38 }
  0xfe   : > { %v3542_v53 = vadd.f32 %v3532_v41, %v3424_v51  ;;  %v3188_v50 = vrot.slane %v3172_v55, 1  ;;  %v3189_v39 = vrot.slane %v3175_v15, 1  ;;  %v3479_v62 = vmul.f32 %v5561_v52, %v3470_v38 }
  0xff   : > { %v3306_v61 = vrot.slane %v3290_v16, 2  ;;  %v3307_v44 = vrot.slane %v3293_v18, 2  ;;  %v3492_v1 = vrot.slane %v3476_v2, 1  ;;  %v3594_v59 = vmul.f32 %v5306_v56, %v3588_v35 }
 0x100   : > { %v3660_v30 = vadd.f32 %v3650_v12, %v3542_v53  ;;  %v3190_v26 = vsel %vm300_vm0, %v3188_v50, %v3189_v39  ;;  %v3493_v9 = vrot.slane %v3479_v62, 1  ;;  %v3597_v60 = vmul.f32 %v5561_v52, %v3588_v35 }
 0x101   : > { %v3196_v6 = vadd.f32 %v3190_v26, %v3096_v28  ;;  %v3308_v40 = vsel %vm422_vm1, %v3306_v61, %v3307_v44  ;;  %v3610_v19 = vrot.slane %v3594_v59, 2  ;;  %v3113_v57 = vrot.slane %v5499_v11, %v4444_v8 }
 0x102   : > { %3681 = vrot.lane.b32.xlu1 %v3660_v30, %s4331_s8  ;;  %v3494_v48 = vsel %vm300_vm0, %v3492_v1, %v3493_v9  ;;  %v3611_v24 = vrot.slane %v3597_v60, 2  ;;  %v3210_v34 = vrot.slane %v5505_v43, %v4444_v8  ;;  %v3328_v49 = vrot.slane %v5512_v4, %v4444_v8 }
 0x103   : > { %v3314_v13 = vadd.f32 %v3308_v40, %v3196_v6  ;;  %v3119_v27 = vmul.f32 %v4077_v23, %v3113_v57  ;;  %v3417_v33 = vrot.slane %v5517_v21, %v4444_v8  ;;  %v3514_v46 = vrot.slane %v5532_v22, %v4444_v8 }
 0x104   : > { %v3612_v29 = vsel %vm422_vm1, %v3610_v19, %v3611_v24  ;;  %v3216_v37 = vmul.f32 %v4077_v23, %v3210_v34  ;;  %v3219_v54 = vmul.f32 %v4080_v32, %v3210_v34  ;;  %v3334_v45 = vmul.f32 %v4077_v23, %v3328_v49 }
 0x105   : > { %v3403_v28 = vadd.f32 %v3400_v42, %v3314_v13  ;;  %v3337_v31 = vmul.f32 %v4080_v32, %v3328_v49  ;;  %v3423_v14 = vmul.f32 %v5306_v56, %v3417_v33  ;;  %v3520_v36 = vmul.f32 %v5306_v56, %v3514_v46  ;;  %v5634_v33 = vpop.permute.xlu0 %840 }
 0x106   : > { %v3232_v25 = vrot.slane %v3216_v37, 1  ;;  %v3233_v41 = vrot.slane %v3219_v54, 1  ;;  %v3350_v58 = vrot.slane %v3334_v45, 2  ;;  %v3523_v38 = vmul.f32 %v5561_v52, %v3514_v46  ;;  %v3970_v46 = vld [vmem:[%s6276_s1 + $0x1f] ss:$8 sm:$0x7] }
 0x107   : > { %v3500_v35 = vadd.f32 %v3494_v48, %v3403_v28  ;;  %v3351_v51 = vrot.slane %v3337_v31, 2  ;;  %v3536_v12 = vrot.slane %v3520_v36, 1  ;;  %v3632_v55 = vrot.slane %v5537_v47, %v4444_v8  ;;  %v5605_v8 = vld [vmem:[%s4457_s23 + $0x68] sm:$0xff]  ;;  %v5644_v31 = vld [vmem:[%s4457_s23 + $0x98] sm:$0xff] }
 0x108   : > { %v3234_v23 = vsel %vm300_vm0, %v3232_v25, %v3233_v41  ;;  %v3537_v15 = vrot.slane %v3523_v38, 1  ;;  %v3109_v32 = vrot.slane %v5499_v11, %v4452_v10  ;;  %v3206_v16 = vrot.slane %v5505_v43, %v4452_v10  ;;  %v5650_v36 = vld [vmem:[%s4457_s23 + $0x8] sm:$0xff] }
 0x109   : > { %v3618_v18 = vadd.f32 %v3612_v29, %v3500_v35  ;;  %v3240_v42 = vadd.f32 %v3234_v23, %v3119_v27  ;;  %v3352_v2 = vsel %vm422_vm1, %v3350_v58, %v3351_v51  ;;  %v3638_v53 = vmul.f32 %v5306_v56, %v3632_v55  ;;  %v5658_v23 = vld [vmem:[%s4457_s23] sm:$0xff] }
 0x10a   : > { %v3538_v50 = vsel %vm300_vm0, %v3536_v12, %v3537_v15  ;;  %v3641_v39 = vmul.f32 %v5561_v52, %v3632_v55  ;;  %v3118_v62 = vmul.f32 %v5605_v8, %v3109_v32  ;;  %v3215_v61 = vmul.f32 %v5605_v8, %v3206_v16  ;;  %v4210_v32 = vld [vmem:[%s4457_s23 + $0x18] sm:$0x3] }
 0x10b   : > { %3670 = vrot.lane.b32.xlu0 %v3618_v18, %s4330_s13  ;;  %v3358_v11 = vadd.f32 %v3352_v2, %v3240_v42  ;;  %v3654_v43 = vrot.slane %v3638_v53, 2  ;;  %v3218_v44 = vmul.f32 %v5428_v63, %v3206_v16  ;;  %v3324_v1 = vrot.slane %v5512_v4, %v4452_v10  ;;  %v4211_v18 = vld [vmem:[%s4457_s23 + $0x20] sm:$0x3] }
 0x10c   : > { %v3655_v56 = vrot.slane %v3641_v39, 2  ;;  %v3229_v59 = vrot.slane %v3215_v61, 1  ;;  %v3413_v52 = vrot.slane %v5517_v21, %v4452_v10  ;;  %v3510_v30 = vrot.slane %v5532_v22, %v4452_v10  ;;  %v5626_v21 = vld [vmem:[%s6276_s1 + $0x19] ss:$8 sm:$0x7]  ;;  %v5670_v61 = vpop.permute.xlu0 %842 }
 0x10d   : > { %v3426_v26 = vadd.f32 %v3423_v14, %v3358_v11  ;;  %v3230_v9 = vrot.slane %v3218_v44, 1  ;;  %v3333_v60 = vmul.f32 %v5605_v8, %v3324_v1  ;;  %v3336_v6 = vmul.f32 %v5428_v63, %v3324_v1  ;;  %v3967_v63 = vld [vmem:[%s6276_s1 + $0x1c] ss:$8 sm:$0x7] }
 0x10e   : > { %v3656_v40 = vsel %vm422_vm1, %v3654_v43, %v3655_v56  ;;  %v3422_v19 = vmul.f32 %v5119_v20, %v3413_v52  ;;  %v3519_v4 = vmul.f32 %v5119_v20, %v3510_v30  ;;  %v3522_v57 = vmul.f32 %v5461_v5, %v3510_v30 }
 0x10f   : > { %v3544_v22 = vadd.f32 %v3538_v50, %v3426_v26  ;;  %v3231_v48 = vsel %vm300_vm0, %v3229_v59, %v3230_v9  ;;  %v3347_v24 = vrot.slane %v3333_v60, 2  ;;  %v3348_v34 = vrot.slane %v3336_v6, 2  ;;  %v3982_v26 = vld [vmem:[%s6276_s1 + $0x35] ss:$8 sm:$0x7] }
 0x110   : > { %v3239_v49 = vadd.f32 %v3231_v48, %v3118_v62  ;;  %v3533_v20 = vrot.slane %v3519_v4, 1  ;;  %v3534_v13 = vrot.slane %v3522_v57, 1  ;;  %v3628_v27 = vrot.slane %v5537_v47, %v4452_v10  ;;  %v3979_v62 = vld [vmem:[%s6276_s1 + $0x32] ss:$8 sm:$0x7] }
 0x111   : > { %v3662_v29 = vadd.f32 %v3656_v40, %v3544_v22  ;;  %v3349_v37 = vsel %vm422_vm1, %v3347_v24, %v3348_v34  ;;  %v224_v54 = vrot.slane %v5626_v21, %v4452_v10  ;;  %v285_v41 = vrot.slane %v3967_v63, %v4441_v7  ;;  %v3985_v9 = vld [vmem:[%s6276_s1 + $0x48] ss:$8 sm:$0x7] }
 0x112   : > { %v3357_v45 = vadd.f32 %v3349_v37, %v3239_v49  ;;  %v3535_v28 = vsel %vm300_vm0, %v3533_v20, %v3534_v13  ;;  %v3637_v47 = vmul.f32 %v5644_v31, %v3628_v27  ;;  %v3640_v14 = vmul.f32 %v5461_v5, %v3628_v27  ;;  %v5690_v20 = vld [vmem:[%s4457_s23 + $0x30] sm:$0xff]  ;;  %v845_v37 = vpop.permute.xlu1 %844 }
 0x113   : > { %3685 = vrot.lane.b32.xlu1 %v3662_v29, %s4331_s8  ;;  %v228_v25 = vmul.f32 %v5650_v36, %v224_v54  ;;  %v289_v58 = vrot.slane %v3967_v63, %v4452_v10  ;;  %v407_v38 = vrot.slane %v3970_v46, %v4441_v7  ;;  %v411_v55 = vrot.slane %v3970_v46, %v4452_v10  ;;  %v857_v29 = vpop.permute.xlu0 %856 }
 0x114   : > { %v3425_v35 = vadd.f32 %v3422_v19, %v3357_v45  ;;  %v3651_v51 = vrot.slane %v3637_v47, 2  ;;  %v3652_v12 = vrot.slane %v3640_v14, 2  ;;  %v292_v5 = vmul.f32 %v5658_v23, %v285_v41  ;;  %v4213_v47 = vld [vmem:[%s4457_s23 + $0x48] sm:$0x3] }
 0x115   : > { %v293_v15 = vmul.f32 %v5650_v36, %v289_v58  ;;  %v294_v16 = vmul.f32 %v4210_v32, %v285_v41  ;;  %v295_v42 = vmul.f32 %v4211_v18, %v289_v58  ;;  %v414_v50 = vmul.f32 %v5658_v23, %v407_v38 }
 0x116   : > { %v3543_v2 = vadd.f32 %v3535_v28, %v3425_v35  ;;  %v3653_v53 = vsel %vm422_vm1, %v3651_v51, %v3652_v12  ;;  %v415_v39 = vmul.f32 %v5650_v36, %v411_v55  ;;  %v301_v11 = vrot.slane %v292_v5, 1 }
 0x117   : > { %v302_v43 = vrot.slane %v294_v16, 1  ;;  %v304_v44 = vrot.slane %v293_v15, 1  ;;  %v305_v1 = vrot.slane %v295_v42, 1  ;;  %v220_v59 = vrot.slane %v5626_v21, %v4441_v7 }
 0x118   : > { %v3661_v56 = vadd.f32 %v3653_v53, %v3543_v2  ;;  %v416_v52 = vmul.f32 %v4210_v32, %v407_v38  ;;  %v417_v30 = vmul.f32 %v4211_v18, %v411_v55  ;;  %v423_v6 = vrot.slane %v414_v50, 2  ;;  %v3991_v50 = vld [vmem:[%s6276_s1 + $0x3] ss:$8 sm:$0x7] }
 0x119   : > { %v306_v60 = vsel %vm300_vm0, %v304_v44, %v305_v1  ;;  %v426_v40 = vrot.slane %v415_v39, 2  ;;  %v536_v19 = vrot.slane %v3979_v62, %v4441_v7  ;;  %v303_v4 = vsel %vm300_vm0, %v301_v11, %v302_v43  ;;  %v861_v44 = vpop.permute.xlu0 %860  ;;  %v979_v1 = vld [vmem:[%s6276_s1] ss:$8 sm:$0x7] }
 0x11a   : > { %3683 = vrot.lane.b32.xlu0 %v3661_v56, %s4331_s8  ;;  %v310_v57 = vadd.f32 %v306_v60, %v228_v25  ;;  %v427_v21 = vrot.slane %v417_v30, 2  ;;  %v540_v22 = vrot.slane %v3979_v62, %v4452_v10  ;;  %v424_v48 = vrot.slane %v416_v52, 2  ;;  %v4214_v25 = vld [vmem:[%s4457_s23 + $0x50] sm:$0x3]  ;;  %v859_v56 = vpop.permute.xlu1 %858 }
 0x11b   : > { %v601_v24 = vrot.slane %v3982_v26, %v4441_v7  ;;  %v605_v34 = vrot.slane %v3982_v26, %v4452_v10  ;;  %v722_v63 = vrot.slane %v3985_v9, %v4441_v7  ;;  %v543_v13 = vmul.f32 %v5690_v20, %v536_v19  ;;  %v207_v26 = vld [vmem:[%s6277_s2] sm:$0x3] }
 0x11c   : > { %v428_v49 = vsel %vm422_vm1, %v426_v40, %v427_v21  ;;  %v544_v27 = vmul.f32 %v5377_v17, %v540_v22  ;;  %v726_v46 = vrot.slane %v3985_v9, %v4452_v10  ;;  %v425_v42 = vsel %vm422_vm1, %v423_v6, %v424_v48  ;;  %v3994_v9 = vld [vmem:[%s6276_s1 + $0x6] ss:$8 sm:$0x7] }
 0x11d   : > { %v432_v54 = vadd.f32 %v428_v49, %v310_v57  ;;  %v608_v45 = vmul.f32 %v5690_v20, %v601_v24  ;;  %v609_v28 = vmul.f32 %v5377_v17, %v605_v34  ;;  %v610_v14 = vmul.f32 %v4213_v47, %v601_v24 }
 0x11e   : > { %v611_v41 = vmul.f32 %v4214_v25, %v605_v34  ;;  %v729_v58 = vmul.f32 %v5690_v20, %v722_v63  ;;  %v730_v38 = vmul.f32 %v5377_v17, %v726_v46  ;;  %v731_v35 = vmul.f32 %v4213_v47, %v722_v63 }
 0x11f   : > { %v546_v51 = vadd.f32 %v544_v27, %v432_v54  ;;  %v616_v12 = vrot.slane %v608_v45, 1  ;;  %v617_v55 = vrot.slane %v610_v14, 1  ;;  %v619_v5 = vrot.slane %v609_v28, 1  ;;  %v4215_v54 = vld [vmem:[%s4457_s23 + $0x18] sm:$0x3] }
 0x120   : > { %v620_v15 = vrot.slane %v611_v41, 1  ;;  %v732_v32 = vmul.f32 %v4214_v25, %v726_v46  ;;  %v737_v16 = vrot.slane %v729_v58, 2  ;;  %v738_v18 = vrot.slane %v731_v35, 2  ;;  %v4216_v14 = vld [vmem:[%s4457_s23 + $0x20] sm:$0x3] }
 0x121   : > { %v740_v2 = vrot.slane %v730_v38, 2  ;;  %v227_v53 = vmul.f32 %v5658_v23, %v220_v59  ;;  %v618_v39 = vsel %vm300_vm0, %v616_v12, %v617_v55  ;;  %v847_v59 = vsel %vm846_vm2, %v5634_v33, %v5670_v61 }
 0x122   : > { %v621_v62 = vsel %vm300_vm0, %v619_v5, %v620_v15  ;;  %v739_v11 = vsel %vm422_vm1, %v737_v16, %v738_v18  ;;  %v741_v43 = vrot.slane %v732_v32, 2  ;;  %v848_v6 = vsel %vm846_vm2, %v5670_v61, %v845_v37 }
 0x123   : > { %v625_v52 = vadd.f32 %v621_v62, %v546_v51  ;;  %v309_v30 = vadd.f32 %v303_v4, %v227_v53  ;;  %v863_v40 = vsel %vm862_vm3, %v857_v29, %v859_v56  ;;  %v5726_v19 = vrot.slane %v207_v26, %v4452_v10 }
 0x124   : > { %v742_v60 = vsel %vm422_vm1, %v740_v2, %v741_v43  ;;  %v864_v57 = vsel %vm862_vm3, %v859_v56, %v861_v44  ;;  %v984_v21 = vrot.slane %v979_v1, %v4441_v7  ;;  %v988_v22 = vrot.slane %v979_v1, %v4452_v10 }
 0x125   : > { %v746_v33 = vadd.f32 %v742_v60, %v625_v52  ;;  %v431_v4 = vadd.f32 %v425_v42, %v309_v30  ;;  %v1049_v48 = vrot.slane %v3991_v50, %v4441_v7  ;;  %v1053_v24 = vrot.slane %v3991_v50, %v4452_v10  ;;  %v4006_v50 = vld [vmem:[%s6276_s1 + $0x1c] ss:$8 sm:$0x7] }
 0x126   : > { %v1170_v61 = vrot.slane %v3994_v9, %v4441_v7  ;;  %v991_v49 = vmul.f32 %v5658_v23, %v984_v21  ;;  %v1174_v27 = vrot.slane %v3994_v9, %v4452_v10  ;;  %v992_v46 = vmul.f32 %v5650_v36, %v988_v22  ;;  %v5772_v22 = vpop.permute.xlu1 %1897 }
 0x127   : > { %v545_v34 = vadd.f32 %v543_v13, %v431_v4  ;;  %v852_v63 = vadd.f32 %v848_v6, %v746_v33  ;;  %v1056_v29 = vmul.f32 %v5658_v23, %v1049_v48  ;;  %v1057_v37 = vmul.f32 %v5650_v36, %v1053_v24 }
 0x128   : > { %v1058_v45 = vmul.f32 %v4215_v54, %v1049_v48  ;;  %v1059_v25 = vmul.f32 %v4216_v14, %v1053_v24  ;;  %v1177_v41 = vmul.f32 %v5658_v23, %v1170_v61  ;;  %v1178_v35 = vmul.f32 %v5650_v36, %v1174_v27  ;;  %v4003_v23 = vld [vmem:[%s6276_s1 + $0x19] ss:$8 sm:$0x7] }
 0x129   : > { %v624_v28 = vadd.f32 %v618_v39, %v545_v34  ;;  %v868_v47 = vadd.f32 %v864_v57, %v852_v63  ;;  %v1064_v13 = vrot.slane %v1056_v29, 1  ;;  %v1067_v38 = vrot.slane %v1057_v37, 1 }
 0x12a   : > { %v1065_v58 = vrot.slane %v1058_v45, 1  ;;  %v1068_v55 = vrot.slane %v1059_v25, 1  ;;  %v1179_v5 = vmul.f32 %v4215_v54, %v1170_v61  ;;  %v1180_v32 = vmul.f32 %v4216_v14, %v1174_v27  ;;  %v4009_v27 = vld [vmem:[%s6276_s1 + $0x1f] ss:$8 sm:$0x7] }
 0x12b   : > { %v745_v51 = vadd.f32 %v739_v11, %v624_v28  ;;  %v5744_v12 = vadd.f32 %v5726_v19, %v868_v47  ;;  %v1185_v16 = vrot.slane %v1177_v41, 2  ;;  %v1188_v18 = vrot.slane %v1178_v35, 2  ;;  %v4217_v45 = vld [vmem:[%s4457_s23 + $0x48] sm:$0x3]  ;;  %v4218_v47 = vld [vmem:[%s4457_s23 + $0x50] sm:$0x3] }
 0x12c   : > { %v1066_v15 = vsel %vm300_vm0, %v1064_v13, %v1065_v58  ;;  %v5751_v2 = vrot.slane %v207_v26, %v4441_v7  ;;  %v1069_v53 = vsel %vm300_vm0, %v1067_v38, %v1068_v55  ;;  %v1186_v11 = vrot.slane %v1179_v5, 2 }
 0x12d   : > { %v851_v42 = vadd.f32 %v847_v59, %v745_v51  ;;  %v5754_v36 = vmul.f32 0.70710677, %v5744_v12  ;;  %v1072_v39 = vadd.f32 %v1066_v15, %v991_v49  ;;  %v1073_v62 = vadd.f32 %v1069_v53, %v992_v46  ;;  %v4018_v46 = vld [vmem:[%s6276_s1 + $0x32] ss:$8 sm:$0x7] }
 0x12e   : > { %v1189_v43 = vrot.slane %v1180_v32, 2  ;;  %v1296_v56 = vrot.slane %v4003_v23, %v4441_v7  ;;  %v1187_v52 = vsel %vm422_vm1, %v1185_v16, %v1186_v11  ;;  %v1300_v59 = vrot.slane %v4003_v23, %v4452_v10  ;;  %v5791_v16 = vpop.permute.xlu1 %1901 }
 0x12f   : > { %v867_v44 = vadd.f32 %v863_v40, %v851_v42  ;;  %v887_v1 = vand.u32 2147483647, %v5754_v36  ;;  %v1358_v26 = vrot.slane %v4006_v50, %v4441_v7  ;;  %v1193_v33 = vadd.f32 %v1187_v52, %v1072_v39 }
 0x130   : > { %v1190_v30 = vsel %vm422_vm1, %v1188_v18, %v1189_v43  ;;  %v1303_v40 = vmul.f32 %v5690_v20, %v1296_v56  ;;  %v1304_v57 = vmul.f32 %v5377_v17, %v1300_v59  ;;  %v1362_v21 = vrot.slane %v4006_v50, %v4452_v10  ;;  %v5805_v59 = vld [vmem:[%s4457_s23 + $0x60] sm:$0xff] }
 0x131   : > { %v5767_v9 = vadd.f32 %v5751_v2, %v867_v44  ;;  %v889_v60 = vmul.f32 0.3275911, %v887_v1  ;;  %v913_v6 = vsub.f32 0.0, %v887_v1  ;;  %v1194_v4 = vadd.f32 %v1190_v30, %v1073_v62  ;;  %v4021_v62 = vld [vmem:[%s6276_s1 + $0x35] ss:$8 sm:$0x7] }
 0x132   : > { %v1305_v34 = vadd.f32 %v1303_v40, %v1193_v33  ;;  %v1365_v63 = vmul.f32 %v5690_v20, %v1358_v26  ;;  %v1366_v49 = vmul.f32 %v5377_v17, %v1362_v21  ;;  %v1367_v28 = vmul.f32 %v4217_v45, %v1358_v26 }
 0x133   : > { %v5775_v48 = vmul.f32 0.70710677, %v5767_v9  ;;  %v891_v24 = vadd.f32 1.0, %v889_v60  ;;  %v915_v61 = vmul.f32 %v913_v6, %v887_v1  ;;  %v1306_v54 = vadd.f32 %v1304_v57, %v1194_v4  ;;  %v1900_v6 = vpop.permute.xlu0 %1899 }
 0x134   : > { %v1368_v14 = vmul.f32 %v4218_v47, %v1362_v21  ;;  %v1373_v25 = vrot.slane %v1365_v63, 1  ;;  %v1376_v41 = vrot.slane %v1366_v49, 1  ;;  %v1476_v38 = vrot.slane %v4009_v27, %v4441_v7  ;;  %v1913_v21 = vpop.permute.xlu1 %1912 }
 0x135   : > { %v886_v29 = vand.u32 2147483647, %v5775_v48  ;;  %4171 = vrcp.f32 %v891_v24  ;;  %v918_v37 = vmul.f32 1.442695, %v915_v61  ;;  %v1374_v35 = vrot.slane %v1367_v28, 1 }
 0x136   : > { %v1377_v51 = vrot.slane %v1368_v14, 1  ;;  %v1480_v55 = vrot.slane %v4009_v27, %v4452_v10  ;;  %v1601_v5 = vrot.slane %v4018_v46, %v4441_v7  ;;  %v1483_v18 = vmul.f32 %v5690_v20, %v1476_v38  ;;  %v4024_v20 = vld [vmem:[%s6276_s1 + $0x48] ss:$8 sm:$0x7] }
 0x137   : > { %v888_v13 = vmul.f32 0.3275911, %v886_v29  ;;  %v912_v58 = vsub.f32 0.0, %v886_v29  ;;  %4173 = vpow2.f32 %v918_v37  ;;  %v1485_v23 = vmul.f32 %v4217_v45, %v1476_v38  ;;  %v4220_v27 = vld [vmem:[%s4457_s23 + $0x78] sm:$0x3] }
 0x138   : > { %v1375_v42 = vsel %vm300_vm0, %v1373_v25, %v1374_v35  ;;  %v1378_v53 = vsel %vm300_vm0, %v1376_v41, %v1377_v51  ;;  %v1484_v50 = vmul.f32 %v5377_v17, %v1480_v55  ;;  %v1486_v39 = vmul.f32 %v4218_v47, %v1480_v55 }
 0x139   : > { %v890_v15 = vadd.f32 1.0, %v888_v13  ;;  %v914_v32 = vmul.f32 %v912_v58, %v886_v29  ;;  %v1381_v11 = vadd.f32 %v1375_v42, %v1305_v34  ;;  %v1382_v43 = vadd.f32 %v1378_v53, %v1306_v54  ;;  %v4221_v29 = vld [vmem:[%s4457_s23 + $0x80] sm:$0x3] }
 0x13a   : > { %v1491_v44 = vrot.slane %v1483_v18, 2  ;;  %v1492_v1 = vrot.slane %v1485_v23, 2  ;;  %v1494_v56 = vrot.slane %v1484_v50, 2  ;;  %v1495_v52 = vrot.slane %v1486_v39, 2 }
 0x13b   : > { %4175 = vrcp.f32 %v890_v15  ;;  %v916_v30 = vmul.f32 1.442695, %v914_v32  ;;  %v1605_v17 = vrot.slane %v4018_v46, %v4452_v10  ;;  %v1608_v26 = vmul.f32 %v5805_v59, %v1601_v5  ;;  %v1915_v15 = vpop.permute.xlu0 %1914  ;;  %v5827_v32 = vld [vmem:[%s6276_s1 + $0x3] ss:$8 sm:$0x7] }
 0x13c   : > { %v1663_v60 = vrot.slane %v4021_v62, %v4441_v7  ;;  %v1493_v33 = vsel %vm422_vm1, %v1491_v44, %v1492_v1  ;;  %v1496_v4 = vsel %vm422_vm1, %v1494_v56, %v1495_v52  ;;  %v1667_v40 = vrot.slane %v4021_v62, %v4452_v10  ;;  %v5836_v50 = vld [vmem:[%s6276_s1] ss:$8 sm:$0x7]  ;;  %v5841_v44 = vld [vmem:[%s6276_s1 + $0x6] ss:$8 sm:$0x7] }
 0x13d   : > { %v1781_v57 = vrot.slane %v4024_v20, %v4441_v7  ;;  %v1499_v24 = vadd.f32 %v1493_v33, %v1381_v11  ;;  %v1500_v61 = vadd.f32 %v1496_v4, %v1382_v43  ;;  %v1609_v34 = vmul.f32 %v5605_v8, %v1605_v17 }
 0x13e   : > { %v1670_v63 = vmul.f32 %v5805_v59, %v1663_v60  ;;  %v1671_v49 = vmul.f32 %v5605_v8, %v1667_v40  ;;  %v1672_v46 = vmul.f32 %v4220_v27, %v1663_v60  ;;  %v1673_v37 = vmul.f32 %v4221_v29, %v1667_v40 }
 0x13f   : > { %v1785_v54 = vrot.slane %v4024_v20, %v4452_v10  ;;  %v1610_v45 = vadd.f32 %v1608_v26, %v1499_v24  ;;  %v1611_v28 = vadd.f32 %v1609_v34, %v1500_v61  ;;  %v1788_v14 = vmul.f32 %v5805_v59, %v1781_v57  ;;  %v1917_v20 = vpop.permute.xlu1 %1916  ;;  %v4222_v61 = vld [vmem:[%s4457_s23 + $0x30] sm:$0xff] }
 0x140   : > { %v1678_v47 = vrot.slane %v1670_v63, 1  ;;  %v1679_v41 = vrot.slane %v1672_v46, 1  ;;  %v1681_v13 = vrot.slane %v1671_v49, 1  ;;  %v1682_v58 = vrot.slane %v1673_v37, 1 }
 0x141   : > { %v1789_v38 = vmul.f32 %v5605_v8, %v1785_v54  ;;  %v1790_v51 = vmul.f32 %v4220_v27, %v1781_v57  ;;  %v1791_v55 = vmul.f32 %v4221_v29, %v1785_v54  ;;  %v1796_v5 = vrot.slane %v1788_v14, 2  ;;  %v4223_v27 = vld [vmem:[%s4457_s23 + $0x48] sm:$0x3]  ;;  %v5872_v14 = vld [vmem:[%s6276_s1 + $0x1c] ss:$8 sm:$0x7] }
 0x142   : > { %v5820_v25 = vpop.eup %4171  ;;  %4177 = vpow2.f32 %v916_v30  ;;  %v1680_v23 = vsel %vm300_vm0, %v1678_v47, %v1679_v41  ;;  %v1683_v42 = vsel %vm300_vm0, %v1681_v13, %v1682_v58  ;;  %v1903_v56 = vsel %vm846_vm2, %v5772_v22, %v1900_v6  ;;  %v5866_v37 = vld [vmem:[%s6276_s1 + $0x19] ss:$8 sm:$0x7] }
 0x143   : > { %v895_v35 = vmul.f32 1.0614054, %v5820_v25  ;;  %v1799_v53 = vrot.slane %v1789_v38, 2  ;;  %v1686_v62 = vadd.f32 %v1680_v23, %v1610_v45  ;;  %v1687_v11 = vadd.f32 %v1683_v42, %v1611_v28 }
 0x144   : > { %v5829_v18 = vpop.eup %4173  ;;  %v1797_v43 = vrot.slane %v1790_v51, 2  ;;  %v1800_v1 = vrot.slane %v1791_v55, 2  ;;  %v1904_v52 = vsel %vm846_vm2, %v1900_v6, %v5791_v16  ;;  %v1918_v30 = vsel %vm862_vm3, %v1913_v21, %v1915_v15 }
 0x145   : > { %v897_v39 = vadd.f32 -1.4531521, %v895_v35  ;;  %v2029_v60 = vrot.slane %v5836_v50, %v4441_v7  ;;  %v2091_v33 = vrot.slane %v5827_v32, %v4441_v7  ;;  %v1919_v16 = vsel %vm862_vm3, %v1915_v15, %v1917_v20 }
 0x146   : > { %v1798_v26 = vsel %vm422_vm1, %v1796_v5, %v1797_v43  ;;  %v1801_v22 = vsel %vm422_vm1, %v1799_v53, %v1800_v1  ;;  %v2209_v6 = vrot.slane %v5841_v44, %v4441_v7  ;;  %v2333_v42 = vrot.slane %v5866_v37, %v4441_v7 }
 0x147   : > { %v899_v17 = vmul.f32 %v5820_v25, %v897_v39  ;;  %v1804_v40 = vadd.f32 %v1798_v26, %v1686_v62  ;;  %v1805_v24 = vadd.f32 %v1801_v22, %v1687_v11  ;;  %v2036_v34 = vmul.f32 %v4222_v61, %v2029_v60  ;;  %v4224_v22 = vld [vmem:[%s4457_s23 + $0x78] sm:$0x3] }
 0x148   : > { %v5854_v4 = vpop.eup %4175  ;;  %v2098_v49 = vmul.f32 %v4222_v61, %v2091_v33  ;;  %v2100_v46 = vmul.f32 %v4223_v27, %v2091_v33  ;;  %v2216_v29 = vmul.f32 %v4222_v61, %v2209_v6  ;;  %v2218_v47 = vmul.f32 %v4223_v27, %v2209_v6 }
 0x149   : > { %v894_v57 = vmul.f32 1.0614054, %v5854_v4  ;;  %v901_v21 = vadd.f32 1.4214138, %v899_v17  ;;  %v1907_v63 = vadd.f32 %v1903_v56, %v1804_v40  ;;  %v1908_v28 = vadd.f32 %v1904_v52, %v1805_v24 }
 0x14a   : > { %v2106_v13 = vrot.slane %v2098_v49, 1  ;;  %v2107_v58 = vrot.slane %v2100_v46, 1  ;;  %v2224_v38 = vrot.slane %v2216_v29, 2  ;;  %v2225_v5 = vrot.slane %v2218_v47, 2 }
 0x14b   : > { %v896_v54 = vadd.f32 -1.4531521, %v894_v57  ;;  %v903_v45 = vmul.f32 %v5820_v25, %v901_v21  ;;  %v1922_v41 = vadd.f32 %v1918_v30, %v1907_v63  ;;  %v1923_v55 = vadd.f32 %v1919_v16, %v1908_v28  ;;  %v5896_v16 = vld [vmem:[%s6276_s1 + $0x1f] ss:$8 sm:$0x7] }
 0x14c   : > { %v2108_v23 = vsel %vm300_vm0, %v2106_v13, %v2107_v58  ;;  %v2395_v53 = vrot.slane %v5872_v14, %v4441_v7  ;;  %v2226_v1 = vsel %vm422_vm1, %v2224_v38, %v2225_v5  ;;  %v2340_v33 = vmul.f32 %v5805_v59, %v2333_v42  ;;  %v5912_v13 = vld [vmem:[%s6276_s1 + $0x35] ss:$8 sm:$0x7]  ;;  %v5920_v38 = vld [vmem:[%s6276_s1 + $0x32] ss:$8 sm:$0x7] }
 0x14d   : > { %v898_v35 = vmul.f32 %v5854_v4, %v896_v54  ;;  %v905_v51 = vadd.f32 -0.28449672, %v903_v45  ;;  %v1924_v15 = vadd.f32 %v1922_v41, %v5751_v2  ;;  %v1925_v11 = vadd.f32 %v1923_v55, %v5726_v19  ;;  %v5926_v5 = vld [vmem:[%s6276_s1 + $0x48] ss:$8 sm:$0x7] }
 0x14e   : > { %v2114_v43 = vadd.f32 %v2108_v23, %v2036_v34  ;;  %v2402_v56 = vmul.f32 %v5805_v59, %v2395_v53  ;;  %v2404_v40 = vmul.f32 %v4224_v22, %v2395_v53  ;;  %v883_v61 = vmul.f32 0.5, %v5744_v12 }
 0x14f   : > { %v900_v39 = vadd.f32 1.4214138, %v898_v35  ;;  %v907_v62 = vmul.f32 %v5820_v25, %v905_v51  ;;  %v5883_v20 = vmul.f32 0.70710677, %v1924_v15  ;;  %v4178_v52 = vpop.eup %4177  ;;  %v5888_v26 = vmul.f32 0.70710677, %v1925_v11 }
 0x150   : > { %v2232_v24 = vadd.f32 %v2226_v1, %v2114_v43  ;;  %v2410_v63 = vrot.slane %v2402_v56, 1  ;;  %vm925_vm4 = vcmp.ge.f32.partialorder %v5754_v36, 0.0  ;;  %v5905_v29 = vmul.f32 0.5, %v5767_v9 }
 0x151   : > { %v902_v30 = vmul.f32 %v5854_v4, %v900_v39  ;;  %v909_v17 = vadd.f32 0.2548296, %v907_v62  ;;  %v1930_v60 = vand.u32 2147483647, %v5883_v20  ;;  %v1931_v21 = vand.u32 2147483647, %v5888_v26 }
 0x152   : > { %v2411_v45 = vrot.slane %v2404_v40, 1  ;;  %v2342_v41 = vadd.f32 %v2340_v33, %v2232_v24  ;;  %vm924_vm5 = vcmp.ge.f32.partialorder %v5775_v48, 0.0  ;;  %v5928_v23 = vmul.f32 0.5, %v1924_v15  ;;  %v5941_v33 = vld [vmem:[%s4457_s23 + $0x90] sm:$0xff] }
 0x153   : > { %v904_v6 = vadd.f32 -0.28449672, %v902_v30  ;;  %v911_v57 = vmul.f32 %v5820_v25, %v909_v17  ;;  %v1932_v34 = vmul.f32 0.3275911, %v1930_v60  ;;  %v1933_v46 = vmul.f32 0.3275911, %v1931_v21 }
 0x154   : > { %v2513_v25 = vrot.slane %v5896_v16, %v4441_v7  ;;  %v2412_v9 = vsel %vm300_vm0, %v2410_v63, %v2411_v45  ;;  %v1957_v55 = vsub.f32 0.0, %v1931_v21  ;;  %v5930_v42 = vmul.f32 0.5, %v1925_v11 }
 0x155   : > { %v906_v49 = vmul.f32 %v5854_v4, %v904_v6  ;;  %v921_v27 = vmul.f32 %v5829_v18, %v911_v57  ;;  %v1934_v54 = vadd.f32 1.0, %v1932_v34  ;;  %v1935_v12 = vadd.f32 1.0, %v1933_v46  ;;  %v4226_v57 = vld [vmem:[%s4457_s23 + $0xa8] sm:$0x3] }
 0x156   : > { %v1956_v18 = vsub.f32 0.0, %v1930_v60  ;;  %v2520_v58 = vmul.f32 %v5805_v59, %v2513_v25  ;;  %v2522_v59 = vmul.f32 %v4224_v22, %v2513_v25  ;;  %v2418_v62 = vadd.f32 %v2412_v9, %v2342_v41 }
 0x157   : > { %v908_v28 = vadd.f32 0.2548296, %v906_v49  ;;  %v923_v47 = vsub.f32 1.0, %v921_v27  ;;  %4179 = vrcp.f32 %v1934_v54  ;;  %v2638_v43 = vrot.slane %v5920_v38, %v4441_v7 }
 0x158   : > { %4181 = vrcp.f32 %v1935_v12  ;;  %v2528_v53 = vrot.slane %v2520_v58, 2  ;;  %v2529_v56 = vrot.slane %v2522_v59, 2  ;;  %v2700_v15 = vrot.slane %v5912_v13, %v4441_v7 }
 0x159   : > { %v910_v35 = vmul.f32 %v5854_v4, %v908_v28  ;;  %v927_v51 = vsub.f32 0.0, %v923_v47  ;;  %v2818_v11 = vrot.slane %v5926_v5, %v4441_v7  ;;  %v1958_v17 = vmul.f32 %v1956_v18, %v1930_v60 }
 0x15a   : > { %v2645_v36 = vmul.f32 %v5941_v33, %v2638_v43  ;;  %v2530_v40 = vsel %vm422_vm1, %v2528_v53, %v2529_v56  ;;  %v2707_v6 = vmul.f32 %v5941_v33, %v2700_v15  ;;  %v2709_v24 = vmul.f32 %v4226_v57, %v2700_v15  ;;  %v5960_v53 = vpop.permute.xlu1 %2936  ;;  %v4228_v15 = vld [vmem:[%s4457_s23 + $0x50] sm:$0x3] }
 0x15b   : > { %v920_v39 = vmul.f32 %v4178_v52, %v910_v35  ;;  %v929_v4 = vsel %vm925_vm4, %v923_v47, %v927_v51  ;;  %v1959_v52 = vmul.f32 %v1957_v55, %v1931_v21  ;;  %v2536_v63 = vadd.f32 %v2530_v40, %v2418_v62 }
 0x15c   : > { %v931_v1 = vadd.f32 1.0, %v929_v4  ;;  %v2825_v49 = vmul.f32 %v5941_v33, %v2818_v11  ;;  %v2827_v60 = vmul.f32 %v4226_v57, %v2818_v11  ;;  %v2715_v46 = vrot.slane %v2707_v6, 1  ;;  %v2935_v4 = vpop.permute.xlu0 %2934 }
 0x15d   : > { %v922_v30 = vsub.f32 1.0, %v920_v39  ;;  %v2716_v54 = vrot.slane %v2709_v24, 1  ;;  %v2647_v45 = vadd.f32 %v2645_v36, %v2536_v63  ;;  %v1960_v9 = vmul.f32 1.442695, %v1958_v17 }
 0x15e   : > { %v933_v22 = vmul.f32 %v931_v1, %v883_v61  ;;  %v2833_v25 = vrot.slane %v2825_v49, 2  ;;  %v2834_v28 = vrot.slane %v2827_v60, 2  ;;  %v1962_v58 = vmul.f32 1.442695, %v1959_v52  ;;  %v4227_v1 = vld [vmem:[%s4457_s23 + $0x38] sm:$0xff] }
 0x15f   : > { %v926_v34 = vsub.f32 0.0, %v922_v30  ;;  %v2717_v18 = vsel %vm300_vm0, %v2715_v46, %v2716_v54  ;;  %v2033_v35 = vrot.slane %v5836_v50, %v4452_v10  ;;  %v2095_v48 = vrot.slane %v5827_v32, %v4452_v10 }
 0x160   : > { %v949_v21 = vrot.slane %v933_v22, 4  ;;  %v958_v27 = vmul.f32 %v933_v22, %v933_v22  ;;  %v2723_v39 = vadd.f32 %v2717_v18, %v2647_v45  ;;  %v2835_v43 = vsel %vm422_vm1, %v2833_v25, %v2834_v28 }
 0x161   : > { %v928_v61 = vsel %vm924_vm5, %v922_v30, %v926_v34  ;;  %v2099_v56 = vmul.f32 %v4227_v1, %v2095_v48  ;;  %v2101_v50 = vmul.f32 %v4228_v15, %v2095_v48  ;;  %v2213_v32 = vrot.slane %v5841_v44, %v4452_v10 }
 0x162   : > { %v930_v47 = vadd.f32 1.0, %v928_v61  ;;  %v950_v12 = vadd.f32 %v949_v21, %v933_v22  ;;  %v965_v41 = vrot.slane %v958_v27, 4  ;;  %4183 = vpow2.f32 %v1960_v9 }
 0x163   : > { %v2940_v6 = vsel %vm846_vm2, %v2935_v4, %v5960_v53  ;;  %v2841_v24 = vadd.f32 %v2835_v43, %v2723_v39  ;;  %v2109_v34 = vrot.slane %v2099_v56, 1  ;;  %v2037_v49 = vmul.f32 %v4227_v1, %v2033_v35 }
 0x164   : > { %v932_v51 = vmul.f32 %v930_v47, %v5905_v29  ;;  %v951_v55 = vrot.slane %v950_v12, 2  ;;  %v966_v59 = vadd.f32 %v965_v41, %v958_v27  ;;  %v5962_v62 = vpop.eup %4179  ;;  %v2110_v60 = vrot.slane %v2101_v50, 1 }
 0x165   : > { %v5969_v11 = vpop.eup %4181  ;;  %v1938_v36 = vmul.f32 1.0614054, %v5962_v62  ;;  %4185 = vpow2.f32 %v1962_v58  ;;  %v2217_v46 = vmul.f32 %v4227_v1, %v2213_v32  ;;  %v2337_v25 = vrot.slane %v5866_v37, %v4452_v10  ;;  %v6000_v1 = vpop.permute.xlu0 %2938 }
 0x166   : > { %v943_v29 = vrot.slane %v932_v51, 4  ;;  %v957_v30 = vmul.f32 %v932_v51, %v932_v51  ;;  %v4115_v17 = vpack.c.bf16 %v933_v22, %v932_v51  ;;  %v952_v52 = vadd.f32 %v951_v55, %v950_v12 }
 0x167   : > { %v1939_v40 = vmul.f32 1.0614054, %v5969_v11  ;;  %v967_v44 = vrot.slane %v966_v59, 2  ;;  %v1940_v63 = vadd.f32 -1.4531521, %v1938_v36  ;;  %v2111_v45 = vsel %vm300_vm0, %v2109_v34, %v2110_v60 }
 0x168   : > { %v944_v57 = vadd.f32 %v943_v29, %v932_v51  ;;  %942 = vst [vmem:[%s5977_s20] sm:$0xff] %v4115_v17  ;;  %v959_v21 = vrot.slane %v957_v30, 4  ;;  %v953_v27 = vrot.slane %v952_v52, 1  ;;  %v5987_v12 = vadd.f32 %v2940_v6, %v2841_v24  ;;  %v4229_v17 = vld [vmem:[%s4457_s23 + $0x80] sm:$0x3] }
 0x169   : > { %v1941_v22 = vadd.f32 -1.4531521, %v1939_v40  ;;  %v1942_v54 = vmul.f32 %v5962_v62, %v1940_v63  ;;  %v5985_v47 = vadd.f32 %v967_v44, %v966_v59  ;;  %v2219_v41 = vmul.f32 %v4228_v15, %v2213_v32 }
 0x16a   : > { %v945_v28 = vrot.slane %v944_v57, 2  ;;  %v2115_v35 = vadd.f32 %v2111_v45, %v2037_v49  ;;  %v2227_v58 = vrot.slane %v2217_v46, 2  ;;  %v5989_v48 = vadd.f32 %v959_v21, %v957_v30 }
 0x16b   : > { %v1943_v61 = vmul.f32 %v5969_v11, %v1941_v22  ;;  %v1944_v18 = vadd.f32 1.4214138, %v1942_v54  ;;  %v5991_v51 = vadd.f32 %v953_v27, %v952_v52  ;;  %v2228_v55 = vrot.slane %v2219_v41, 2 }
 0x16c   : > { %v2399_v39 = vrot.slane %v5872_v14, %v4452_v10  ;;  %v2341_v4 = vmul.f32 %v5605_v8, %v2337_v25  ;;  %v2517_v43 = vrot.slane %v5896_v16, %v4452_v10  ;;  %v969_v56 = vrot.slane %v5985_v47, 1 }
 0x16d   : > { %v1945_v9 = vadd.f32 1.4214138, %v1943_v61  ;;  %v1946_v37 = vmul.f32 %v5962_v62, %v1944_v18  ;;  %v2229_v15 = vsel %vm422_vm1, %v2227_v58, %v2228_v55  ;;  %v2642_v14 = vrot.slane %v5920_v38, %v4452_v10  ;;  %v2950_v38 = vpop.permute.xlu1 %2949  ;;  %v2952_v61 = vpop.permute.xlu0 %2951 }
 0x16e   : > { %v2403_v50 = vmul.f32 %v5605_v8, %v2399_v39  ;;  %v2233_v30 = vadd.f32 %v2229_v15, %v2115_v35  ;;  %v2405_v52 = vmul.f32 %v4229_v17, %v2399_v39  ;;  %v6008_v36 = vadd.f32 %v945_v28, %v944_v57 }
 0x16f   : > { %v1947_v59 = vmul.f32 %v5969_v11, %v1945_v9  ;;  %v1948_v32 = vadd.f32 -0.28449672, %v1946_v37  ;;  %v2521_v16 = vmul.f32 %v5605_v8, %v2517_v43  ;;  %v2523_v6 = vmul.f32 %v4229_v17, %v2517_v43  ;;  %v4184_v22 = vpop.eup %4183 }
 0x170   : > { %v2413_v40 = vrot.slane %v2403_v50, 1  ;;  %v2343_v34 = vadd.f32 %v2341_v4, %v2233_v30  ;;  %v2414_v63 = vrot.slane %v2405_v52, 1  ;;  %v2704_v21 = vrot.slane %v5912_v13, %v4452_v10  ;;  %v4230_v13 = vld [vmem:[%s4457_s23 + $0xb0] sm:$0x3] }
 0x171   : > { %v1949_v29 = vadd.f32 -0.28449672, %v1947_v59  ;;  %v1950_v44 = vmul.f32 %v5962_v62, %v1948_v32  ;;  %v2531_v49 = vrot.slane %v2521_v16, 2  ;;  %v2532_v60 = vrot.slane %v2523_v6, 2 }
 0x172   : > { %v2822_v57 = vrot.slane %v5926_v5, %v4452_v10  ;;  %v2415_v46 = vsel %vm300_vm0, %v2413_v40, %v2414_v63  ;;  %v2646_v54 = vmul.f32 %v5644_v31, %v2642_v14  ;;  %vm1968_vm6 = vcmp.ge.f32.partialorder %v5883_v20, 0.0  ;;  %v4186_v18 = vpop.eup %4185  ;;  %v6031_v4 = vld [vmem:[%s6276_s1 + $0x3] ss:$8 sm:$0x7] }
 0x173   : > { %v1951_v24 = vmul.f32 %v5969_v11, %v1949_v29  ;;  %v1952_v27 = vadd.f32 0.2548296, %v1950_v44  ;;  %vm1969_vm7 = vcmp.ge.f32.partialorder %v5888_v26, 0.0  ;;  %v2419_v45 = vadd.f32 %v2415_v46, %v2343_v34  ;;  %v2954_v29 = vpop.permute.xlu1 %2953  ;;  %v6046_v6 = vld [vmem:[%s6276_s1] ss:$8 sm:$0x7] }
 0x174   : > { %v2533_v25 = vsel %vm422_vm1, %v2531_v49, %v2532_v60  ;;  %v2708_v28 = vmul.f32 %v5644_v31, %v2704_v21  ;;  %v2710_v41 = vmul.f32 %v4230_v13, %v2704_v21  ;;  %v2826_v35 = vmul.f32 %v5644_v31, %v2822_v57 }
 0x175   : > { %v1953_v8 = vadd.f32 0.2548296, %v1951_v24  ;;  %v1954_v5 = vmul.f32 %v5962_v62, %v1952_v27  ;;  %v2828_v58 = vmul.f32 %v4230_v13, %v2822_v57  ;;  %v2537_v55 = vadd.f32 %v2533_v25, %v2419_v45  ;;  %v6036_v62 = vld [vmem:[%s6276_s1 + $0x6] ss:$8 sm:$0x7] }
 0x176   : > { %v2718_v39 = vrot.slane %v2708_v28, 1  ;;  %v2719_v37 = vrot.slane %v2710_v41, 1  ;;  %v2955_v59 = vsel %vm862_vm3, %v2950_v38, %v2952_v61  ;;  %v2836_v50 = vrot.slane %v2826_v35, 2  ;;  %v4231_v27 = vld [vmem:[%s4457_s23 + $0x60] sm:$0xff]  ;;  %v4232_v45 = vld [vmem:[%s4457_s23 + $0x78] sm:$0x3] }
 0x177   : > { %v1955_v9 = vmul.f32 %v5969_v11, %v1953_v8  ;;  %v1964_v43 = vmul.f32 %v4184_v22, %v1954_v5  ;;  %v2837_v14 = vrot.slane %v2828_v58, 2  ;;  %v961_v31 = vrot.slane %v5989_v48, 2 }
 0x178   : > { %v2648_v11 = vadd.f32 %v2646_v54, %v2537_v55  ;;  %v2720_v32 = vsel %vm300_vm0, %v2718_v39, %v2719_v37  ;;  %v2959_v30 = vadd.f32 %v2955_v59, %v5987_v12  ;;  %v947_v17 = vrot.slane %v6008_v36, 1 }
 0x179   : > { %v1965_v15 = vmul.f32 %v4186_v18, %v1955_v9  ;;  %v1966_v52 = vsub.f32 1.0, %v1964_v43  ;;  %v2838_v16 = vsel %vm422_vm1, %v2836_v50, %v2837_v14  ;;  %v3128_v12 = vrot.slane %v6031_v4, %v4441_v7 }
 0x17a   : > { %v2724_v44 = vadd.f32 %v2720_v32, %v2648_v11  ;;  %v6049_v24 = vadd.f32 %v2959_v30, %v5751_v2  ;;  %v3246_v34 = vrot.slane %v6036_v62, %v4441_v7  ;;  %v2941_v38 = vsel %vm846_vm2, %v5960_v53, %v6000_v1 }
 0x17b   : > { %v1967_v40 = vsub.f32 1.0, %v1965_v15  ;;  %v1970_v63 = vsub.f32 0.0, %v1966_v52  ;;  %v2956_v49 = vsel %vm862_vm3, %v2952_v61, %v2954_v29  ;;  %v3066_v57 = vrot.slane %v6046_v6, %v4441_v7 }
 0x17c   : > { %v2842_v60 = vadd.f32 %v2838_v16, %v2724_v44  ;;  %v6060_v21 = vmul.f32 0.70710677, %v6049_v24  ;;  %v3135_v8 = vmul.f32 %v4231_v27, %v3128_v12  ;;  %v3137_v25 = vmul.f32 %v4232_v45, %v3128_v12 }
 0x17d   : > { %v1971_v22 = vsub.f32 0.0, %v1967_v40  ;;  %v1972_v46 = vsel %vm1968_vm6, %v1966_v52, %v1970_v63  ;;  %v3253_v53 = vmul.f32 %v4231_v27, %v3246_v34  ;;  %v6072_v41 = vadd.f32 %v961_v31, %v5989_v48 }
 0x17e   : > { %v1974_v1 = vadd.f32 1.0, %v1972_v46  ;;  %v2945_v28 = vadd.f32 %v2941_v38, %v2842_v60  ;;  %v2967_v13 = vand.u32 2147483647, %v6060_v21  ;;  %v3143_v18 = vrot.slane %v3135_v8, 1 }
 0x17f   : > { %v1973_v54 = vsel %vm1969_vm7, %v1967_v40, %v1971_v22  ;;  %v3144_v5 = vrot.slane %v3137_v25, 1  ;;  %v3255_v9 = vmul.f32 %v4232_v45, %v3246_v34  ;;  %v3073_v39 = vmul.f32 %v4231_v27, %v3066_v57  ;;  %v4098_v45 = vld [vmem:[%s6276_s1 + $0x1c] ss:$8 sm:$0x7] }
 0x180   : > { %v1975_v61 = vadd.f32 1.0, %v1973_v54  ;;  %v1976_v20 = vmul.f32 %v1974_v1, %v5928_v23  ;;  %v2960_v26 = vadd.f32 %v2956_v49, %v2945_v28  ;;  %v2969_v58 = vmul.f32 0.3275911, %v2967_v13  ;;  %v3667_v28 = vpop.permute.xlu0 %3666 }
 0x181   : > { %v2993_v55 = vsub.f32 0.0, %v2967_v13  ;;  %v3145_v37 = vsel %vm300_vm0, %v3143_v18, %v3144_v5  ;;  %v3261_v59 = vrot.slane %v3253_v53, 2  ;;  %v3262_v23 = vrot.slane %v3255_v9, 2 }
 0x182   : > { %v1977_v35 = vmul.f32 %v1975_v61, %v5930_v42  ;;  %v1988_v15 = vrot.slane %v1976_v20, 4  ;;  %v2002_v48 = vmul.f32 %v1976_v20, %v1976_v20  ;;  %v6078_v31 = vadd.f32 %v2960_v26, %v5726_v19  ;;  %v6083_v42 = vld [vmem:[%s6276_s1 + $0x19] ss:$8 sm:$0x7] }
 0x183   : > { %v2971_v11 = vadd.f32 1.0, %v2969_v58  ;;  %v2995_v52 = vmul.f32 %v2993_v55, %v2967_v13  ;;  %v3151_v44 = vadd.f32 %v3145_v37, %v3073_v39  ;;  %v3370_v22 = vrot.slane %v6083_v42, %v4441_v7  ;;  %v4101_v26 = vld [vmem:[%s6276_s1 + $0x1f] ss:$8 sm:$0x7] }
 0x184   : > { %v4116_v43 = vpack.c.bf16 %v1977_v35, %v1976_v20  ;;  %v1994_v50 = vrot.slane %v1977_v35, 4  ;;  %v2003_v14 = vmul.f32 %v1977_v35, %v1977_v35  ;;  %v1989_v32 = vadd.f32 %v1988_v15, %v1976_v20 }
 0x185   : > { %v2004_v30 = vrot.slane %v2002_v48, 4  ;;  %v6087_v16 = vmul.f32 0.70710677, %v6078_v31  ;;  %4187 = vrcp.f32 %v2971_v11  ;;  %v6092_v38 = vadd.f32 %v947_v17, %v6008_v36 }
 0x186   : > { %4028 = vst [vmem:[%s5977_s20 + $0x8] sm:$0xff] %v4116_v43  ;;  %v1995_v29 = vadd.f32 %v1994_v50, %v1977_v35  ;;  %v2010_v40 = vrot.slane %v2003_v14, 4  ;;  %v1990_v12 = vrot.slane %v1989_v32, 2  ;;  %v3263_v57 = vsel %vm422_vm1, %v3261_v59, %v3262_v23  ;;  %v6114_v59 = vpop.permute.xlu1 %3668 }
 0x187   : > { %v2005_v63 = vadd.f32 %v2004_v30, %v2002_v48  ;;  %v2968_v60 = vand.u32 2147483647, %v6087_v16  ;;  %v2997_v54 = vmul.f32 1.442695, %v2995_v52  ;;  %v3269_v61 = vadd.f32 %v3263_v57, %v3151_v44  ;;  %v4233_v48 = vld [vmem:[%s4457_s23 + $0xa8] sm:$0x3] }
 0x188   : > { %v1996_v34 = vrot.slane %v1995_v29, 2  ;;  %v2011_v49 = vadd.f32 %v2010_v40, %v2003_v14  ;;  %v1991_v27 = vadd.f32 %v1990_v12, %v1989_v32  ;;  %v3377_v18 = vmul.f32 %v5941_v33, %v3370_v22  ;;  %v3671_v40 = vpop.permute.xlu0 %3670 }
 0x189   : > { %v2006_v46 = vrot.slane %v2005_v63, 2  ;;  %v2970_v53 = vmul.f32 0.3275911, %v2968_v60  ;;  %v2994_v1 = vsub.f32 0.0, %v2968_v60  ;;  %v3432_v35 = vrot.slane %v4098_v45, %v4441_v7 }
 0x18a   : > { %v1997_v8 = vadd.f32 %v1996_v34, %v1995_v29  ;;  %v2012_v25 = vrot.slane %v2011_v49, 2  ;;  %v1992_v36 = vrot.slane %v1991_v27, 1  ;;  %v963_v58 = vrot.slane %v6072_v41, 1 }
 0x18b   : > { %v6099_v13 = vadd.f32 %v2006_v46, %v2005_v63  ;;  %v2972_v9 = vadd.f32 1.0, %v2970_v53  ;;  %v2996_v20 = vmul.f32 %v2994_v1, %v2968_v60  ;;  %4189 = vpow2.f32 %v2997_v54  ;;  %v4234_v63 = vld [vmem:[%s4457_s23 + $0x68] sm:$0xff] }
 0x18c   : > { %v1998_v17 = vrot.slane %v1997_v8, 1  ;;  %v6102_v5 = vadd.f32 %v2012_v25, %v2011_v49  ;;  %v6109_v55 = vadd.f32 %v1992_v36, %v1991_v27  ;;  %v3379_v43 = vadd.f32 %v3377_v18, %v3269_v61  ;;  %v3682_v25 = vpop.permute.xlu1 %3681 }
 0x18d   : > { %v2008_v37 = vrot.slane %v6099_v13, 1  ;;  %4191 = vrcp.f32 %v2972_v9  ;;  %v3439_v15 = vmul.f32 %v5941_v33, %v3432_v35  ;;  %v3441_v14 = vmul.f32 %v4233_v48, %v3432_v35 }
 0x18e   : > { %v6111_v39 = vadd.f32 %v1998_v17, %v1997_v8  ;;  %v2014_v50 = vrot.slane %v6102_v5, 1  ;;  %v3550_v11 = vrot.slane %v4101_v26, %v4441_v7  ;;  %v3070_v23 = vrot.slane %v6046_v6, %v4452_v10  ;;  %v4235_v7 = vld [vmem:[%s4457_s23 + $0x80] sm:$0x3] }
 0x18f   : > { %v2999_v32 = vmul.f32 1.442695, %v2996_v20  ;;  %v3447_v29 = vrot.slane %v3439_v15, 1  ;;  %v3132_v30 = vrot.slane %v6031_v4, %v4452_v10  ;;  %v3250_v52 = vrot.slane %v6036_v62, %v4452_v10  ;;  %v3684_v15 = vpop.permute.xlu0 %3683 }
 0x190   : > { %v3448_v44 = vrot.slane %v3441_v14, 1  ;;  %v3557_v12 = vmul.f32 %v5941_v33, %v3550_v11  ;;  %v3559_v34 = vmul.f32 %v4233_v48, %v3550_v11  ;;  %v3074_v22 = vmul.f32 %v4234_v63, %v3070_v23  ;;  %v4236_v14 = vld [vmem:[%s4457_s23 + $0x98] sm:$0xff] }
 0x191   : > { %v3136_v49 = vmul.f32 %v4234_v63, %v3132_v30  ;;  %v3138_v60 = vmul.f32 %v4235_v7, %v3132_v30  ;;  %v3254_v57 = vmul.f32 %v4234_v63, %v3250_v52  ;;  %v3256_v6 = vmul.f32 %v4235_v7, %v3250_v52  ;;  %v4237_v52 = vld [vmem:[%s4457_s23 + $0xb0] sm:$0x3]  ;;  %s4119_s23 = sshll.u32 %s4383_s19, 9 }
 0x192   : > { %v6129_v27 = vpop.eup %4187  ;;  %v3449_v8 = vsel %vm300_vm0, %v3447_v29, %v3448_v44  ;;  %v3565_v4 = vrot.slane %v3557_v12, 2  ;;  %v3566_v46 = vrot.slane %v3559_v34, 2  ;;  %v3374_v62 = vrot.slane %v6083_v42, %v4452_v10  ;;  %s6206_s27 = scalar_lea.hbm %s6278_s3, %s4119_s23 }
 0x193   : > { %v2975_v54 = vmul.f32 1.0614054, %v6129_v27  ;;  %v3455_v33 = vadd.f32 %v3449_v8, %v3379_v43  ;;  %v3146_v53 = vrot.slane %v3136_v49, 1  ;;  %v3147_v1 = vrot.slane %v3138_v60, 1 }
 0x194   : > { %v3567_v61 = vsel %vm422_vm1, %v3565_v4, %v3566_v46  ;;  %v3672_v36 = vsel %vm846_vm2, %v3667_v28, %v6114_v59  ;;  %v3264_v17 = vrot.slane %v3254_v57, 2  ;;  %v3265_v18 = vrot.slane %v3256_v6, 2  ;;  %v3686_v57 = vpop.permute.xlu1 %3685 }
 0x195   : > { %v2977_v9 = vadd.f32 -1.4531521, %v2975_v54  ;;  %v3573_v20 = vadd.f32 %v3567_v61, %v3455_v33  ;;  %v3148_v35 = vsel %vm300_vm0, %v3146_v53, %v3147_v1  ;;  %v3436_v42 = vrot.slane %v4098_v45, %v4452_v10 }
 0x196   : > { %v3152_v48 = vadd.f32 %v3148_v35, %v3074_v22  ;;  %v3266_v43 = vsel %vm422_vm1, %v3264_v17, %v3265_v18  ;;  %v3378_v11 = vmul.f32 %v4236_v14, %v3374_v62  ;;  %v3554_v23 = vrot.slane %v4101_v26, %v4452_v10 }
 0x197   : > { %v2979_v29 = vmul.f32 %v6129_v27, %v2977_v9  ;;  %v3676_v28 = vadd.f32 %v3672_v36, %v3573_v20  ;;  %v3440_v30 = vmul.f32 %v4236_v14, %v3436_v42  ;;  %v3442_v44 = vmul.f32 %v4237_v52, %v3436_v42 }
 0x198   : > { %v3270_v12 = vadd.f32 %v3266_v43, %v3152_v48  ;;  %v3558_v34 = vmul.f32 %v4236_v14, %v3554_v23  ;;  %v3560_v63 = vmul.f32 %v4237_v52, %v3554_v23  ;;  %v3687_v49 = vsel %vm862_vm3, %v3682_v25, %v3684_v15  ;;  %v4190_v45 = vpop.eup %4189 }
 0x199   : > { %v2981_v7 = vadd.f32 1.4214138, %v2979_v29  ;;  %4193 = vpow2.f32 %v2999_v32  ;;  %v3450_v22 = vrot.slane %v3440_v30, 1  ;;  %v3451_v60 = vrot.slane %v3442_v44, 1 }
 0x19a   : > { %v4192_v6 = vpop.eup %4191  ;;  %v3380_v8 = vadd.f32 %v3378_v11, %v3270_v12  ;;  %v3568_v10 = vrot.slane %v3558_v34, 2  ;;  %v3569_v26 = vrot.slane %v3560_v63, 2  ;;  %v3691_v4 = vadd.f32 %v3687_v49, %v3676_v28 }
 0x19b   : > { %v2976_v46 = vmul.f32 1.0614054, %v4192_v6  ;;  %v2983_v62 = vmul.f32 %v6129_v27, %v2981_v7  ;;  %v3452_v54 = vsel %vm300_vm0, %v3450_v22, %v3451_v60  ;;  %v3673_v33 = vsel %vm846_vm2, %v6114_v59, %v3671_v40 }
 0x19c   : > { %v3456_v25 = vadd.f32 %v3452_v54, %v3380_v8  ;;  %v3570_v53 = vsel %vm422_vm1, %v3568_v10, %v3569_v26  ;;  %v3688_v32 = vsel %vm862_vm3, %v3684_v15, %v3686_v57  ;;  %v6153_v1 = vadd.f32 %v3691_v4, %v5751_v2 }
 0x19d   : > { %v2978_v61 = vadd.f32 -1.4531521, %v2976_v46  ;;  %v2985_v36 = vadd.f32 -0.28449672, %v2983_v62  ;;  %v6157_v17 = vadd.f32 %v6109_v55, %v6092_v38  ;;  %v6161_v18 = vadd.f32 %v6111_v39, %v5991_v51 }
 0x19e   : > { %v3574_v9 = vadd.f32 %v3570_v53, %v3456_v25  ;;  %v6164_v59 = vmul.f32 0.70710677, %v6153_v1  ;;  %v964_v40 = vadd.f32 %v963_v58, %v6072_v41  ;;  %v2009_v2 = vadd.f32 %v2008_v37, %v6099_v13 }
 0x19f   : > { %v2980_v20 = vmul.f32 %v4192_v6, %v2978_v61  ;;  %v2987_v38 = vmul.f32 %v6129_v27, %v2985_v36  ;;  %v970_v51 = vadd.f32 %v969_v56, %v5985_v47  ;;  %v2015_v55 = vadd.f32 %v2014_v50, %v6102_v5 }
 0x1a0   : > { %v3677_v39 = vadd.f32 %v3673_v33, %v3574_v9  ;;  %v3699_v35 = vand.u32 2147483647, %v6164_v59  ;;  %v6180_v42 = vadd.f32 %v2009_v2, %v964_v40  ;;  %vm3005_vm8 = vcmp.ge.f32.partialorder %v6060_v21, 0.0 }
 0x1a1   : > { %v2982_v41 = vadd.f32 1.4214138, %v2980_v20  ;;  %v2989_v58 = vadd.f32 0.2548296, %v2987_v38  ;;  %v6182_v15 = vadd.f32 %v2015_v55, %v970_v51  ;;  %v2963_v60 = vmul.f32 0.5, %v6049_v24 }
 0x1a2   : > { %v3692_v13 = vadd.f32 %v3688_v32, %v3677_v39  ;;  %v3701_v37 = vmul.f32 0.3275911, %v3699_v35  ;;  %v3725_v63 = vsub.f32 0.0, %v3699_v35  ;;  %vm3006_vm9 = vcmp.ge.f32.partialorder %v6087_v16, 0.0 }
 0x1a3   : > { %v2984_v48 = vmul.f32 %v4192_v6, %v2982_v41  ;;  %v2991_v43 = vmul.f32 %v6129_v27, %v2989_v58  ;;  %v2964_v8 = vmul.f32 0.5, %v6078_v31  ;;  %vm3737_vm10 = vcmp.ge.f32.partialorder %v6164_v59, 0.0 }
 0x1a4   : > { %v6186_v47 = vadd.f32 %v3692_v13, %v5726_v19  ;;  %v3703_v56 = vadd.f32 1.0, %v3701_v37  ;;  %v3727_v22 = vmul.f32 %v3725_v63, %v3699_v35 }
 0x1a5   : > { %v2986_v14 = vadd.f32 -0.28449672, %v2984_v48  ;;  %v3001_v5 = vmul.f32 %v4190_v45, %v2991_v43 }
 0x1a6   : > { %v4194_v50 = vpop.eup %4193  ;;  %v6189_v11 = vmul.f32 0.70710677, %v6186_v47  ;;  %4195 = vrcp.f32 %v3703_v56  ;;  %v3729_v46 = vmul.f32 1.442695, %v3727_v22 }
 0x1a7   : > { %v2988_v23 = vmul.f32 %v4192_v6, %v2986_v14  ;;  %v3003_v29 = vsub.f32 1.0, %v3001_v5 }
 0x1a8   : > { %v3700_v28 = vand.u32 2147483647, %v6189_v11  ;;  %vm3738_vm11 = vcmp.ge.f32.partialorder %v6189_v11, 0.0 }
 0x1a9   : > { %v2990_v30 = vadd.f32 0.2548296, %v2988_v23  ;;  %v3007_v52 = vsub.f32 0.0, %v3003_v29 }
 0x1aa   : > { %v3702_v44 = vmul.f32 0.3275911, %v3700_v28  ;;  %v3726_v4 = vsub.f32 0.0, %v3700_v28 }
 0x1ab   : > { %v2992_v12 = vmul.f32 %v4192_v6, %v2990_v30  ;;  %v3009_v34 = vsel %vm3005_vm8, %v3003_v29, %v3007_v52 }
 0x1ac   : > { %v3704_v19 = vadd.f32 1.0, %v3702_v44  ;;  %v3011_v45 = vadd.f32 1.0, %v3009_v34  ;;  %v3728_v25 = vmul.f32 %v3726_v4, %v3700_v28  ;;  %v3696_v4 = vmul.f32 0.5, %v6186_v47 }
 0x1ad   : > { %v3002_v27 = vmul.f32 %v4194_v50, %v2992_v12  ;;  %v3695_v12 = vmul.f32 0.5, %v6153_v1 }
 0x1ae   : > { %4197 = vrcp.f32 %v3704_v19  ;;  %v3013_v21 = vmul.f32 %v3011_v45, %v2963_v60  ;;  %v3731_v16 = vmul.f32 1.442695, %v3728_v25 }
 0x1af   : > { %v3004_v49 = vsub.f32 1.0, %v3002_v27  ;;  %4199 = vpow2.f32 %v3729_v46 }
 0x1b0   : > { %4201 = vpow2.f32 %v3731_v16  ;;  %v3039_v35 = vmul.f32 %v3013_v21, %v3013_v21  ;;  %v3025_v13 = vrot.slane %v3013_v21, 4 }
 0x1b1   : > { %v3008_v7 = vsub.f32 0.0, %v3004_v49 }
 0x1b2   : > { %v3041_v56 = vrot.slane %v3039_v35, 4  ;;  %v3026_v23 = vadd.f32 %v3025_v13, %v3013_v21 }
 0x1b3   : > { %v4196_v57 = vpop.eup %4195  ;;  %v3010_v6 = vsel %vm3006_vm9, %v3004_v49, %v3008_v7 }
 0x1b4   : > { %v3012_v10 = vadd.f32 1.0, %v3010_v6  ;;  %v3707_v26 = vmul.f32 1.0614054, %v4196_v57  ;;  %v3042_v44 = vadd.f32 %v3041_v56, %v3039_v35  ;;  %v3027_v63 = vrot.slane %v3026_v23, 2 }
 0x1b6   : > { %v3014_v62 = vmul.f32 %v3012_v10, %v2964_v8  ;;  %v3709_v54 = vadd.f32 -1.4531521, %v3707_v26  ;;  %v3043_v22 = vrot.slane %v3042_v44, 2  ;;  %v3028_v6 = vadd.f32 %v3027_v63, %v3026_v23 }
 0x1b8   : > { %v4117_v33 = vpack.c.bf16 %v3014_v62, %v3013_v21  ;;  %v3711_v53 = vmul.f32 %v4196_v57, %v3709_v54  ;;  %v3040_v48 = vmul.f32 %v3014_v62, %v3014_v62  ;;  %v3031_v5 = vrot.slane %v3014_v62, 4 }
 0x1ba   : > { %4074 = vst [vmem:[%s5977_s20 + $0x10] sm:$0xff] %v4117_v33  ;;  %v3713_v32 = vadd.f32 1.4214138, %v3711_v53  ;;  %v3047_v30 = vrot.slane %v3040_v48, 4  ;;  %v3032_v34 = vadd.f32 %v3031_v5, %v3014_v62  ;;  %v3044_v62 = vadd.f32 %v3043_v22, %v3042_v44 }
 0x1bb   : > { %v4198_v24 = vpop.eup %4197 }
 0x1bc   : > { %v3708_v61 = vmul.f32 1.0614054, %v4198_v24  ;;  %v3715_v36 = vmul.f32 %v4196_v57, %v3713_v32  ;;  %v4200_v39 = vpop.eup %4199  ;;  %v3048_v7 = vadd.f32 %v3047_v30, %v3040_v48  ;;  %v3033_v59 = vrot.slane %v3032_v34, 2 }
 0x1bd   : > { %v4202_v28 = vpop.eup %4201 }
 0x1be   : > { %v3710_v9 = vadd.f32 -1.4531521, %v3708_v61  ;;  %v3717_v31 = vadd.f32 -0.28449672, %v3715_v36  ;;  %v3049_v26 = vrot.slane %v3048_v7, 2  ;;  %v3034_v25 = vadd.f32 %v3033_v59, %v3032_v34 }
 0x1c0   : > { %v3712_v40 = vmul.f32 %v4198_v24, %v3710_v9  ;;  %v3719_v2 = vmul.f32 %v4196_v57, %v3717_v31  ;;  %v3050_v47 = vadd.f32 %v3049_v26, %v3048_v7  ;;  %v3045_v9 = vrot.slane %v3044_v62, 1 }
 0x1c2   : > { %v3714_v20 = vadd.f32 1.4214138, %v3712_v40  ;;  %v3721_v38 = vadd.f32 0.2548296, %v3719_v2  ;;  %v3035_v40 = vrot.slane %v3034_v25, 1 }
 0x1c4   : > { %v3716_v51 = vmul.f32 %v4198_v24, %v3714_v20  ;;  %v3723_v55 = vmul.f32 %v4196_v57, %v3721_v38 }
 0x1c6   : > { %v3718_v41 = vadd.f32 -0.28449672, %v3716_v51  ;;  %v3733_v58 = vmul.f32 %v4200_v39, %v3723_v55 }
 0x1c8   : > { %v3720_v37 = vmul.f32 %v4198_v24, %v3718_v41  ;;  %v3735_v43 = vsub.f32 1.0, %v3733_v58 }
 0x1ca   : > { %v3722_v14 = vadd.f32 0.2548296, %v3720_v37  ;;  %v3739_v50 = vsub.f32 0.0, %v3735_v43 }
 0x1cc   : > { %v3724_v29 = vmul.f32 %v4198_v24, %v3722_v14  ;;  %v3741_v52 = vsel %vm3737_vm10, %v3735_v43, %v3739_v50  ;;  %v3029_v24 = vrot.slane %v3028_v6, 1 }
 0x1cd   : > { %v3743_v27 = vadd.f32 1.0, %v3741_v52 }
 0x1ce   : > { %v3734_v19 = vmul.f32 %v4202_v28, %v3724_v29 }
 0x1cf   : > { %v3745_v45 = vmul.f32 %v3743_v27, %v3695_v12 }
 0x1d0   : > { %v3736_v49 = vsub.f32 1.0, %v3734_v19 }
 0x1d1   : > { %v3757_v57 = vrot.slane %v3745_v45, 4  ;;  %v3771_v8 = vmul.f32 %v3745_v45, %v3745_v45 }
 0x1d2   : > { %v3740_v60 = vsub.f32 0.0, %v3736_v49 }
 0x1d3   : > { %v3758_v21 = vadd.f32 %v3757_v57, %v3745_v45  ;;  %v3773_v1 = vrot.slane %v3771_v8, 4 }
 0x1d4   : > { %v3742_v10 = vsel %vm3738_vm11, %v3736_v49, %v3740_v60 }
 0x1d5   : > { %v3744_v46 = vadd.f32 1.0, %v3742_v10  ;;  %v3759_v54 = vrot.slane %v3758_v21, 2  ;;  %v3774_v33 = vadd.f32 %v3773_v1, %v3771_v8 }
 0x1d7   : > { %v3746_v53 = vmul.f32 %v3744_v46, %v3696_v4  ;;  %v3760_v32 = vadd.f32 %v3759_v54, %v3758_v21  ;;  %v3775_v11 = vrot.slane %v3774_v33, 2 }
 0x1d9   : > { %v4118_v61 = vpack.c.bf16 %v3746_v53, %v3745_v45  ;;  %v3763_v16 = vrot.slane %v3746_v53, 4  ;;  %v3772_v36 = vmul.f32 %v3746_v53, %v3746_v53  ;;  %v3776_v31 = vadd.f32 %v3775_v11, %v3774_v33 }
 0x1da   : > { %v3761_v38 = vrot.slane %v3760_v32, 1 }
 0x1db   : > { %4105 = vst [vmem:[%s5977_s20 + $0x18] sm:$0xff] %v4118_v61  ;;  %v3764_v2 = vadd.f32 %v3763_v16, %v3746_v53  ;;  %v3779_v20 = vrot.slane %v3772_v36, 4 }
 0x1dc   : > { %4251 = shalt.err (!%p4248_p3)
}
 0x1dd   : > { %s4252_s20 = scalar_lea.hbm %s6206_s27, 512  ;;  %s4256_s9 = scalar_lea.hbm %s6278_s3, 1024 }
 0x1de   : > { %p4253_p4 = scmp.ne.s32.totalorder %s6206_s27, %s4252_s20  ;;  %p4257_p9 = scmp.lt.s32.totalorder %s6206_s27, %s6278_s3 }
 0x1df   : > { %p4258_p10 = scmp.lt.s32.totalorder %s4256_s9, %s4252_s20 }
 0x1e0   : > { %p4254_p7 = pnand %p4253_p4, %p4400_p5 }
 0x1e1   : > { %p4259_p11 = por %p4258_p10, %p4257_p9 }
 0x1e2   : > { %p4255_p8 = pneg %p4254_p7 }
 0x1e4   : > { %p4260_p12 = pnand %p4259_p11, %p4255_p8 }
 0x1e6   : > { %4263 = shalt.err (!%p4260_p12)
}
 0x1e7   : > { %s4333_s23 = smov 128   ;;  %s4334_s14 = smov 8   ;;  %v3030_v51 = vadd.f32 %v3029_v24, %v3028_v6  ;;  %v4335_v55 = vmov 1966171168   ;;  %v3765_v35 = vrot.slane %v3764_v2, 2  ;;  %v3780_v41 = vadd.f32 %v3779_v20, %v3772_v36 }
 0x1e8   : > { %4122 = dma.vmem_to_hbm [thread:$0]  (%p4400_p5), %s6208_s11, 512, %s6206_s27, %s3831_s28, %s4333_s23, %s4333_s23, %s4334_s14   ;;  %v3791_v39 = vunpack.c.l.s4 %v4335_v55  ;;  %v3051_v58 = vrot.slane %v3050_v47, 1  ;;  %v3777_v13 = vrot.slane %v3776_v31, 1  ;;  %v3046_v37 = vadd.f32 %v3045_v9, %v3044_v62 }
 0x1e9   : > { %v3766_v48 = vadd.f32 %v3765_v35, %v3764_v2  ;;  %v3781_v43 = vrot.slane %v3780_v41, 2  ;;  %v3036_v56 = vadd.f32 %v3035_v40, %v3034_v25  ;;  %v3762_v14 = vadd.f32 %v3761_v38, %v3760_v32  ;;  %s3962_s11 = sshll.u32 %s5948_s12, 2  ;;  %s4120_s22 = sshll.u32 %s4383_s19, 6 }
 0x1ea   : > { %v3037_v5 = vadd.f32 %v3030_v51, %v6157_v17  ;;  %v3792_v50 = vunpack.c.0.s8 %v3791_v39  ;;  %v3052_v23 = vadd.f32 %v3051_v58, %v3050_v47  ;;  %v3778_v28 = vadd.f32 %v3777_v13, %v3776_v31  ;;  %s201_s27 = scalar_lea.vmem [#allocation4], %s3962_s11  ;;  %s3864_s5 = scalar_lea.hbm %s6279_s4, %s4120_s22 }
 0x1eb   : > { %v3767_v29 = vrot.slane %v3766_v48, 1  ;;  %v3782_v30 = vadd.f32 %v3781_v43, %v3780_v41  ;;  %v3053_v52 = vadd.f32 %v3046_v37, %v6180_v42  ;;  %v3038_v44 = vadd.f32 %v3036_v56, %v6161_v18  ;;  %s3866_s28 = sshll.u32 %s201_s27, 4  ;;  %s3836_s6 = scalar_lea.sflag [#allocation5], %s5948_s12  ;;  %s3867_s28 = int_to_ptr.vmem [resolvable:$true] %s3866_s28 }
 0x1ec   : > { %v3769_v19 = vadd.f32 %v3762_v14, %v3037_v5  ;;  %v3795_v34 = vsub.s32 %v3792_v50, %v4423_v3  ;;  %v3054_v63 = vadd.f32 %v3052_v23, %v6182_v15  ;;  %vm3807_vm12 = vcmp.lt.s32.totalorder %v217_v0, 256  ;;  %s4264_s20 = scalar_lea.vmem %s3867_s28, 64  ;;  %s4336_s8 = smov [#allocation4]  }
 0x1ed   : > { %v3768_v12 = vadd.f32 %v3767_v29, %v3766_v48  ;;  %v3783_v27 = vrot.slane %v3782_v30, 1  ;;  %v3785_v45 = vadd.f32 %v3778_v28, %v3053_v52  ;;  %p4265_p13 = scmp.ne.s32.totalorder %s3867_s28, %s4264_s20  ;;  %s4268_s19 = sshll.u32 %s4336_s8, 4  ;;  %s4269_s19 = int_to_ptr.vmem [resolvable:$false] %s4268_s19 }
 0x1ee   : > { %s4270_s7 = scalar_lea.vmem %s4269_s19, 128  ;;  %p4271_p2 = scmp.lt.s32.totalorder %s3867_s28, %s4269_s19 }
 0x1ef   : > { %v3770_v49 = vadd.f32 %v3768_v12, %v3038_v44  ;;  %v3784_v17 = vadd.f32 %v3783_v27, %v3782_v30  ;;  %p4266_p0 = pnand %p4265_p13, %p4400_p5  ;;  %p4272_p3 = scmp.lt.s32.totalorder %s4270_s7, %s4264_s20 }
 0x1f1   : > { %v3786_v7 = vadd.f32 %v3784_v17, %v3054_v63  ;;  %v3789_v22 = vcombine.low %v3769_v19, %v3770_v49  ;;  %p4267_p1 = pneg %p4266_p0  ;;  %p4273_p4 = por %p4272_p3, %p4271_p2 }
 0x1f3   : > { %v3796_v60 = vrot.slane %v3789_v22, %v3795_v34  ;;  %v3812_v42 = vcombine.low %v3785_v45, %v3786_v7  ;;  %p4274_p7 = pnand %p4273_p4, %p4267_p1 }
 0x1f5   : > { %v3803_v18 = vrot.slane %v3796_v60, %v3795_v34  ;;  %v3819_v57 = vrot.slane %v3812_v42, %v3795_v34 }
 0x1f7   : > { %3809 = vst.msk [vmem:[%s201_s27] ss:$2 sm:$0x3] %vm3807_vm12, %v3803_v18  ;;  %v3826_v3 = vrot.slane %v3819_v57, %v3795_v34 }
 0x1f9   : > { %4106 = vst.msk [vmem:[%s201_s27 + $0x1] ss:$2 sm:$0x3] %vm3807_vm12, %v3826_v3 }
 0x1fa   : > { %4277 = shalt.err (!%p4274_p7)
}
 0x1fb   : > { %s4278_s9 = scalar_lea.hbm %s3864_s5, 64  ;;  %s4282_s13 = scalar_lea.hbm %s6279_s4, 128 }
 0x1fc   : > { %p4279_p8 = scmp.ne.s32.totalorder %s3864_s5, %s4278_s9  ;;  %p4283_p11 = scmp.lt.s32.totalorder %s3864_s5, %s6279_s4 }
 0x1fd   : > { %p4284_p12 = scmp.lt.s32.totalorder %s4282_s13, %s4278_s9 }
 0x1fe   : > { %p4280_p9 = pnand %p4279_p8, %p4400_p5 }
 0x1ff   : > { %p4285_p13 = por %p4284_p12, %p4283_p11 }
 0x200   : > { %p4281_p10 = pneg %p4280_p9 }
 0x202   : > { %p4286_p0 = pnand %p4285_p13, %p4281_p10 }
 0x204   : > { %4289 = shalt.err (!%p4286_p0)
}
 0x205   : > { %4123 = dma.vmem_to_hbm [thread:$0]  (%p4400_p5), %s3867_s28, 64, %s3864_s5, %s3836_s6  }
 0x206 PF: > { %p4133_p1 = scmp.ge.s32.totalorder %s4328_s18, 2  ;;  %s3878_s11 = sand.u32 1, %s4316_s15  }
 0x207   : > { %s3879_s22 = scalar_lea.sflag [#allocation3], %s3878_s11 }
 0x208   : > { %p4127_p2 = pnand %p4133_p1, %p4404_p6 }
 0x20a   : > { %p4128_p3 = pneg %p4127_p2 }
 0x20c   : > { %4307 = dma.done.wait (%p4128_p3), %s3879_s22, 512  }
 0x20d   : > { %4309 = vsyncadd (%p4128_p3), %s3879_s22, 4294966784  ;;  %s3888_s27 = scalar_lea.sflag [#allocation5], %s3878_s11 }
 0x20e   : > { %4311 = dma.done.wait (%p4128_p3), %s3888_s27, 64  }
 0x20f   : > { %4313 = vsyncadd (%p4128_p3), %s3888_s27, 4294967232  ;;  %p18_p5 = scmp.ge.s32.totalorder %s4387_s21, 4   ;;  %s6282_s15 = smov %s4320_s16 }
 0x210   : > { %s6283_s16 = smov %s4324_s17  ;;  %s6284_s17 = smov %s4398_s24 }
 0x211   : > { %s6285_s18 = smov %s4387_s21  ;;  %20 = sbr.rel (!%p18_p5) target bundleno = 5 (0x5), region = 117 }
 0x216   :  { %3893 = vsyncpa [#allocation3], 1 }
 0x217   :  { %3895 = vsyncpa [#allocation3 + $0x1], 1 }
 0x218   :  { %3896 = vsyncpa [#allocation5], 1 }
 0x219   :  { %3898 = vsyncpa [#allocation5 + $0x1], 1 }

</bundles_post_ra>
